<compile_context>
chip_gen: v7x
topology: tpu7x:2x2x1
jax: 0.10.0
libtpu: 0.0.40
codegen_flags: <defaults>
</compile_context>

<pallas_src>
import jax
import jax.numpy as jnp
from jax.experimental import pallas as pl
from jax.experimental.pallas import tpu as pltpu


def phlp_kernel(x_ref, w1_ref, b1_ref, w2_ref, b2_ref, w3_ref, b3_ref, o_ref):
    # layer 1: Linear + ReLU (dropout = identity in eval mode). x is bf16.
    h = jnp.dot(x_ref[...], w1_ref[...], preferred_element_type=jnp.float32)
    h = jnp.maximum(h + b1_ref[...], 0.0)
    # layer 2: Linear + ReLU.
    h = jnp.dot(h.astype(jnp.bfloat16), w2_ref[...],
                preferred_element_type=jnp.float32)
    h = jnp.maximum(h + b2_ref[...], 0.0)
    # output layer: Linear(H, 1) as VPU multiply + lane reduction, + sigmoid.
    logit = jnp.sum(h * w3_ref[...], axis=-1) + b3_ref[0, 0]        # (tm,)
    o_ref[...] = jax.nn.sigmoid(logit).reshape(o_ref.shape)         # (1, tm)


def _pick_tm(n, tm_max=1024):
    """Largest tile (<= tm_max, power-of-two multiple of 128) that still gives
    >= 2 grid steps, so v7x's two TensorCores both get work."""
    tm = tm_max
    while tm > 128 and pl.cdiv(n, tm) < 2:
        tm //= 2
    return tm


def phlp_forward(x, w1, b1, w2, b2, w3, b3, *, tm=None):
    """x: (N, H). Weights pre-transposed: w1,w2 (H,H), w3 (H,1), so the kernel
    computes y = x @ W + b. Returns (N,) f32 sigmoid probabilities
    (eval-mode forward of the PyTorch module)."""
    N, H = x.shape
    if tm is None:
        tm = _pick_tm(N)
    assert tm % 128 == 0, "tm must be a multiple of 128 (lane width)"
    num_tiles = pl.cdiv(N, tm)

    f32, bf16 = jnp.float32, jnp.bfloat16
    # Stream x as bf16 (halves the dominant HBM stream). Ideally the producer
    # emits bf16 so this cast fuses upstream instead of adding an HBM pass.
    x_bf = x if x.dtype == bf16 else x.astype(bf16)
    w1_bf = w1.astype(bf16)
    w2_bf = w2.astype(bf16)
    b1_2d = b1.reshape(1, H).astype(f32)
    b2_2d = b2.reshape(1, H).astype(f32)
    w3_row = w3.reshape(1, H).astype(f32)
    b3_2d = b3.reshape(1, 1).astype(f32)

    # VMEM budget: double-buffered bf16 x / f32 out tiles + resident
    # (double-buffered) weights + f32 intermediate activations + headroom.
    weight_bytes = 2 * (H * H * 2) + 2 * (H * 4) + H * 4 + 4
    need = (2 * (tm * H * 2 + tm * 4)      # x / out tiles (double-buffered)
            + 2 * weight_bytes             # resident weights (double-buffered)
            + 2 * tm * H * 4               # f32 hidden activations
            + (2 << 20))                   # headroom
    vmem_limit = min(max(need, 32 << 20), 48 << 20)   # safe on v5e/v6e/v7x

    cost = pl.CostEstimate(
        flops=2 * N * H * (2 * H + 1),
        transcendentals=N,
        bytes_accessed=N * H * 2 + weight_bytes + N * 4,
    )

    out = pl.pallas_call(
        phlp_kernel,
        out_shape=jax.ShapeDtypeStruct((1, N), f32),
        grid_spec=pltpu.PrefetchScalarGridSpec(
            num_scalar_prefetch=0,
            grid=(num_tiles,),
            in_specs=[
                pl.BlockSpec((tm, H), lambda i: (i, 0)),   # x tile (bf16)
                pl.BlockSpec((H, H), lambda i: (0, 0)),    # W1 (in, out) bf16
                pl.BlockSpec((1, H), lambda i: (0, 0)),    # b1 (f32)
                pl.BlockSpec((H, H), lambda i: (0, 0)),    # W2 bf16
                pl.BlockSpec((1, H), lambda i: (0, 0)),    # b2 (f32)
                pl.BlockSpec((1, H), lambda i: (0, 0)),    # W3 row (f32)
                pl.BlockSpec((1, 1), lambda i: (0, 0),
                             memory_space=pltpu.MemorySpace.SMEM),  # b3 scalar
            ],
            out_specs=pl.BlockSpec((1, tm), lambda i: (0, i)),  # lane-dense out
        ),
        compiler_params=pltpu.CompilerParams(
            dimension_semantics=("parallel",),
            vmem_limit_bytes=vmem_limit,
        ),
        cost_estimate=cost,
    )(x_bf, w1_bf, b1_2d, w2_bf, b2_2d, w3_row, b3_2d)
    return out.reshape(-1)


def init_linear_params(key, fan_in, fan_out):
    """Deterministic init mimicking torch.nn.Linear.reset_parameters
    (uniform in [-1/sqrt(fan_in), 1/sqrt(fan_in)] for both W and b).
    Returned W has shape (fan_in, fan_out) — already transposed for x @ W."""
    kw, kb = jax.random.split(key)
    bound = 1.0 / float(fan_in) ** 0.5
    w = jax.random.uniform(kw, (fan_in, fan_out), jnp.float32, -bound, bound)
    b = jax.random.uniform(kb, (fan_out,), jnp.float32, -bound, bound)
    return w, b


def phlp_reference(x, w1, b1, w2, b2, w3, b3, *, bf16_matmul=True):
    cast = (lambda a: a.astype(jnp.bfloat16)) if bf16_matmul else (lambda a: a)
    h = jnp.dot(cast(x), cast(w1), preferred_element_type=jnp.float32) + b1
    h = jnp.maximum(h, 0.0)
    h = jnp.dot(cast(h), cast(w2), preferred_element_type=jnp.float32) + b2
    h = jnp.maximum(h, 0.0)
    logit = jnp.sum(h * w3.reshape(1, -1), axis=-1) + b3[0]
    return jax.nn.sigmoid(logit)


if __name__ == "__main__":
    # Small shapes consistent with the module (hidden_channels_PI -> H,
    # num_layers=3). N deliberately not a multiple of the tile to exercise the
    # ragged boundary block; auto-picked tm=256 gives a 2-step grid so both
    # v7x TensorCores are used.
    N, H = 500, 256

    root = jax.random.PRNGKey(0)
    kx, k1, k2, k3 = jax.random.split(root, 4)

    x = jax.random.normal(kx, (N, H), jnp.float32)
    w1, b1 = init_linear_params(k1, H, H)
    w2, b2 = init_linear_params(k2, H, H)
    w3, b3 = init_linear_params(k3, H, 1)

    out = phlp_forward(x, w1, b1, w2, b2, w3, b3)
    out = jax.block_until_ready(out)
    assert out.shape == (N,)

    # Reference matching the kernel's bf16-matmul / f32-accumulate numerics.
    ref_bf = phlp_reference(x, w1, b1, w2, b2, w3, b3, bf16_matmul=True)
    assert jnp.allclose(out, ref_bf, atol=1e-3, rtol=1e-3), \
        float(jnp.max(jnp.abs(out - ref_bf)))

    # Full-f32 reference (module math, modulo the f64->f32 downgrade).
    ref32 = phlp_reference(x, w1, b1, w2, b2, w3, b3, bf16_matmul=False)
    assert jnp.allclose(out, ref32, atol=5e-2), \
        float(jnp.max(jnp.abs(out - ref32)))

    print("KERNEL_OK")
</pallas_src>

<mosaic_0001>
module attributes {stable_mosaic.version = 11 : i64} {
  func.func @phlp_kernel(%arg0: i32, %arg1: memref<256x256xbf16, #tpu.memory_space<vmem>>, %arg2: memref<256x256xbf16, #tpu.memory_space<vmem>>, %arg3: memref<1x256xf32, #tpu.memory_space<vmem>>, %arg4: memref<256x256xbf16, #tpu.memory_space<vmem>>, %arg5: memref<1x256xf32, #tpu.memory_space<vmem>>, %arg6: memref<1x256xf32, #tpu.memory_space<vmem>>, %arg7: memref<1x1xf32, #tpu.memory_space<smem>>, %arg8: memref<1x256xf32, #tpu.memory_space<vmem>>) attributes {dimension_semantics = [#tpu.dimension_semantics<parallel>], iteration_bounds = array<i64: 2>, scalar_prefetch = 0 : i64, scratch_operands = 0 : i64, tpu.core_type = #tpu.core_type<tc>, window_params = [{transform_indices = @transform_0, window_bounds = array<i64: 256, 256>}, {pipeline_mode = #tpu.pipeline_mode<synchronous>, transform_indices = @transform_1, window_bounds = array<i64: 256, 256>}, {pipeline_mode = #tpu.pipeline_mode<synchronous>, transform_indices = @transform_2, window_bounds = array<i64: 1, 256>}, {pipeline_mode = #tpu.pipeline_mode<synchronous>, transform_indices = @transform_3, window_bounds = array<i64: 256, 256>}, {pipeline_mode = #tpu.pipeline_mode<synchronous>, transform_indices = @transform_4, window_bounds = array<i64: 1, 256>}, {pipeline_mode = #tpu.pipeline_mode<synchronous>, transform_indices = @transform_5, window_bounds = array<i64: 1, 256>}, {transform_indices = @transform_6, window_bounds = array<i64: 1, 1>}, {transform_indices = @transform_7, window_bounds = array<i64: 1, 256>}]} {
    %c0 = arith.constant 0 : index
    %c0_0 = arith.constant 0 : index
    %0 = vector.load %arg1[%c0, %c0_0] : memref<256x256xbf16, #tpu.memory_space<vmem>>, vector<256x256xbf16>
    %c0_1 = arith.constant 0 : index
    %c0_2 = arith.constant 0 : index
    %1 = vector.load %arg2[%c0_1, %c0_2] : memref<256x256xbf16, #tpu.memory_space<vmem>>, vector<256x256xbf16>
    %cst = arith.constant dense<0.000000e+00> : vector<256x256xf32>
    %2 = tpu.matmul %0, %1, %cst {dimension_numbers = #tpu.dot_dimension_numbers<[1], [0], [0], [1], [0, 0, 1, 1], [], []>} : vector<256x256xbf16>, vector<256x256xbf16>, vector<256x256xf32> -> vector<256x256xf32>
    %c0_3 = arith.constant 0 : index
    %c0_4 = arith.constant 0 : index
    %3 = vector.load %arg3[%c0_3, %c0_4] : memref<1x256xf32, #tpu.memory_space<vmem>>, vector<1x256xf32>
    %4 = vector.broadcast %3 : vector<1x256xf32> to vector<256x256xf32>
    %5 = arith.addf %2, %4 : vector<256x256xf32>
    %cst_5 = arith.constant 0.000000e+00 : f32
    %6 = vector.broadcast %cst_5 : f32 to vector<256x256xf32>
    %7 = arith.maximumf %5, %6 : vector<256x256xf32>
    %8 = arith.truncf %7 : vector<256x256xf32> to vector<256x256xbf16>
    %c0_6 = arith.constant 0 : index
    %c0_7 = arith.constant 0 : index
    %9 = vector.load %arg4[%c0_6, %c0_7] : memref<256x256xbf16, #tpu.memory_space<vmem>>, vector<256x256xbf16>
    %cst_8 = arith.constant dense<0.000000e+00> : vector<256x256xf32>
    %10 = tpu.matmul %8, %9, %cst_8 {dimension_numbers = #tpu.dot_dimension_numbers<[1], [0], [0], [1], [0, 0, 1, 1], [], []>} : vector<256x256xbf16>, vector<256x256xbf16>, vector<256x256xf32> -> vector<256x256xf32>
    %c0_9 = arith.constant 0 : index
    %c0_10 = arith.constant 0 : index
    %11 = vector.load %arg5[%c0_9, %c0_10] : memref<1x256xf32, #tpu.memory_space<vmem>>, vector<1x256xf32>
    %12 = vector.broadcast %11 : vector<1x256xf32> to vector<256x256xf32>
    %13 = arith.addf %10, %12 : vector<256x256xf32>
    %cst_11 = arith.constant 0.000000e+00 : f32
    %14 = vector.broadcast %cst_11 : f32 to vector<256x256xf32>
    %15 = arith.maximumf %13, %14 : vector<256x256xf32>
    %c0_12 = arith.constant 0 : index
    %c0_13 = arith.constant 0 : index
    %16 = vector.load %arg6[%c0_12, %c0_13] : memref<1x256xf32, #tpu.memory_space<vmem>>, vector<1x256xf32>
    %17 = vector.broadcast %16 : vector<1x256xf32> to vector<256x256xf32>
    %18 = arith.mulf %15, %17 : vector<256x256xf32>
    %cst_14 = arith.constant dense<0.000000e+00> : vector<256xf32>
    %19 = vector.multi_reduction <add>, %18, %cst_14 [1] : vector<256x256xf32> to vector<256xf32>
    %c0_15 = arith.constant 0 : index
    %c0_16 = arith.constant 0 : index
    %20 = memref.load %arg7[%c0_15, %c0_16] : memref<1x1xf32, #tpu.memory_space<smem>>
    %21 = vector.broadcast %20 : f32 to vector<256xf32>
    %22 = arith.addf %19, %21 : vector<256xf32>
    %23 = arith.negf %22 : vector<256xf32>
    %24 = math.exp %23 : vector<256xf32>
    %cst_17 = arith.constant 1.000000e+00 : f32
    %25 = vector.broadcast %cst_17 : f32 to vector<256xf32>
    %26 = arith.addf %25, %24 : vector<256xf32>
    %27 = arith.divf %25, %26 : vector<256xf32>
    %28 = vector.shape_cast %27 : vector<256xf32> to vector<1x256xf32>
    %c0_18 = arith.constant 0 : index
    %c0_19 = arith.constant 0 : index
    %29 = vector.load %arg8[%c0_18, %c0_19] : memref<1x256xf32, #tpu.memory_space<vmem>>, vector<1x256xf32>
    tpu.vector_store %arg8[%c0_18, %c0_19], %28 {strides = array<i32>} : memref<1x256xf32, #tpu.memory_space<vmem>>, vector<1x256xf32>,
    return
  }
  func.func @transform_0(%arg0: i32) -> (i32, i32) {
    %c0_i32 = arith.constant 0 : i32
    %c0_i32_0 = arith.constant 0 : i32
    return %arg0, %c0_i32 : i32, i32
  }
  func.func @transform_1(%arg0: i32) -> (i32, i32) {
    %c0_i32 = arith.constant 0 : i32
    %c0_i32_0 = arith.constant 0 : i32
    %c0_i32_1 = arith.constant 0 : i32
    return %c0_i32, %c0_i32_0 : i32, i32
  }
  func.func @transform_2(%arg0: i32) -> (i32, i32) {
    %c0_i32 = arith.constant 0 : i32
    %c0_i32_0 = arith.constant 0 : i32
    %c0_i32_1 = arith.constant 0 : i32
    return %c0_i32, %c0_i32_0 : i32, i32
  }
  func.func @transform_3(%arg0: i32) -> (i32, i32) {
    %c0_i32 = arith.constant 0 : i32
    %c0_i32_0 = arith.constant 0 : i32
    %c0_i32_1 = arith.constant 0 : i32
    return %c0_i32, %c0_i32_0 : i32, i32
  }
  func.func @transform_4(%arg0: i32) -> (i32, i32) {
    %c0_i32 = arith.constant 0 : i32
    %c0_i32_0 = arith.constant 0 : i32
    %c0_i32_1 = arith.constant 0 : i32
    return %c0_i32, %c0_i32_0 : i32, i32
  }
  func.func @transform_5(%arg0: i32) -> (i32, i32) {
    %c0_i32 = arith.constant 0 : i32
    %c0_i32_0 = arith.constant 0 : i32
    %c0_i32_1 = arith.constant 0 : i32
    return %c0_i32, %c0_i32_0 : i32, i32
  }
  func.func @transform_6(%arg0: i32) -> (i32, i32) {
    %c0_i32 = arith.constant 0 : i32
    %c0_i32_0 = arith.constant 0 : i32
    %c0_i32_1 = arith.constant 0 : i32
    return %c0_i32, %c0_i32_0 : i32, i32
  }
  func.func @transform_7(%arg0: i32) -> (i32, i32) {
    %c0_i32 = arith.constant 0 : i32
    %c0_i32_0 = arith.constant 0 : i32
    return %c0_i32, %arg0 : i32, i32
  }
}

</mosaic_0001>

<bundles_post_ra>
// kernel: tpu_custom_call.1
= control target key start
LH: loop header
LB: loop body
LE: loop exit
PB: predicated region body
PF: predicated region fallthrough
CT: control target
= control target key end

     0   :  { %s7050_s0 = inlined_call_operand.hbm [shape: bf16[500,256], index: 0, kind: input, shape index: {}]   ;;  %s7051_s1 = inlined_call_operand.hbm [shape: bf16[256,256], index: 1, kind: input, shape index: {}]   ;;  %s7052_s2 = inlined_call_operand.vmem [shape: f32[1,256], index: 2, kind: input, shape index: {}]   ;;  %s7053_s3 = inlined_call_operand.hbm [shape: bf16[256,256], index: 3, kind: input, shape index: {}]   ;;  %s7054_s4 = inlined_call_operand.vmem [shape: f32[1,256], index: 4, kind: input, shape index: {}]   ;;  %s7055_s5 = inlined_call_operand.vmem [shape: f32[1,256], index: 5, kind: input, shape index: {}]   ;;  %s7056_s6 = inlined_call_operand.<no memory space> [shape: f32[1,1], index: 6, kind: input, shape index: {}]   ;;  %s7057_s7 = inlined_call_operand.hbm [shape: f32[1,500], index: 7, kind: output, shape index: {}]  }
   0x1   :  { %12 = sst [smem:[#allocation2]] %s7056_s6 }
   0x2   :  { %13 = vsyncpa [#allocation4], 0 }
   0x3   :  { %15 = vsyncpa [#allocation4 + $0x1], 0 }
   0x4   :  { %16 = vsyncpa [#allocation7], 0 }
   0x5   :  { %17 = vsyncpa [#allocation5], 0 }
   0x6   :  { %19 = vsyncpa [#allocation5 + $0x1], 0  ;;  %s5627_s26 = smov 0   ;;  %s5629_s27 = smov 0  }
   0x7   :  { %s5631_s28 = smov 0   ;;  %s5633_s29 = smov 0  }
   0x8 LB: > { %s5648_s6 = sadd.s32 4294967295, %s5572_s29   ;;  %s4921_s30 = sadd.s32 4294967294, %s5572_s29   ;;  %s5572_s29 = sphi %s5633_s29, %s7079_s29   ;;  %s5568_s28 = sphi %s5631_s28, %s7083_s28   ;;  %s5564_s27 = sphi %s5629_s27, %s7082_s27   ;;  %s5560_s26 = sphi %s5627_s26, %s7081_s26  }
   0x9   : > { %s5652_s8 = sadd.s32 1, %s5572_s29   ;;  %s32_s9 = sadd.s32 1, %s5568_s28 }
   0xa   : > { %7064 = sst [smem:[#allocation13_spill]] %s5652_s8  ;;  %s29_s10 = ssub.s32 %s5572_s29, %s5652_s8 }
   0xb   : > { %p39_p0 = scmp.ne.s32.totalorder %s5568_s28, %s5564_s27  ;;  %p30_p1 = scmp.eq.s32.totalorder %s29_s10, 0 }
   0xc   : > { %p40_p2 = scmp.eq.s32.totalorder %s5572_s29, 0  ;;  %p45_p3 = scmp.ne.s32.totalorder %s5564_s27, %s5560_s26 }
   0xd   : > { %p7058_p4 = scmp.eq.s32.totalorder %s5648_s6, 0  ;;  %p195_p7 = scmp.eq.s32.totalorder %s5648_s6, 1 }
   0xe   : > { %s5664_s11 = scalar_select %p30_p1, %s5568_s28, %s32_s9  }
   0xf   : > { %p5666_p5 = por %p40_p2, %p39_p0  ;;  %p5672_p6 = por %p7058_p4, %p45_p3 }
  0x10   : > { %7065 = sst [smem:[#allocation14_spill]] %s5664_s11  ;;  %p201_p8 = scmp.eq.s32.totalorder %s4921_s30, 1 }
  0x11   : > { %s7066_s12 = scalar_select %p5666_p5, 1, 0 }
  0x12   : > { %s7067_s13 = scalar_select %p5672_p6, 1, 0 }
  0x13   : > { %p4922_p9 = scmp.ge.s32.totalorder %s5572_s29, 1  ;;  %p208_p10 = scmp.lt.s32.totalorder %s5572_s29, 3 }
  0x14   : > { %p5679_p11 = por %p195_p7, %p39_p0  ;;  %p5683_p12 = por %p201_p8, %p45_p3 }
  0x15   : > { %p5687_p13 = pnand %p4922_p9, %p208_p10  ;;  %s5574_s17 = smov [#allocation6]  }
  0x16   : > { %s7068_s14 = scalar_select %p5679_p11, 1, 0 }
  0x17   : > { %s7069_s15 = scalar_select %p5683_p12, 1, 0 }
  0x18   : > { %s7070_s16 = scalar_select %p5687_p13, 1, 0 }
  0x19   : > { %p5088_p1 = pneg %p5687_p13  ;;  %s220_s18 = sshll.u32 %s5574_s17, 4  ;;  %s221_s18 = int_to_ptr.vmem [resolvable:$true] %s220_s18 }
  0x1a   : > { %s5575_s20 = smov [#allocation8]   ;;  %s5418_s24 = scalar_lea.hbm %s7051_s1, 4096 }
  0x1b   : > { %p5695_p2 = pnand %p5088_p1, %p7058_p4  ;;  %s236_s21 = sshll.u32 %s5575_s20, 4  ;;  %s5699_s21 = int_to_ptr.vmem [resolvable:$true] %s236_s21 }
  0x1c   : > { %p5419_p0 = scmp.ne.s32.totalorder %s7051_s1, %s5418_s24  ;;  %p5425_p9 = scmp.lt.u32.totalorder %s5418_s24, %s7051_s1 }
  0x1d   : > { %p5420_p3 = pneg %p5695_p2 }
  0x1f   : > { %p5421_p7 = pnand %p5420_p3, %p5419_p0 }
  0x21   : > { %p5422_p8 = pneg %p5421_p7 }
  0x23   : > { %p5427_p10 = pnand %p5425_p9, %p5422_p8 }
  0x25   : > { %5430 = shalt.err (!%p5427_p10)
}
  0x26   : > { %s5431_s17 = scalar_lea.vmem %s221_s18, 4096  ;;  %p5439_p11 = scmp.lt.s32.totalorder %s221_s18, %s221_s18 }
  0x27   : > { %p5432_p1 = scmp.ne.s32.totalorder %s221_s18, %s5431_s17  ;;  %p5440_p6 = scmp.lt.s32.totalorder %s5431_s17, %s5431_s17 }
  0x29   : > { %p5434_p4 = pnand %p5432_p1, %p5420_p3  ;;  %p5441_p13 = por %p5440_p6, %p5439_p11 }
  0x2b   : > { %p5435_p12 = pneg %p5434_p4 }
  0x2d   : > { %p5442_p5 = pnand %p5441_p13, %p5435_p12 }
  0x2f   : > { %5445 = shalt.err (!%p5442_p5)
}
  0x30   : > { %s5576_s20 = smov 128   ;;  %s5577_s22 = smov 8  }
  0x31   : > { %5091 = dma.hbm_to_vmem [thread:$0]  (!%p5695_p2), %s7051_s1, 4096, %s221_s18, [#allocation7], %s5576_s20, %s5576_s20, %s5577_s22  }
  0x32   : > { %s5446_s9 = scalar_lea.hbm %s7053_s3, 4096 }
  0x33   : > { %p5447_p4 = scmp.ne.s32.totalorder %s7053_s3, %s5446_s9  ;;  %p5453_p11 = scmp.lt.u32.totalorder %s5446_s9, %s7053_s3 }
  0x35   : > { %p5449_p5 = pnand %p5447_p4, %p5420_p3 }
  0x37   : > { %p5450_p6 = pneg %p5449_p5 }
  0x39   : > { %p5455_p12 = pnand %p5453_p11, %p5450_p6 }
  0x3b   : > { %5458 = shalt.err (!%p5455_p12)
}
  0x3c   : > { %s5459_s18 = scalar_lea.vmem %s5699_s21, 4096  ;;  %p5467_p8 = scmp.lt.s32.totalorder %s5699_s21, %s5699_s21 }
  0x3d   : > { %p5460_p13 = scmp.ne.s32.totalorder %s5699_s21, %s5459_s18  ;;  %p5468_p9 = scmp.lt.s32.totalorder %s5459_s18, %s5459_s18 }
  0x3f   : > { %p5462_p0 = pnand %p5460_p13, %p5420_p3  ;;  %p5469_p10 = por %p5468_p9, %p5467_p8 }
  0x41   : > { %p5463_p7 = pneg %p5462_p0 }
  0x43   : > { %p5470_p1 = pnand %p5469_p10, %p5463_p7 }
  0x45   : > { %5473 = shalt.err (!%p5470_p1)
}
  0x46   : > { %5094 = dma.hbm_to_vmem [thread:$0]  (!%p5695_p2), %s7053_s3, 4096, %s5699_s21, [#allocation7], %s5576_s20, %s5576_s20, %s5577_s22  }
  0x47   : > { %p4925_p4 = scmp.ge.s32.totalorder %s5572_s29, 2 }
  0x48   : > { %p7072_p3 = scmp.ne.s32.totalorder (!%p4925_p4), %s7066_s12, 0 }
  0x49   : > { %255 = sbr.rel (%p4925_p4) target bundleno = 115 (0x73), region = 40 }
  0x50   : > { %258 = sbr.rel (!%p7072_p3) target bundleno = 115 (0x73), region = 44  ;;  %s259_s23 = sand.u32 (%p7072_p3), 1, %s5568_s28  }
  0x51   : > { %s4927_s24 = sshll.u32 (%p7072_p3), %s5572_s29, 5  ;;  %s4926_s25 = sshll.u32 (%p7072_p3), %s259_s23, 8 }
  0x52   : > { %s265_s30 = ssub.s32 (%p7072_p3), 63, %s4927_s24  ;;  %s5758_s20 = scalar_lea.sflag (%p7072_p3), [#allocation4], %s259_s23 }
  0x53   : > { %p266_p5 = scmp.lt.s32.totalorder (%p7072_p3), %s265_s30, 32  ;;  %s263_s22 = scalar_lea.vmem (%p7072_p3), [#allocation3], %s4926_s25 }
  0x57   : > { %s7085_s30 = smov (!%p266_p5, %s265_s30), 32 }
  0x58   : > { %s5755_s19 = sshll.u32 %s7085_s30, 7 }
  0x59   : > { %s271_s21 = ssub.s32 4096, %s5755_s19 }
  0x5a   : > { %272 = vsyncadd %s5758_s20, %s271_s21  ;;  %p4930_p2 = scmp.ne.s32.totalorder %s5755_s19, 0  ;;  %s5075_s12 = sshll.u32 %s5572_s29, 12 }
  0x5b   : > { %s5766_s17 = scalar_lea.hbm %s7050_s0, %s5075_s12  ;;  %s278_s18 = sshll.u32 %s263_s22, 4  ;;  %s5768_s18 = int_to_ptr.vmem [resolvable:$true] %s278_s18 }
  0x5c   : > { %s5474_s8 = scalar_lea.hbm %s5766_s17, %s5755_s19  ;;  %s5478_s24 = scalar_lea.hbm %s7050_s0, 8064 }
  0x5d   : > { %p5475_p6 = scmp.ne.s32.totalorder %s5766_s17, %s5474_s8  ;;  %p5479_p13 = scmp.lt.u32.totalorder %s5766_s17, %s7050_s0 }
  0x5e   : > { %p5480_p0 = scmp.lt.u32.totalorder %s5478_s24, %s5474_s8  ;;  %p5482_p8 = scmp.lt.u32.totalorder %s5474_s8, %s5766_s17 }
  0x5f   : > { %p5476_p11 = pnand %p5475_p6, %p4930_p2 }
  0x60   : > { %p5481_p7 = por %p5480_p0, %p5479_p13 }
  0x61   : > { %p5477_p12 = pneg %p5476_p11 }
  0x62   : > { %p5483_p9 = por %p5482_p8, %p5481_p7 }
  0x64   : > { %p5484_p10 = pnand %p5483_p9, %p5477_p12 }
  0x66   : > { %5487 = shalt.err (!%p5484_p10)
}
  0x67   : > { %s5488_s21 = scalar_lea.vmem %s5768_s18, %s5755_s19  ;;  %s5578_s22 = smov [#allocation3]  }
  0x68   : > { %p5489_p1 = scmp.ne.s32.totalorder %s5768_s18, %s5488_s21  ;;  %s5492_s12 = sshll.u32 %s5578_s22, 4  ;;  %s5493_s12 = int_to_ptr.vmem [resolvable:$false] %s5492_s12 }
  0x69   : > { %s5494_s9 = scalar_lea.vmem %s5493_s12, 8192  ;;  %p5495_p6 = scmp.lt.s32.totalorder %s5768_s18, %s5493_s12 }
  0x6a   : > { %p5490_p3 = pnand %p5489_p1, %p4930_p2  ;;  %p5496_p11 = scmp.lt.s32.totalorder %s5494_s9, %s5488_s21 }
  0x6c   : > { %p5491_p5 = pneg %p5490_p3  ;;  %p5497_p13 = por %p5496_p11, %p5495_p6 }
  0x6e   : > { %p5498_p0 = pnand %p5497_p13, %p5491_p5 }
  0x70   : > { %5501 = shalt.err (!%p5498_p0)
}
  0x71   : > { %s5579_s10 = smov 128   ;;  %s5580_s8 = smov 8  }
  0x72   : > { %284 = dma.hbm_to_vmem [thread:$0]  (%p4930_p2), %s5766_s17, %s5755_s19, %s5768_s18, %s5758_s20, %s5579_s10, %s5579_s10, %s5580_s8  }
  0x73 PF: > { %p7073_p12 = scmp.ne.s32.totalorder %s7070_s16, 0 }
  0x74   : > { %s5798_s11 = sand.u32 (!%p7073_p12), 1, %s5564_s27   ;;  %p7074_p7 = scmp.ne.s32.totalorder (!%p7073_p12), %s7067_s13, 0 }
  0x75   : > { %290 = sbr.rel (%p7073_p12) target bundleno = 1165 (0x48d), region = 48  ;;  %s4936_s23 = sshll.u32 (!%p7073_p12), %s5798_s11, 8 }
  0x76   : > { %s293_s24 = scalar_lea.sflag (!%p7073_p12), [#allocation4], %s5798_s11  ;;  %s5802_s25 = scalar_lea.vmem (!%p7073_p12), [#allocation3], %s4936_s23 }
  0x7c   : > { %5547 = dma.done.wait (%p7074_p7), %s293_s24, 4096  }
  0x7d   : > { %5549 = vsyncadd (%p7074_p7), %s293_s24, 4294963200  ;;  %p7075_p2 = scmp.eq.s32.totalorder %s5648_s6, 0 }
  0x7f   : > { %5551 = dma.done.wait (%p7075_p2), [#allocation7], 8192   ;;  %p7076_p8 = pmov %p7075_p2 }
  0x80   : > { %v5146_v0 = vld [vmem:[#allocation6 + $0x4] ss:$8 sps:$4 sm:$0xff]   ;;  %v5148_v1 = vld [vmem:[#allocation6] ss:$8 sps:$4 sm:$0xff]   ;;  %v5149_v2 = vld [vmem:[#allocation6 + $0x14] ss:$8 sps:$4 sm:$0xff]  }
  0x81   : > { %5553 = vsyncadd (%p7076_p8), [#allocation7], 4294959104  ;;  %738 = vmatprep.subr.bf16.mxu0 %v5146_v0  ;;  %v5151_v3 = vld [vmem:[#allocation6 + $0x10] ss:$8 sps:$4 sm:$0xff]   ;;  %v5152_v4 = vld [vmem:[#allocation6 + $0x24] ss:$8 sps:$4 sm:$0xff]  }
  0x82   : > { %739 = vmatpush1.bf16.msra.mxu0 %v5148_v1  ;;  %v5154_v5 = vld [vmem:[#allocation6 + $0x20] ss:$8 sps:$4 sm:$0xff]   ;;  %v5155_v6 = vld [vmem:[#allocation6 + $0x34] ss:$8 sps:$4 sm:$0xff]   ;;  %v5157_v7 = vld [vmem:[#allocation6 + $0x30] ss:$8 sps:$4 sm:$0xff]  }
  0x83   : > { %740 = vmatprep.subr.bf16.mxu0 %v5149_v2  ;;  %v5158_v8 = vld [vmem:[#allocation6 + $0x44] ss:$8 sps:$4 sm:$0xff]   ;;  %v5160_v9 = vld [vmem:[#allocation6 + $0x40] ss:$8 sps:$4 sm:$0xff]   ;;  %v5161_v10 = vld [vmem:[#allocation6 + $0x54] ss:$8 sps:$4 sm:$0xff]  }
  0x84   : > { %v5163_v11 = vld [vmem:[#allocation6 + $0x50] ss:$8 sps:$4 sm:$0xff]   ;;  %v5164_v12 = vld [vmem:[#allocation6 + $0x64] ss:$8 sps:$4 sm:$0xff]   ;;  %v5166_v14 = vld [vmem:[#allocation6 + $0x60] ss:$8 sps:$4 sm:$0xff]  }
  0x85   : > { %v5196_v13 = vld [vmem:[%s5802_s25 + $0x4] ss:$8 sps:$4 sm:$0xff]   ;;  %v5167_v15 = vld [vmem:[#allocation6 + $0x74] ss:$8 sps:$4 sm:$0xff]   ;;  %v5169_v16 = vld [vmem:[#allocation6 + $0x70] ss:$8 sps:$4 sm:$0xff]  }
  0x86   : > { %741 = vmatpush1.bf16.msra.mxu0 %v5151_v3  ;;  %770 = vmatprep.mubr.bf16.mxu0 %v5196_v13  ;;  %v5170_v17 = vld [vmem:[#allocation6 + $0x84] ss:$8 sps:$4 sm:$0xff]   ;;  %v5172_v18 = vld [vmem:[#allocation6 + $0x80] ss:$8 sps:$4 sm:$0xff]   ;;  %v5173_v19 = vld [vmem:[#allocation6 + $0x94] ss:$8 sps:$4 sm:$0xff]  }
  0x87   : > { %742 = vmatprep.subr.bf16.mxu0 %v5152_v4  ;;  %v5175_v20 = vld [vmem:[#allocation6 + $0x90] ss:$8 sps:$4 sm:$0xff]   ;;  %v5176_v21 = vld [vmem:[#allocation6 + $0xa4] ss:$8 sps:$4 sm:$0xff]   ;;  %v5178_v22 = vld [vmem:[#allocation6 + $0xa0] ss:$8 sps:$4 sm:$0xff]  }
  0x88   : > { %v5179_v23 = vld [vmem:[#allocation6 + $0xb4] ss:$8 sps:$4 sm:$0xff]   ;;  %v5181_v24 = vld [vmem:[#allocation6 + $0xb0] ss:$8 sps:$4 sm:$0xff]   ;;  %v5182_v25 = vld [vmem:[#allocation6 + $0xc4] ss:$8 sps:$4 sm:$0xff]  }
  0x89   : > { %v5184_v26 = vld [vmem:[#allocation6 + $0xc0] ss:$8 sps:$4 sm:$0xff]   ;;  %v5185_v27 = vld [vmem:[#allocation6 + $0xd4] ss:$8 sps:$4 sm:$0xff]   ;;  %v5187_v28 = vld [vmem:[#allocation6 + $0xd0] ss:$8 sps:$4 sm:$0xff]  }
  0x8a   : > { %743 = vmatpush1.bf16.msra.mxu0 %v5154_v5  ;;  %v5188_v29 = vld [vmem:[#allocation6 + $0xe4] ss:$8 sps:$4 sm:$0xff]   ;;  %v5190_v30 = vld [vmem:[#allocation6 + $0xe0] ss:$8 sps:$4 sm:$0xff]   ;;  %v5191_v31 = vld [vmem:[#allocation6 + $0xf4] ss:$8 sps:$4 sm:$0xff]  }
  0x8b   : > { %744 = vmatprep.subr.bf16.mxu0 %v5155_v6  ;;  %v5242_v32 = vld [vmem:[#allocation8 + $0x4] ss:$8 sps:$4 sm:$0xff]   ;;  %v5244_v33 = vld [vmem:[#allocation8] ss:$8 sps:$4 sm:$0xff]   ;;  %v5245_v34 = vld [vmem:[#allocation8 + $0x14] ss:$8 sps:$4 sm:$0xff]  }
  0x8c   : > { %v5193_v35 = vld [vmem:[#allocation6 + $0xf0] ss:$8 sps:$4 sm:$0xff]   ;;  %1231 = vmatprep.subr.bf16.mxu1 %v5242_v32  ;;  %v5194_v37 = vld [vmem:[%s5802_s25] ss:$8 sps:$4 sm:$0xff]   ;;  %v5248_v38 = vld [vmem:[#allocation8 + $0x24] ss:$8 sps:$4 sm:$0xff]   ;;  %v408_v32 = vlaneseq }
  0x8d   : > { %1232 = vmatpush1.bf16.msra.mxu1 %v5244_v33  ;;  %v5247_v36 = vld [vmem:[#allocation8 + $0x10] ss:$8 sps:$4 sm:$0xff]   ;;  %v5197_v39 = vld [vmem:[%s5802_s25 + $0x14] ss:$8 sps:$4 sm:$0xff]   ;;  %v5250_v40 = vld [vmem:[#allocation8 + $0x20] ss:$8 sps:$4 sm:$0xff]  }
  0x8e   : > { %745 = vmatpush1.bf16.msra.mxu0 %v5157_v7  ;;  %1233 = vmatprep.subr.bf16.mxu1 %v5245_v34  ;;  %v5251_v41 = vld [vmem:[#allocation8 + $0x34] ss:$8 sps:$4 sm:$0xff]   ;;  %v5253_v42 = vld [vmem:[#allocation8 + $0x30] ss:$8 sps:$4 sm:$0xff]   ;;  %v5254_v44 = vld [vmem:[#allocation8 + $0x44] ss:$8 sps:$4 sm:$0xff]  }
  0x8f   : > { %746 = vmatprep.subr.bf16.mxu0 %v5158_v8  ;;  %v5199_v43 = vld [vmem:[%s5802_s25 + $0x10] ss:$8 sps:$4 sm:$0xff]   ;;  %v5200_v45 = vld [vmem:[%s5802_s25 + $0x24] ss:$8 sps:$4 sm:$0xff]   ;;  %v5256_v46 = vld [vmem:[#allocation8 + $0x40] ss:$8 sps:$4 sm:$0xff]  }
  0x90   : > { %v5257_v47 = vld [vmem:[#allocation8 + $0x54] ss:$8 sps:$4 sm:$0xff]   ;;  %v5259_v48 = vld [vmem:[#allocation8 + $0x50] ss:$8 sps:$4 sm:$0xff]   ;;  %v5202_v49 = vld [vmem:[%s5802_s25 + $0x20] ss:$8 sps:$4 sm:$0xff]  }
  0x91   : > { %1234 = vmatpush1.bf16.msra.mxu1 %v5247_v36  ;;  %v5260_v50 = vld [vmem:[#allocation8 + $0x64] ss:$8 sps:$4 sm:$0xff]   ;;  %v5203_v51 = vld [vmem:[%s5802_s25 + $0x34] ss:$8 sps:$4 sm:$0xff]   ;;  %v5262_v52 = vld [vmem:[#allocation8 + $0x60] ss:$8 sps:$4 sm:$0xff]  }
  0x92   : > { %747 = vmatpush1.bf16.msra.mxu0 %v5160_v9  ;;  %1235 = vmatprep.subr.bf16.mxu1 %v5248_v38  ;;  %v5263_v53 = vld [vmem:[#allocation8 + $0x74] ss:$8 sps:$4 sm:$0xff]   ;;  %v5265_v54 = vld [vmem:[#allocation8 + $0x70] ss:$8 sps:$4 sm:$0xff]   ;;  %v5266_v56 = vld [vmem:[#allocation8 + $0x84] ss:$8 sps:$4 sm:$0xff]  }
  0x93   : > { %748 = vmatprep.subr.bf16.mxu0 %v5161_v10  ;;  %v5205_v55 = vld [vmem:[%s5802_s25 + $0x30] ss:$8 sps:$4 sm:$0xff]   ;;  %v5206_v57 = vld [vmem:[%s5802_s25 + $0x44] ss:$8 sps:$4 sm:$0xff]   ;;  %v5268_v58 = vld [vmem:[#allocation8 + $0x80] ss:$8 sps:$4 sm:$0xff]  }
  0x94   : > { %v5269_v59 = vld [vmem:[#allocation8 + $0x94] ss:$8 sps:$4 sm:$0xff]   ;;  %v5271_v60 = vld [vmem:[#allocation8 + $0x90] ss:$8 sps:$4 sm:$0xff]   ;;  %v5208_v61 = vld [vmem:[%s5802_s25 + $0x40] ss:$8 sps:$4 sm:$0xff]  }
  0x95   : > { %1236 = vmatpush1.bf16.msra.mxu1 %v5250_v40  ;;  %v5272_v62 = vld [vmem:[#allocation8 + $0xa4] ss:$8 sps:$4 sm:$0xff]   ;;  %v5209_v63 = vld [vmem:[%s5802_s25 + $0x54] ss:$8 sps:$4 sm:$0xff]   ;;  %v5274_v0 = vld [vmem:[#allocation8 + $0xa0] ss:$8 sps:$4 sm:$0xff]  }
  0x96   : > { %749 = vmatpush1.bf16.msra.mxu0 %v5163_v11  ;;  %1237 = vmatprep.subr.bf16.mxu1 %v5251_v41  ;;  %v5275_v1 = vld [vmem:[#allocation8 + $0xb4] ss:$8 sps:$4 sm:$0xff]   ;;  %v5277_v2 = vld [vmem:[#allocation8 + $0xb0] ss:$8 sps:$4 sm:$0xff]   ;;  %v5278_v4 = vld [vmem:[#allocation8 + $0xc4] ss:$8 sps:$4 sm:$0xff]  }
  0x97   : > { %750 = vmatprep.subr.bf16.mxu0 %v5164_v12  ;;  %v5211_v3 = vld [vmem:[%s5802_s25 + $0x50] ss:$8 sps:$4 sm:$0xff]   ;;  %v5212_v5 = vld [vmem:[%s5802_s25 + $0x64] ss:$8 sps:$4 sm:$0xff]   ;;  %v5280_v6 = vld [vmem:[#allocation8 + $0xc0] ss:$8 sps:$4 sm:$0xff]  }
  0x98   : > { %v5281_v7 = vld [vmem:[#allocation8 + $0xd4] ss:$8 sps:$4 sm:$0xff]   ;;  %v5214_v8 = vld [vmem:[%s5802_s25 + $0x60] ss:$8 sps:$4 sm:$0xff]   ;;  %v5217_v10 = vld [vmem:[%s5802_s25 + $0x70] ss:$8 sps:$4 sm:$0xff]  }
  0x99   : > { %1238 = vmatpush1.bf16.msra.mxu1 %v5253_v42  ;;  %v5215_v9 = vld [vmem:[%s5802_s25 + $0x74] ss:$8 sps:$4 sm:$0xff]   ;;  %v5218_v11 = vld [vmem:[%s5802_s25 + $0x84] ss:$8 sps:$4 sm:$0xff]   ;;  %v5220_v12 = vld [vmem:[%s5802_s25 + $0x80] ss:$8 sps:$4 sm:$0xff]  }
  0x9a   : > { %751 = vmatpush1.bf16.msra.mxu0 %v5166_v14  ;;  %1239 = vmatprep.subr.bf16.mxu1 %v5254_v44  ;;  %v5221_v13 = vld [vmem:[%s5802_s25 + $0x94] ss:$8 sps:$4 sm:$0xff]   ;;  %v5223_v14 = vld [vmem:[%s5802_s25 + $0x90] ss:$8 sps:$4 sm:$0xff]   ;;  %v5845_v33 = vshrl.u32 %v408_v32, 7  ;;  %s1660_s30 = sld [smem:[#allocation2]] }
  0x9b   : > { %752 = vmatprep.subr.bf16.mxu0 %v5167_v15  ;;  %v5224_v15 = vld [vmem:[%s5802_s25 + $0xa4] ss:$8 sps:$4 sm:$0xff]   ;;  %vm4617_vm0 = vcmask 130112   ;;  %vm4624_vm1 = vcmask 195712   ;;  %vm4631_vm2 = vcmask 261312   ;;  %vm4638_vm3 = vcmask 326912  }
  0x9c   : > { %v5848_v34 = vsub.s32 0, %v5845_v33  ;;  %v5854_v36 = vsub.s32 1, %v5845_v33  ;;  %vm4645_vm4 = vcmask 392512   ;;  %vm4652_vm5 = vcmask 458112   ;;  %s4939_s21 = sshll.u32 %s5798_s11, 1  ;;  %s5076_s22 = sshll.u32 %s5648_s6, 5 }
  0x9d   : > { %1240 = vmatpush1.bf16.msra.mxu1 %v5256_v46  ;;  %vm4659_vm6 = vcmask 523712   ;;  %vm4666_vm7 = vcmask 589312   ;;  %vm4673_vm8 = vcmask 654912   ;;  %vm4680_vm9 = vcmask 720512   ;;  %s334_s12 = scalar_lea.vmem [#allocation9], %s4939_s21  ;;  %s7006_s23 = scalar_lea.hbm %s7057_s7, %s5076_s22 }
  0x9e   : > { %753 = vmatpush1.bf16.msra.mxu0 %v5169_v16  ;;  %1241 = vmatprep.subr.bf16.mxu1 %v5257_v47  ;;  %v5226_v16 = vld [vmem:[%s5802_s25 + $0xa0] ss:$8 sps:$4 sm:$0xff]   ;;  %vm4687_vm10 = vcmask 786112   ;;  %vm4694_vm11 = vcmask 851712   ;;  %vm4701_vm12 = vcmask 917312   ;;  %vm4708_vm13 = vcmask 982912  }
  0x9f   : > { %754 = vmatprep.subr.bf16.mxu0 %v5170_v17  ;;  %v5227_v17 = vld [vmem:[%s5802_s25 + $0xb4] ss:$8 sps:$4 sm:$0xff]   ;;  %vm4715_vm14 = vcmask 1048512   ;;  %s4832_s9 = sshll.u32 %s334_s12, 4  ;;  %vm4814_vm15 = vcmp.lt.s32.totalorder %v408_v32, 256  ;;  %s4818_s6 = scalar_lea.sflag [#allocation5], %s5798_s11  ;;  %s7008_s9 = int_to_ptr.vmem [resolvable:$true] %s4832_s9 }
  0xa0   : > { %s5502_s24 = scalar_lea.vmem %s7008_s9, 32  ;;  %p7077_p10 = scmp.ne.s32.totalorder %s7068_s14, 0 }
  0xa1   : > { %1242 = vmatpush1.bf16.msra.mxu1 %v5259_v48  ;;  %p5503_p9 = scmp.ne.s32.totalorder %s7008_s9, %s5502_s24 }
  0xa2   : > { %755 = vmatpush1.bf16.msra.mxu0 %v5172_v18  ;;  %1243 = vmatprep.subr.bf16.mxu1 %v5260_v50  ;;  %v5283_v18 = vld [vmem:[#allocation8 + $0xd0] ss:$8 sps:$4 sm:$0xff]  }
  0xa3   : > { %756 = vmatprep.subr.bf16.mxu0 %v5173_v19  ;;  %v5229_v19 = vld [vmem:[%s5802_s25 + $0xb0] ss:$8 sps:$4 sm:$0xff]   ;;  %p5504_p1 = pnand %p5503_p9, %p7077_p10 }
  0xa5   : > { %1244 = vmatpush1.bf16.msra.mxu1 %v5262_v52  ;;  %p5505_p3 = pneg %p5504_p1 }
  0xa6   : > { %757 = vmatpush1.bf16.msra.mxu0 %v5175_v20  ;;  %1245 = vmatprep.subr.bf16.mxu1 %v5263_v53  ;;  %v5284_v20 = vld [vmem:[#allocation8 + $0xe4] ss:$8 sps:$4 sm:$0xff]  }
  0xa7   : > { %758 = vmatprep.subr.bf16.mxu0 %v5176_v21  ;;  %v5230_v21 = vld [vmem:[%s5802_s25 + $0xc4] ss:$8 sps:$4 sm:$0xff]  }
  0xa9   : > { %1246 = vmatpush1.bf16.msra.mxu1 %v5265_v54 }
  0xaa   : > { %759 = vmatpush1.bf16.msra.mxu0 %v5178_v22  ;;  %1247 = vmatprep.subr.bf16.mxu1 %v5266_v56  ;;  %v5286_v22 = vld [vmem:[#allocation8 + $0xe0] ss:$8 sps:$4 sm:$0xff]  }
  0xab   : > { %760 = vmatprep.subr.bf16.mxu0 %v5179_v23  ;;  %v5287_v23 = vld [vmem:[#allocation8 + $0xf4] ss:$8 sps:$4 sm:$0xff]  }
  0xad   : > { %1248 = vmatpush1.bf16.msra.mxu1 %v5268_v58 }
  0xae   : > { %761 = vmatpush1.bf16.msra.mxu0 %v5181_v24  ;;  %1249 = vmatprep.subr.bf16.mxu1 %v5269_v59  ;;  %v5289_v24 = vld [vmem:[#allocation8 + $0xf0] ss:$8 sps:$4 sm:$0xff]  }
  0xaf   : > { %762 = vmatprep.subr.bf16.mxu0 %v5182_v25  ;;  %v5232_v25 = vld [vmem:[%s5802_s25 + $0xc0] ss:$8 sps:$4 sm:$0xff]  }
  0xb1   : > { %1250 = vmatpush1.bf16.msra.mxu1 %v5271_v60 }
  0xb2   : > { %763 = vmatpush1.bf16.msra.mxu0 %v5184_v26  ;;  %1251 = vmatprep.subr.bf16.mxu1 %v5272_v62  ;;  %v5233_v26 = vld [vmem:[%s5802_s25 + $0xd4] ss:$8 sps:$4 sm:$0xff]  }
  0xb3   : > { %764 = vmatprep.subr.bf16.mxu0 %v5185_v27  ;;  %v5235_v27 = vld [vmem:[%s5802_s25 + $0xd0] ss:$8 sps:$4 sm:$0xff]  }
  0xb5   : > { %1252 = vmatpush1.bf16.msra.mxu1 %v5274_v0 }
  0xb6   : > { %765 = vmatpush1.bf16.msra.mxu0 %v5187_v28  ;;  %1253 = vmatprep.subr.bf16.mxu1 %v5275_v1  ;;  %v5236_v28 = vld [vmem:[%s5802_s25 + $0xe4] ss:$8 sps:$4 sm:$0xff]  }
  0xb7   : > { %766 = vmatprep.subr.bf16.mxu0 %v5188_v29  ;;  %v5238_v29 = vld [vmem:[%s5802_s25 + $0xe0] ss:$8 sps:$4 sm:$0xff]  }
  0xb9   : > { %1254 = vmatpush1.bf16.msra.mxu1 %v5277_v2 }
  0xba   : > { %767 = vmatpush1.bf16.msra.mxu0 %v5190_v30  ;;  %1255 = vmatprep.subr.bf16.mxu1 %v5278_v4  ;;  %v5239_v30 = vld [vmem:[%s5802_s25 + $0xf4] ss:$8 sps:$4 sm:$0xff]  }
  0xbb   : > { %768 = vmatprep.subr.bf16.mxu0 %v5191_v31  ;;  %v5241_v31 = vld [vmem:[%s5802_s25 + $0xf0] ss:$8 sps:$4 sm:$0xff]   ;;  %s5583_s25 = smov [#allocation9]  }
  0xbc   : > { %s5506_s13 = sshll.u32 %s5583_s25, 4  ;;  %s5507_s13 = int_to_ptr.vmem [resolvable:$false] %s5506_s13 }
  0xbd   : > { %1256 = vmatpush1.bf16.msra.mxu1 %v5280_v6  ;;  %s5508_s16 = scalar_lea.vmem %s5507_s13, 64  ;;  %p5509_p5 = scmp.lt.s32.totalorder %s7008_s9, %s5507_s13 }
  0xbe   : > { %769 = vmatpush1.bf16.msra.mxu0 %v5193_v35  ;;  %1257 = vmatprep.subr.bf16.mxu1 %v5281_v7  ;;  %v406_v35 = vld [vmem:[%s7052_s2] sm:$0x3]  ;;  %p5510_p6 = scmp.lt.s32.totalorder %s5508_s16, %s5502_s24 }
  0xbf   : > { %v5860_v38 = vrot.slane %v406_v35, %v5854_v36 }
  0xc0   : > { %p5511_p11 = por %p5510_p6, %p5509_p5 }
  0xc1   : > { %771 = vmatmul.mubr.bf16.vlgmr.msra.gmra.mrb[0].mxu0 %v5194_v37  ;;  %1258 = vmatpush1.bf16.msra.mxu1 %v5283_v18  ;;  %v5857_v37 = vrot.slane %v406_v35, %v5848_v34 }
  0xc2   : > { %780 = vmatprep.mubr.bf16.mxu0 %v5197_v39  ;;  %1259 = vmatprep.subr.bf16.mxu1 %v5284_v20  ;;  %p5512_p13 = pnand %p5511_p11, %p5505_p3 }
  0xc5   : > { %1260 = vmatpush1.bf16.msra.mxu1 %v5286_v22 }
  0xc6   : > { %1261 = vmatprep.subr.bf16.mxu1 %v5287_v23 }
  0xc9   : > { %781 = vmatmul.mubr.bf16.gmra.mrb[4].mxu0 %v5199_v43  ;;  %1262 = vmatpush1.bf16.msra.mxu1 %v5289_v24 }
  0xca   : > { %790 = vmatprep.mubr.bf16.mxu0 %v5200_v45 }
  0xd1   : > { %791 = vmatmul.mubr.bf16.gmra.mrb[8].mxu0 %v5202_v49 }
  0xd2   : > { %800 = vmatprep.mubr.bf16.mxu0 %v5203_v51 }
  0xd9   : > { %801 = vmatmul.mubr.bf16.gmra.mrb[12].mxu0 %v5205_v55 }
  0xda   : > { %810 = vmatprep.mubr.bf16.mxu0 %v5206_v57 }
  0xe1   : > { %811 = vmatmul.mubr.bf16.gmra.mrb[16].mxu0 %v5208_v61 }
  0xe2   : > { %820 = vmatprep.mubr.bf16.mxu0 %v5209_v63 }
  0xe9   : > { %821 = vmatmul.mubr.bf16.gmra.mrb[20].mxu0 %v5211_v3 }
  0xea   : > { %830 = vmatprep.mubr.bf16.mxu0 %v5212_v5 }
  0xf1   : > { %831 = vmatmul.mubr.bf16.gmra.mrb[24].mxu0 %v5214_v8 }
  0xf2   : > { %840 = vmatprep.mubr.bf16.mxu0 %v5215_v9 }
  0xf9   : > { %841 = vmatmul.mubr.bf16.gmra.mrb[28].mxu0 %v5217_v10 }
  0xfa   : > { %850 = vmatprep.mubr.bf16.mxu0 %v5218_v11 }
 0x101   : > { %851 = vmatmul.mubr.bf16.gmra.mrb[32].mxu0 %v5220_v12 }
 0x102   : > { %860 = vmatprep.mubr.bf16.mxu0 %v5221_v13 }
 0x109   : > { %861 = vmatmul.mubr.bf16.gmra.mrb[36].mxu0 %v5223_v14 }
 0x10a   : > { %870 = vmatprep.mubr.bf16.mxu0 %v5224_v15 }
 0x111   : > { %871 = vmatmul.mubr.bf16.gmra.mrb[40].mxu0 %v5226_v16 }
 0x112   : > { %880 = vmatprep.mubr.bf16.mxu0 %v5227_v17 }
 0x119   : > { %881 = vmatmul.mubr.bf16.gmra.mrb[44].mxu0 %v5229_v19 }
 0x11a   : > { %890 = vmatprep.mubr.bf16.mxu0 %v5230_v21 }
 0x121   : > { %891 = vmatmul.mubr.bf16.gmra.mrb[48].mxu0 %v5232_v25 }
 0x122   : > { %900 = vmatprep.mubr.bf16.mxu0 %v5233_v26 }
 0x129   : > { %901 = vmatmul.mubr.bf16.gmra.mrb[52].mxu0 %v5235_v27 }
 0x12a   : > { %910 = vmatprep.mubr.bf16.mxu0 %v5236_v28 }
 0x131   : > { %911 = vmatmul.mubr.bf16.gmra.mrb[56].mxu0 %v5238_v29 }
 0x132   : > { %920 = vmatprep.mubr.bf16.mxu0 %v5239_v30 }
 0x139   : > { %921 = vmatmul.mubr.bf16.gmra.mrb[60].mxu0 %v5241_v31 }
 0x194   : > { %v772_v39 = vpop.f32.mrb[0].mxu0 }
 0x195   : > { %v773_v40 = vadd.f32 %v772_v39, %v5857_v37  ;;  %v774_v41 = vpop.f32.mrb[1].mxu0 }
 0x196   : > { %v775_v42 = vadd.f32 %v774_v41, %v5860_v38  ;;  %v776_v43 = vpop.f32.mrb[2].mxu0 }
 0x197   : > { %v777_v44 = vadd.f32 %v776_v43, %v5857_v37  ;;  %v778_v45 = vpop.f32.mrb[3].mxu0  ;;  %v931_v47 = vmax.f32 %v773_v40, 0.0 }
 0x198   : > { %v779_v46 = vadd.f32 %v778_v45, %v5860_v38  ;;  %v932_v49 = vmax.f32 %v775_v42, 0.0 }
 0x199   : > { %v933_v48 = vmax.f32 %v777_v44, 0.0 }
 0x19a   : > { %v934_v50 = vmax.f32 %v779_v46, 0.0 }
 0x19b   : > { %v995_v51 = vpack.c.bf16 %v933_v48, %v931_v47 }
 0x19c   : > { %v782_v52 = vpop.f32.mrb[4].mxu0  ;;  %v996_v53 = vpack.c.bf16 %v934_v50, %v932_v49 }
 0x19d   : > { %v783_v54 = vadd.f32 %v782_v52, %v5857_v37  ;;  %v784_v55 = vpop.f32.mrb[5].mxu0 }
 0x19e   : > { %v785_v56 = vadd.f32 %v784_v55, %v5860_v38  ;;  %v786_v57 = vpop.f32.mrb[6].mxu0  ;;  %1263 = vmatprep.mubr.bf16.mxu1 %v996_v53 }
 0x19f   : > { %v787_v58 = vadd.f32 %v786_v57, %v5857_v37  ;;  %v788_v59 = vpop.f32.mrb[7].mxu0  ;;  %1264 = vmatmul.mubr.bf16.vlgmr.msra.gmra.mrb[0].mxu1 %v995_v51  ;;  %v935_v61 = vmax.f32 %v783_v54, 0.0 }
 0x1a0   : > { %v789_v60 = vadd.f32 %v788_v59, %v5860_v38  ;;  %v936_v63 = vmax.f32 %v785_v56, 0.0 }
 0x1a1   : > { %v937_v62 = vmax.f32 %v787_v58, 0.0 }
 0x1a2   : > { %v938_v0 = vmax.f32 %v789_v60, 0.0 }
 0x1a3   : > { %v997_v1 = vpack.c.bf16 %v937_v62, %v935_v61 }
 0x1a4   : > { %v998_v2 = vpack.c.bf16 %v938_v0, %v936_v63  ;;  %v792_v3 = vpop.f32.mrb[8].mxu0 }
 0x1a5   : > { %v793_v4 = vadd.f32 %v792_v3, %v5857_v37  ;;  %v794_v5 = vpop.f32.mrb[9].mxu0 }
 0x1a6   : > { %v795_v6 = vadd.f32 %v794_v5, %v5860_v38  ;;  %v796_v7 = vpop.f32.mrb[10].mxu0  ;;  %1273 = vmatprep.mubr.bf16.mxu1 %v998_v2 }
 0x1a7   : > { %v797_v8 = vadd.f32 %v796_v7, %v5857_v37  ;;  %v798_v9 = vpop.f32.mrb[11].mxu0  ;;  %1274 = vmatmul.mubr.bf16.gmra.mrb[4].mxu1 %v997_v1  ;;  %v939_v11 = vmax.f32 %v793_v4, 0.0 }
 0x1a8   : > { %v799_v10 = vadd.f32 %v798_v9, %v5860_v38  ;;  %v940_v13 = vmax.f32 %v795_v6, 0.0 }
 0x1a9   : > { %v941_v12 = vmax.f32 %v797_v8, 0.0 }
 0x1aa   : > { %v942_v14 = vmax.f32 %v799_v10, 0.0 }
 0x1ab   : > { %v999_v15 = vpack.c.bf16 %v941_v12, %v939_v11 }
 0x1ac   : > { %v1000_v16 = vpack.c.bf16 %v942_v14, %v940_v13  ;;  %v802_v17 = vpop.f32.mrb[12].mxu0 }
 0x1ad   : > { %v803_v18 = vadd.f32 %v802_v17, %v5857_v37  ;;  %v804_v19 = vpop.f32.mrb[13].mxu0 }
 0x1ae   : > { %v805_v20 = vadd.f32 %v804_v19, %v5860_v38  ;;  %v806_v21 = vpop.f32.mrb[14].mxu0  ;;  %1283 = vmatprep.mubr.bf16.mxu1 %v1000_v16 }
 0x1af   : > { %v807_v22 = vadd.f32 %v806_v21, %v5857_v37  ;;  %v808_v23 = vpop.f32.mrb[15].mxu0  ;;  %1284 = vmatmul.mubr.bf16.gmra.mrb[8].mxu1 %v999_v15  ;;  %v943_v25 = vmax.f32 %v803_v18, 0.0 }
 0x1b0   : > { %v809_v24 = vadd.f32 %v808_v23, %v5860_v38  ;;  %v944_v27 = vmax.f32 %v805_v20, 0.0 }
 0x1b1   : > { %v945_v26 = vmax.f32 %v807_v22, 0.0 }
 0x1b2   : > { %v946_v28 = vmax.f32 %v809_v24, 0.0 }
 0x1b3   : > { %v1001_v29 = vpack.c.bf16 %v945_v26, %v943_v25 }
 0x1b4   : > { %v1002_v30 = vpack.c.bf16 %v946_v28, %v944_v27  ;;  %v812_v31 = vpop.f32.mrb[16].mxu0 }
 0x1b5   : > { %v813_v35 = vadd.f32 %v812_v31, %v5857_v37  ;;  %v814_v39 = vpop.f32.mrb[17].mxu0 }
 0x1b6   : > { %v815_v40 = vadd.f32 %v814_v39, %v5860_v38  ;;  %v816_v41 = vpop.f32.mrb[18].mxu0  ;;  %1293 = vmatprep.mubr.bf16.mxu1 %v1002_v30 }
 0x1b7   : > { %v817_v42 = vadd.f32 %v816_v41, %v5857_v37  ;;  %v818_v43 = vpop.f32.mrb[19].mxu0  ;;  %1294 = vmatmul.mubr.bf16.gmra.mrb[12].mxu1 %v1001_v29  ;;  %v947_v45 = vmax.f32 %v813_v35, 0.0 }
 0x1b8   : > { %v819_v44 = vadd.f32 %v818_v43, %v5860_v38  ;;  %v948_v47 = vmax.f32 %v815_v40, 0.0 }
 0x1b9   : > { %v949_v46 = vmax.f32 %v817_v42, 0.0 }
 0x1ba   : > { %v950_v48 = vmax.f32 %v819_v44, 0.0 }
 0x1bb   : > { %v1003_v49 = vpack.c.bf16 %v949_v46, %v947_v45 }
 0x1bc   : > { %v1004_v50 = vpack.c.bf16 %v950_v48, %v948_v47  ;;  %v822_v51 = vpop.f32.mrb[20].mxu0 }
 0x1bd   : > { %v823_v52 = vadd.f32 %v822_v51, %v5857_v37  ;;  %v824_v53 = vpop.f32.mrb[21].mxu0 }
 0x1be   : > { %v825_v54 = vadd.f32 %v824_v53, %v5860_v38  ;;  %v826_v55 = vpop.f32.mrb[22].mxu0  ;;  %1303 = vmatprep.mubr.bf16.mxu1 %v1004_v50 }
 0x1bf   : > { %v827_v56 = vadd.f32 %v826_v55, %v5857_v37  ;;  %v828_v57 = vpop.f32.mrb[23].mxu0  ;;  %1304 = vmatmul.mubr.bf16.gmra.mrb[16].mxu1 %v1003_v49  ;;  %v951_v59 = vmax.f32 %v823_v52, 0.0 }
 0x1c0   : > { %v829_v58 = vadd.f32 %v828_v57, %v5860_v38  ;;  %v952_v61 = vmax.f32 %v825_v54, 0.0 }
 0x1c1   : > { %v953_v60 = vmax.f32 %v827_v56, 0.0 }
 0x1c2   : > { %v954_v62 = vmax.f32 %v829_v58, 0.0 }
 0x1c3   : > { %v1005_v63 = vpack.c.bf16 %v953_v60, %v951_v59 }
 0x1c4   : > { %v1006_v0 = vpack.c.bf16 %v954_v62, %v952_v61  ;;  %v832_v1 = vpop.f32.mrb[24].mxu0 }
 0x1c5   : > { %v833_v2 = vadd.f32 %v832_v1, %v5857_v37  ;;  %v834_v3 = vpop.f32.mrb[25].mxu0 }
 0x1c6   : > { %v835_v4 = vadd.f32 %v834_v3, %v5860_v38  ;;  %v836_v5 = vpop.f32.mrb[26].mxu0  ;;  %1313 = vmatprep.mubr.bf16.mxu1 %v1006_v0 }
 0x1c7   : > { %v837_v6 = vadd.f32 %v836_v5, %v5857_v37  ;;  %v838_v7 = vpop.f32.mrb[27].mxu0  ;;  %1314 = vmatmul.mubr.bf16.gmra.mrb[20].mxu1 %v1005_v63  ;;  %v955_v9 = vmax.f32 %v833_v2, 0.0 }
 0x1c8   : > { %v839_v8 = vadd.f32 %v838_v7, %v5860_v38  ;;  %v956_v11 = vmax.f32 %v835_v4, 0.0 }
 0x1c9   : > { %v957_v10 = vmax.f32 %v837_v6, 0.0 }
 0x1ca   : > { %v958_v12 = vmax.f32 %v839_v8, 0.0 }
 0x1cb   : > { %v1007_v13 = vpack.c.bf16 %v957_v10, %v955_v9 }
 0x1cc   : > { %v1008_v14 = vpack.c.bf16 %v958_v12, %v956_v11  ;;  %v842_v15 = vpop.f32.mrb[28].mxu0 }
 0x1cd   : > { %v843_v16 = vadd.f32 %v842_v15, %v5857_v37  ;;  %v844_v17 = vpop.f32.mrb[29].mxu0 }
 0x1ce   : > { %v845_v18 = vadd.f32 %v844_v17, %v5860_v38  ;;  %v846_v19 = vpop.f32.mrb[30].mxu0  ;;  %1323 = vmatprep.mubr.bf16.mxu1 %v1008_v14 }
 0x1cf   : > { %v847_v20 = vadd.f32 %v846_v19, %v5857_v37  ;;  %v848_v21 = vpop.f32.mrb[31].mxu0  ;;  %1324 = vmatmul.mubr.bf16.gmra.mrb[24].mxu1 %v1007_v13  ;;  %v959_v23 = vmax.f32 %v843_v16, 0.0 }
 0x1d0   : > { %v849_v22 = vadd.f32 %v848_v21, %v5860_v38  ;;  %v960_v25 = vmax.f32 %v845_v18, 0.0 }
 0x1d1   : > { %v961_v24 = vmax.f32 %v847_v20, 0.0 }
 0x1d2   : > { %v962_v26 = vmax.f32 %v849_v22, 0.0 }
 0x1d3   : > { %v1009_v27 = vpack.c.bf16 %v961_v24, %v959_v23 }
 0x1d4   : > { %v1010_v28 = vpack.c.bf16 %v962_v26, %v960_v25  ;;  %v852_v29 = vpop.f32.mrb[32].mxu0 }
 0x1d5   : > { %v853_v30 = vadd.f32 %v852_v29, %v5857_v37  ;;  %v854_v31 = vpop.f32.mrb[33].mxu0 }
 0x1d6   : > { %v855_v35 = vadd.f32 %v854_v31, %v5860_v38  ;;  %v856_v39 = vpop.f32.mrb[34].mxu0  ;;  %1333 = vmatprep.mubr.bf16.mxu1 %v1010_v28 }
 0x1d7   : > { %v857_v40 = vadd.f32 %v856_v39, %v5857_v37  ;;  %v858_v41 = vpop.f32.mrb[35].mxu0  ;;  %1334 = vmatmul.mubr.bf16.gmra.mrb[28].mxu1 %v1009_v27  ;;  %v963_v43 = vmax.f32 %v853_v30, 0.0 }
 0x1d8   : > { %v859_v42 = vadd.f32 %v858_v41, %v5860_v38  ;;  %v964_v45 = vmax.f32 %v855_v35, 0.0 }
 0x1d9   : > { %v965_v44 = vmax.f32 %v857_v40, 0.0 }
 0x1da   : > { %v966_v46 = vmax.f32 %v859_v42, 0.0 }
 0x1db   : > { %v1011_v47 = vpack.c.bf16 %v965_v44, %v963_v43 }
 0x1dc   : > { %v1012_v48 = vpack.c.bf16 %v966_v46, %v964_v45  ;;  %v862_v49 = vpop.f32.mrb[36].mxu0 }
 0x1dd   : > { %v863_v50 = vadd.f32 %v862_v49, %v5857_v37  ;;  %v864_v51 = vpop.f32.mrb[37].mxu0 }
 0x1de   : > { %v865_v52 = vadd.f32 %v864_v51, %v5860_v38  ;;  %v866_v53 = vpop.f32.mrb[38].mxu0  ;;  %1343 = vmatprep.mubr.bf16.mxu1 %v1012_v48 }
 0x1df   : > { %v867_v54 = vadd.f32 %v866_v53, %v5857_v37  ;;  %v868_v55 = vpop.f32.mrb[39].mxu0  ;;  %1344 = vmatmul.mubr.bf16.gmra.mrb[32].mxu1 %v1011_v47  ;;  %v967_v57 = vmax.f32 %v863_v50, 0.0 }
 0x1e0   : > { %v869_v56 = vadd.f32 %v868_v55, %v5860_v38  ;;  %v968_v59 = vmax.f32 %v865_v52, 0.0 }
 0x1e1   : > { %v969_v58 = vmax.f32 %v867_v54, 0.0 }
 0x1e2   : > { %v970_v60 = vmax.f32 %v869_v56, 0.0 }
 0x1e3   : > { %v1013_v61 = vpack.c.bf16 %v969_v58, %v967_v57 }
 0x1e4   : > { %v1014_v62 = vpack.c.bf16 %v970_v60, %v968_v59  ;;  %v872_v63 = vpop.f32.mrb[40].mxu0 }
 0x1e5   : > { %v873_v0 = vadd.f32 %v872_v63, %v5857_v37  ;;  %v874_v1 = vpop.f32.mrb[41].mxu0 }
 0x1e6   : > { %v875_v2 = vadd.f32 %v874_v1, %v5860_v38  ;;  %v876_v3 = vpop.f32.mrb[42].mxu0  ;;  %1353 = vmatprep.mubr.bf16.mxu1 %v1014_v62 }
 0x1e7   : > { %v877_v4 = vadd.f32 %v876_v3, %v5857_v37  ;;  %v878_v5 = vpop.f32.mrb[43].mxu0  ;;  %1354 = vmatmul.mubr.bf16.gmra.mrb[36].mxu1 %v1013_v61  ;;  %v971_v7 = vmax.f32 %v873_v0, 0.0 }
 0x1e8   : > { %v879_v6 = vadd.f32 %v878_v5, %v5860_v38  ;;  %v972_v9 = vmax.f32 %v875_v2, 0.0 }
 0x1e9   : > { %v973_v8 = vmax.f32 %v877_v4, 0.0 }
 0x1ea   : > { %v974_v10 = vmax.f32 %v879_v6, 0.0 }
 0x1eb   : > { %v1015_v11 = vpack.c.bf16 %v973_v8, %v971_v7 }
 0x1ec   : > { %v1016_v12 = vpack.c.bf16 %v974_v10, %v972_v9  ;;  %v882_v13 = vpop.f32.mrb[44].mxu0 }
 0x1ed   : > { %v883_v14 = vadd.f32 %v882_v13, %v5857_v37  ;;  %v884_v15 = vpop.f32.mrb[45].mxu0 }
 0x1ee   : > { %v885_v16 = vadd.f32 %v884_v15, %v5860_v38  ;;  %v886_v17 = vpop.f32.mrb[46].mxu0  ;;  %1363 = vmatprep.mubr.bf16.mxu1 %v1016_v12 }
 0x1ef   : > { %v887_v18 = vadd.f32 %v886_v17, %v5857_v37  ;;  %v888_v19 = vpop.f32.mrb[47].mxu0  ;;  %1364 = vmatmul.mubr.bf16.gmra.mrb[40].mxu1 %v1015_v11  ;;  %v975_v21 = vmax.f32 %v883_v14, 0.0 }
 0x1f0   : > { %v889_v20 = vadd.f32 %v888_v19, %v5860_v38  ;;  %v976_v23 = vmax.f32 %v885_v16, 0.0 }
 0x1f1   : > { %v977_v22 = vmax.f32 %v887_v18, 0.0 }
 0x1f2   : > { %v978_v24 = vmax.f32 %v889_v20, 0.0 }
 0x1f3   : > { %v1017_v25 = vpack.c.bf16 %v977_v22, %v975_v21 }
 0x1f4   : > { %v1018_v26 = vpack.c.bf16 %v978_v24, %v976_v23  ;;  %v892_v27 = vpop.f32.mrb[48].mxu0 }
 0x1f5   : > { %v893_v28 = vadd.f32 %v892_v27, %v5857_v37  ;;  %v894_v29 = vpop.f32.mrb[49].mxu0 }
 0x1f6   : > { %v895_v30 = vadd.f32 %v894_v29, %v5860_v38  ;;  %v896_v31 = vpop.f32.mrb[50].mxu0  ;;  %1373 = vmatprep.mubr.bf16.mxu1 %v1018_v26 }
 0x1f7   : > { %v897_v35 = vadd.f32 %v896_v31, %v5857_v37  ;;  %v898_v39 = vpop.f32.mrb[51].mxu0  ;;  %1374 = vmatmul.mubr.bf16.gmra.mrb[44].mxu1 %v1017_v25  ;;  %v979_v41 = vmax.f32 %v893_v28, 0.0  ;;  %v1059_v25 = vld [vmem:[%s7054_s4] sm:$0x3] }
 0x1f8   : > { %v899_v40 = vadd.f32 %v898_v39, %v5860_v38  ;;  %v980_v43 = vmax.f32 %v895_v30, 0.0  ;;  %v5930_v26 = vrot.slane %v1059_v25, %v5848_v34 }
 0x1f9   : > { %v981_v42 = vmax.f32 %v897_v35, 0.0 }
 0x1fa   : > { %v982_v44 = vmax.f32 %v899_v40, 0.0 }
 0x1fb   : > { %v1019_v45 = vpack.c.bf16 %v981_v42, %v979_v41 }
 0x1fc   : > { %v1020_v46 = vpack.c.bf16 %v982_v44, %v980_v43  ;;  %v902_v47 = vpop.f32.mrb[52].mxu0 }
 0x1fd   : > { %v903_v48 = vadd.f32 %v902_v47, %v5857_v37  ;;  %v904_v49 = vpop.f32.mrb[53].mxu0 }
 0x1fe   : > { %v905_v50 = vadd.f32 %v904_v49, %v5860_v38  ;;  %v906_v51 = vpop.f32.mrb[54].mxu0  ;;  %1383 = vmatprep.mubr.bf16.mxu1 %v1020_v46 }
 0x1ff   : > { %v907_v52 = vadd.f32 %v906_v51, %v5857_v37  ;;  %v908_v53 = vpop.f32.mrb[55].mxu0  ;;  %1384 = vmatmul.mubr.bf16.gmra.mrb[48].mxu1 %v1019_v45  ;;  %v983_v55 = vmax.f32 %v903_v48, 0.0 }
 0x200   : > { %v909_v54 = vadd.f32 %v908_v53, %v5860_v38  ;;  %v984_v57 = vmax.f32 %v905_v50, 0.0 }
 0x201   : > { %v985_v56 = vmax.f32 %v907_v52, 0.0 }
 0x202   : > { %v986_v58 = vmax.f32 %v909_v54, 0.0 }
 0x203   : > { %v1021_v59 = vpack.c.bf16 %v985_v56, %v983_v55 }
 0x204   : > { %v1022_v60 = vpack.c.bf16 %v986_v58, %v984_v57  ;;  %v912_v61 = vpop.f32.mrb[56].mxu0 }
 0x205   : > { %v913_v62 = vadd.f32 %v912_v61, %v5857_v37  ;;  %v914_v63 = vpop.f32.mrb[57].mxu0 }
 0x206   : > { %v915_v0 = vadd.f32 %v914_v63, %v5860_v38  ;;  %v916_v1 = vpop.f32.mrb[58].mxu0  ;;  %1393 = vmatprep.mubr.bf16.mxu1 %v1022_v60 }
 0x207   : > { %v917_v2 = vadd.f32 %v916_v1, %v5857_v37  ;;  %v918_v3 = vpop.f32.mrb[59].mxu0  ;;  %1394 = vmatmul.mubr.bf16.gmra.mrb[52].mxu1 %v1021_v59  ;;  %v987_v5 = vmax.f32 %v913_v62, 0.0 }
 0x208   : > { %v919_v4 = vadd.f32 %v918_v3, %v5860_v38  ;;  %v988_v7 = vmax.f32 %v915_v0, 0.0 }
 0x209   : > { %v989_v6 = vmax.f32 %v917_v2, 0.0 }
 0x20a   : > { %v990_v8 = vmax.f32 %v919_v4, 0.0 }
 0x20b   : > { %v1023_v9 = vpack.c.bf16 %v989_v6, %v987_v5 }
 0x20c   : > { %v1024_v10 = vpack.c.bf16 %v990_v8, %v988_v7  ;;  %v922_v11 = vpop.f32.mrb[60].mxu0 }
 0x20d   : > { %v923_v12 = vadd.f32 %v922_v11, %v5857_v37  ;;  %v924_v13 = vpop.f32.mrb[61].mxu0 }
 0x20e   : > { %v925_v14 = vadd.f32 %v924_v13, %v5860_v38  ;;  %v926_v15 = vpop.f32.mrb[62].mxu0  ;;  %1403 = vmatprep.mubr.bf16.mxu1 %v1024_v10 }
 0x20f   : > { %v927_v16 = vadd.f32 %v926_v15, %v5857_v37  ;;  %v928_v17 = vpop.f32.mrb[63].mxu0  ;;  %1404 = vmatmul.mubr.bf16.gmra.mrb[56].mxu1 %v1023_v9  ;;  %v991_v19 = vmax.f32 %v923_v12, 0.0  ;;  %v5933_v37 = vrot.slane %v1059_v25, %v5854_v36 }
 0x210   : > { %v929_v18 = vadd.f32 %v928_v17, %v5860_v38  ;;  %v992_v21 = vmax.f32 %v925_v14, 0.0  ;;  %v1488_v38 = vld [vmem:[%s7055_s5] sm:$0x3] }
 0x211   : > { %v993_v20 = vmax.f32 %v927_v16, 0.0  ;;  %v5940_v30 = vrot.slane %v1488_v38, %v5848_v34  ;;  %v5944_v39 = vrot.slane %v1488_v38, %v5854_v36 }
 0x212   : > { %v994_v22 = vmax.f32 %v929_v18, 0.0 }
 0x213   : > { %v1025_v23 = vpack.c.bf16 %v993_v20, %v991_v19 }
 0x214   : > { %v1026_v24 = vpack.c.bf16 %v994_v22, %v992_v21 }
 0x216   : > { %1413 = vmatprep.mubr.bf16.mxu1 %v1026_v24 }
 0x217   : > { %1414 = vmatmul.mubr.bf16.gmra.mrb[60].mxu1 %v1025_v23 }
 0x272   : > { %v1265_v27 = vpop.f32.mrb[0].mxu1 }
 0x273   : > { %v1266_v28 = vadd.f32 %v1265_v27, %v5930_v26  ;;  %v1267_v29 = vpop.f32.mrb[1].mxu1 }
 0x274   : > { %v1268_v31 = vadd.f32 %v1267_v29, %v5933_v37  ;;  %v1269_v35 = vpop.f32.mrb[2].mxu1 }
 0x275   : > { %v1424_v40 = vmax.f32 %v1266_v28, 0.0  ;;  %v1270_v41 = vadd.f32 %v1269_v35, %v5930_v26  ;;  %v1271_v42 = vpop.f32.mrb[3].mxu1 }
 0x276   : > { %v1425_v43 = vmax.f32 %v1268_v31, 0.0  ;;  %v1272_v44 = vadd.f32 %v1271_v42, %v5933_v37 }
 0x277   : > { %v1426_v45 = vmax.f32 %v1270_v41, 0.0  ;;  %v1500_v46 = vmul.f32 %v5940_v30, %v1424_v40 }
 0x278   : > { %v1427_v47 = vmax.f32 %v1272_v44, 0.0  ;;  %v1501_v48 = vmul.f32 %v5944_v39, %v1425_v43 }
 0x279   : > { %v1502_v49 = vmul.f32 %v5940_v30, %v1426_v45 }
 0x27a   : > { %v1503_v50 = vmul.f32 %v5944_v39, %v1427_v47  ;;  %v1275_v51 = vpop.f32.mrb[4].mxu1  ;;  %v1564_v52 = vadd.f32 %v1501_v48, %v1500_v46 }
 0x27b   : > { %v1276_v53 = vadd.f32 %v1275_v51, %v5930_v26  ;;  %v1277_v54 = vpop.f32.mrb[5].mxu1 }
 0x27c   : > { %v1278_v55 = vadd.f32 %v1277_v54, %v5933_v37  ;;  %v1279_v56 = vpop.f32.mrb[6].mxu1  ;;  %1565 = vadd.xlane.f32.xlu0 %v1564_v52  ;;  %v1567_v57 = vadd.f32 %v1503_v50, %v1502_v49 }
 0x27d   : > { %v1428_v58 = vmax.f32 %v1276_v53, 0.0  ;;  %v1280_v59 = vadd.f32 %v1279_v56, %v5930_v26  ;;  %v1281_v60 = vpop.f32.mrb[7].mxu1 }
 0x27e   : > { %v1429_v61 = vmax.f32 %v1278_v55, 0.0  ;;  %v1282_v62 = vadd.f32 %v1281_v60, %v5933_v37 }
 0x27f   : > { %v1430_v63 = vmax.f32 %v1280_v59, 0.0  ;;  %v1504_v0 = vmul.f32 %v5940_v30, %v1428_v58 }
 0x280   : > { %v1431_v1 = vmax.f32 %v1282_v62, 0.0  ;;  %1568 = vadd.xlane.f32.xlu0 %v1567_v57  ;;  %v1505_v2 = vmul.f32 %v5944_v39, %v1429_v61 }
 0x281   : > { %v1506_v3 = vmul.f32 %v5940_v30, %v1430_v63 }
 0x282   : > { %v1507_v4 = vmul.f32 %v5944_v39, %v1431_v1  ;;  %v1285_v5 = vpop.f32.mrb[8].mxu1  ;;  %v1570_v6 = vadd.f32 %v1505_v2, %v1504_v0 }
 0x283   : > { %v1286_v7 = vadd.f32 %v1285_v5, %v5930_v26  ;;  %v1287_v8 = vpop.f32.mrb[9].mxu1 }
 0x284   : > { %v1288_v9 = vadd.f32 %v1287_v8, %v5933_v37  ;;  %v1289_v10 = vpop.f32.mrb[10].mxu1  ;;  %1571 = vadd.xlane.f32.xlu1 %v1570_v6  ;;  %v1573_v11 = vadd.f32 %v1507_v4, %v1506_v3 }
 0x285   : > { %v1432_v12 = vmax.f32 %v1286_v7, 0.0  ;;  %v1290_v13 = vadd.f32 %v1289_v10, %v5930_v26  ;;  %v1291_v14 = vpop.f32.mrb[11].mxu1 }
 0x286   : > { %v1433_v15 = vmax.f32 %v1288_v9, 0.0  ;;  %v1292_v16 = vadd.f32 %v1291_v14, %v5933_v37 }
 0x287   : > { %v1508_v17 = vmul.f32 %v5940_v30, %v1432_v12  ;;  %v1434_v18 = vmax.f32 %v1290_v13, 0.0 }
 0x288   : > { %v1509_v19 = vmul.f32 %v5944_v39, %v1433_v15  ;;  %v1435_v20 = vmax.f32 %v1292_v16, 0.0  ;;  %1574 = vadd.xlane.f32.xlu1 %v1573_v11 }
 0x289   : > { %v1510_v21 = vmul.f32 %v5940_v30, %v1434_v18 }
 0x28a   : > { %v1511_v22 = vmul.f32 %v5944_v39, %v1435_v20  ;;  %v1295_v23 = vpop.f32.mrb[12].mxu1  ;;  %v1576_v24 = vadd.f32 %v1509_v19, %v1508_v17 }
 0x28b   : > { %v1296_v25 = vadd.f32 %v1295_v23, %v5930_v26  ;;  %v1297_v38 = vpop.f32.mrb[13].mxu1 }
 0x28c   : > { %v1298_v27 = vadd.f32 %v1297_v38, %v5933_v37  ;;  %v1299_v28 = vpop.f32.mrb[14].mxu1  ;;  %1577 = vadd.xlane.f32.xlu0 %v1576_v24  ;;  %v1579_v29 = vadd.f32 %v1511_v22, %v1510_v21 }
 0x28d   : > { %v1436_v31 = vmax.f32 %v1296_v25, 0.0  ;;  %v1300_v35 = vadd.f32 %v1299_v28, %v5930_v26  ;;  %v1301_v40 = vpop.f32.mrb[15].mxu1 }
 0x28e   : > { %v1437_v41 = vmax.f32 %v1298_v27, 0.0  ;;  %v1302_v42 = vadd.f32 %v1301_v40, %v5933_v37 }
 0x28f   : > { %v1512_v43 = vmul.f32 %v5940_v30, %v1436_v31  ;;  %v1438_v44 = vmax.f32 %v1300_v35, 0.0 }
 0x290   : > { %v1513_v45 = vmul.f32 %v5944_v39, %v1437_v41  ;;  %v1439_v46 = vmax.f32 %v1302_v42, 0.0  ;;  %1580 = vadd.xlane.f32.xlu0 %v1579_v29 }
 0x291   : > { %v1514_v47 = vmul.f32 %v5940_v30, %v1438_v44 }
 0x292   : > { %v1515_v48 = vmul.f32 %v5944_v39, %v1439_v46  ;;  %v1305_v49 = vpop.f32.mrb[16].mxu1  ;;  %v1582_v50 = vadd.f32 %v1513_v45, %v1512_v43 }
 0x293   : > { %v1306_v51 = vadd.f32 %v1305_v49, %v5930_v26  ;;  %v1307_v52 = vpop.f32.mrb[17].mxu1 }
 0x294   : > { %v1308_v53 = vadd.f32 %v1307_v52, %v5933_v37  ;;  %v1309_v54 = vpop.f32.mrb[18].mxu1  ;;  %1583 = vadd.xlane.f32.xlu0 %v1582_v50  ;;  %v1585_v55 = vadd.f32 %v1515_v48, %v1514_v47 }
 0x295   : > { %v1440_v56 = vmax.f32 %v1306_v51, 0.0  ;;  %v1310_v57 = vadd.f32 %v1309_v54, %v5930_v26  ;;  %v1311_v58 = vpop.f32.mrb[19].mxu1 }
 0x296   : > { %v1441_v59 = vmax.f32 %v1308_v53, 0.0  ;;  %v1312_v60 = vadd.f32 %v1311_v58, %v5933_v37 }
 0x297   : > { %v1516_v61 = vmul.f32 %v5940_v30, %v1440_v56  ;;  %v1442_v62 = vmax.f32 %v1310_v57, 0.0 }
 0x298   : > { %v1517_v63 = vmul.f32 %v5944_v39, %v1441_v59  ;;  %v1443_v0 = vmax.f32 %v1312_v60, 0.0  ;;  %1586 = vadd.xlane.f32.xlu0 %v1585_v55 }
 0x299   : > { %v1518_v1 = vmul.f32 %v5940_v30, %v1442_v62 }
 0x29a   : > { %v1519_v2 = vmul.f32 %v5944_v39, %v1443_v0  ;;  %v1315_v3 = vpop.f32.mrb[20].mxu1  ;;  %v1588_v4 = vadd.f32 %v1517_v63, %v1516_v61  ;;  %v5581_v0 = vmov 0  }
 0x29b   : > { %v1316_v5 = vadd.f32 %v1315_v3, %v5930_v26  ;;  %v1317_v6 = vpop.f32.mrb[21].mxu1  ;;  %5144 = vset.pattern.permute.xlu0 %v5581_v0  ;;  %5145 = vset.pattern.permute.xlu1 %v5581_v0 }
 0x29c   : > { %v1318_v7 = vadd.f32 %v1317_v6, %v5933_v37  ;;  %v1319_v8 = vpop.f32.mrb[22].mxu1  ;;  %1589 = vadd.xlane.f32.xlu0 %v1588_v4  ;;  %v1591_v9 = vadd.f32 %v1519_v2, %v1518_v1 }
 0x29d   : > { %v1444_v10 = vmax.f32 %v1316_v5, 0.0  ;;  %v1320_v11 = vadd.f32 %v1319_v8, %v5930_v26  ;;  %v1321_v12 = vpop.f32.mrb[23].mxu1 }
 0x29e   : > { %v1445_v13 = vmax.f32 %v1318_v7, 0.0  ;;  %v1322_v14 = vadd.f32 %v1321_v12, %v5933_v37 }
 0x29f   : > { %v1520_v15 = vmul.f32 %v5940_v30, %v1444_v10  ;;  %v1446_v16 = vmax.f32 %v1320_v11, 0.0 }
 0x2a0   : > { %v1521_v17 = vmul.f32 %v5944_v39, %v1445_v13  ;;  %v1447_v18 = vmax.f32 %v1322_v14, 0.0  ;;  %1592 = vadd.xlane.f32.xlu0 %v1591_v9 }
 0x2a1   : > { %v1522_v19 = vmul.f32 %v5940_v30, %v1446_v16 }
 0x2a2   : > { %v1523_v20 = vmul.f32 %v5944_v39, %v1447_v18  ;;  %v1325_v21 = vpop.f32.mrb[24].mxu1  ;;  %v1594_v22 = vadd.f32 %v1521_v17, %v1520_v15 }
 0x2a3   : > { %v1326_v23 = vadd.f32 %v1325_v21, %v5930_v26  ;;  %v1327_v24 = vpop.f32.mrb[25].mxu1 }
 0x2a4   : > { %v1328_v25 = vadd.f32 %v1327_v24, %v5933_v37  ;;  %v1329_v38 = vpop.f32.mrb[26].mxu1  ;;  %1595 = vadd.xlane.f32.xlu0 %v1594_v22  ;;  %v1597_v27 = vadd.f32 %v1523_v20, %v1522_v19 }
 0x2a5   : > { %v1448_v28 = vmax.f32 %v1326_v23, 0.0  ;;  %v1330_v29 = vadd.f32 %v1329_v38, %v5930_v26  ;;  %v1331_v31 = vpop.f32.mrb[27].mxu1 }
 0x2a6   : > { %v1449_v35 = vmax.f32 %v1328_v25, 0.0  ;;  %v1332_v40 = vadd.f32 %v1331_v31, %v5933_v37 }
 0x2a7   : > { %v1524_v41 = vmul.f32 %v5940_v30, %v1448_v28  ;;  %v1450_v42 = vmax.f32 %v1330_v29, 0.0 }
 0x2a8   : > { %v1525_v43 = vmul.f32 %v5944_v39, %v1449_v35  ;;  %v1451_v44 = vmax.f32 %v1332_v40, 0.0  ;;  %1598 = vadd.xlane.f32.xlu0 %v1597_v27 }
 0x2a9   : > { %v1526_v45 = vmul.f32 %v5940_v30, %v1450_v42 }
 0x2aa   : > { %v1527_v46 = vmul.f32 %v5944_v39, %v1451_v44  ;;  %v1335_v47 = vpop.f32.mrb[28].mxu1  ;;  %v1600_v48 = vadd.f32 %v1525_v43, %v1524_v41 }
 0x2ab   : > { %v1336_v49 = vadd.f32 %v1335_v47, %v5930_v26  ;;  %v1337_v50 = vpop.f32.mrb[29].mxu1 }
 0x2ac   : > { %v1338_v51 = vadd.f32 %v1337_v50, %v5933_v37  ;;  %v1339_v52 = vpop.f32.mrb[30].mxu1  ;;  %1601 = vadd.xlane.f32.xlu0 %v1600_v48  ;;  %v6002_v53 = vadd.f32 %v1527_v46, %v1526_v45 }
 0x2ad   : > { %v1452_v54 = vmax.f32 %v1336_v49, 0.0  ;;  %v1340_v55 = vadd.f32 %v1339_v52, %v5930_v26  ;;  %v1341_v56 = vpop.f32.mrb[31].mxu1 }
 0x2ae   : > { %v1453_v57 = vmax.f32 %v1338_v51, 0.0  ;;  %v1342_v58 = vadd.f32 %v1341_v56, %v5933_v37 }
 0x2af   : > { %v1528_v59 = vmul.f32 %v5940_v30, %v1452_v54  ;;  %v1454_v60 = vmax.f32 %v1340_v55, 0.0 }
 0x2b0   : > { %v1529_v61 = vmul.f32 %v5944_v39, %v1453_v57  ;;  %v1455_v62 = vmax.f32 %v1342_v58, 0.0 }
 0x2b1   : > { %v1530_v63 = vmul.f32 %v5940_v30, %v1454_v60 }
 0x2b2   : > { %v1531_v1 = vmul.f32 %v5944_v39, %v1455_v62  ;;  %v1345_v2 = vpop.f32.mrb[32].mxu1  ;;  %v6010_v3 = vadd.f32 %v1529_v61, %v1528_v59 }
 0x2b3   : > { %v1346_v4 = vadd.f32 %v1345_v2, %v5930_v26  ;;  %v1347_v5 = vpop.f32.mrb[33].mxu1 }
 0x2b4   : > { %v1348_v6 = vadd.f32 %v1347_v5, %v5933_v37  ;;  %v1349_v7 = vpop.f32.mrb[34].mxu1  ;;  %v6014_v8 = vadd.f32 %v1531_v1, %v1530_v63 }
 0x2b5   : > { %v1456_v9 = vmax.f32 %v1346_v4, 0.0  ;;  %v1350_v10 = vadd.f32 %v1349_v7, %v5930_v26  ;;  %v1351_v11 = vpop.f32.mrb[35].mxu1 }
 0x2b6   : > { %v1457_v12 = vmax.f32 %v1348_v6, 0.0  ;;  %v1352_v13 = vadd.f32 %v1351_v11, %v5933_v37 }
 0x2b7   : > { %v1532_v14 = vmul.f32 %v5940_v30, %v1456_v9  ;;  %v1458_v15 = vmax.f32 %v1350_v10, 0.0 }
 0x2b8   : > { %v1533_v16 = vmul.f32 %v5944_v39, %v1457_v12  ;;  %v1459_v17 = vmax.f32 %v1352_v13, 0.0 }
 0x2b9   : > { %v1534_v18 = vmul.f32 %v5940_v30, %v1458_v15 }
 0x2ba   : > { %v1535_v19 = vmul.f32 %v5944_v39, %v1459_v17  ;;  %v1355_v20 = vpop.f32.mrb[36].mxu1  ;;  %v1612_v21 = vadd.f32 %v1533_v16, %v1532_v14 }
 0x2bb   : > { %v1356_v22 = vadd.f32 %v1355_v20, %v5930_v26  ;;  %v1357_v23 = vpop.f32.mrb[37].mxu1 }
 0x2bc   : > { %v1358_v24 = vadd.f32 %v1357_v23, %v5933_v37  ;;  %v1359_v25 = vpop.f32.mrb[38].mxu1  ;;  %1613 = vadd.xlane.f32.xlu1 %v1612_v21  ;;  %v1615_v38 = vadd.f32 %v1535_v19, %v1534_v18 }
 0x2bd   : > { %v1460_v27 = vmax.f32 %v1356_v22, 0.0  ;;  %v1360_v28 = vadd.f32 %v1359_v25, %v5930_v26  ;;  %v1361_v29 = vpop.f32.mrb[39].mxu1 }
 0x2be   : > { %v1461_v31 = vmax.f32 %v1358_v24, 0.0  ;;  %v1362_v35 = vadd.f32 %v1361_v29, %v5933_v37  ;;  %1616 = vadd.xlane.f32.xlu0 %v1615_v38 }
 0x2bf   : > { %v1536_v40 = vmul.f32 %v5940_v30, %v1460_v27  ;;  %v1462_v41 = vmax.f32 %v1360_v28, 0.0 }
 0x2c0   : > { %v1537_v42 = vmul.f32 %v5944_v39, %v1461_v31  ;;  %v1463_v43 = vmax.f32 %v1362_v35, 0.0 }
 0x2c1   : > { %v1538_v44 = vmul.f32 %v5940_v30, %v1462_v41 }
 0x2c2   : > { %v1539_v45 = vmul.f32 %v5944_v39, %v1463_v43  ;;  %v1365_v46 = vpop.f32.mrb[40].mxu1  ;;  %v1618_v47 = vadd.f32 %v1537_v42, %v1536_v40 }
 0x2c3   : > { %v1366_v48 = vadd.f32 %v1365_v46, %v5930_v26  ;;  %v1367_v49 = vpop.f32.mrb[41].mxu1 }
 0x2c4   : > { %v1368_v50 = vadd.f32 %v1367_v49, %v5933_v37  ;;  %v1369_v51 = vpop.f32.mrb[42].mxu1  ;;  %1619 = vadd.xlane.f32.xlu1 %v1618_v47  ;;  %v1621_v52 = vadd.f32 %v1539_v45, %v1538_v44 }
 0x2c5   : > { %v1464_v54 = vmax.f32 %v1366_v48, 0.0  ;;  %v1370_v55 = vadd.f32 %v1369_v51, %v5930_v26  ;;  %v1371_v56 = vpop.f32.mrb[43].mxu1 }
 0x2c6   : > { %v1465_v57 = vmax.f32 %v1368_v50, 0.0  ;;  %v1372_v58 = vadd.f32 %v1371_v56, %v5933_v37  ;;  %1622 = vadd.xlane.f32.xlu0 %v1621_v52 }
 0x2c7   : > { %v1540_v59 = vmul.f32 %v5940_v30, %v1464_v54  ;;  %v1466_v60 = vmax.f32 %v1370_v55, 0.0 }
 0x2c8   : > { %v1541_v61 = vmul.f32 %v5944_v39, %v1465_v57  ;;  %v1467_v62 = vmax.f32 %v1372_v58, 0.0 }
 0x2c9   : > { %v1542_v63 = vmul.f32 %v5940_v30, %v1466_v60 }
 0x2ca   : > { %v1543_v0 = vmul.f32 %v5944_v39, %v1467_v62  ;;  %v1375_v1 = vpop.f32.mrb[44].mxu1  ;;  %1604 = vadd.xlane.f32.xlu0 %v6002_v53  ;;  %v1624_v2 = vadd.f32 %v1541_v61, %v1540_v59 }
 0x2cb   : > { %v1376_v4 = vadd.f32 %v1375_v1, %v5930_v26  ;;  %v1377_v5 = vpop.f32.mrb[45].mxu1 }
 0x2cc   : > { %v1378_v6 = vadd.f32 %v1377_v5, %v5933_v37  ;;  %v1379_v7 = vpop.f32.mrb[46].mxu1  ;;  %1625 = vadd.xlane.f32.xlu1 %v1624_v2  ;;  %v1627_v9 = vadd.f32 %v1543_v0, %v1542_v63 }
 0x2cd   : > { %v1468_v10 = vmax.f32 %v1376_v4, 0.0  ;;  %v1380_v11 = vadd.f32 %v1379_v7, %v5930_v26  ;;  %v1381_v12 = vpop.f32.mrb[47].mxu1 }
 0x2ce   : > { %v1469_v13 = vmax.f32 %v1378_v6, 0.0  ;;  %v1382_v14 = vadd.f32 %v1381_v12, %v5933_v37  ;;  %1607 = vadd.xlane.f32.xlu0 %v6010_v3 }
 0x2cf   : > { %v1544_v53 = vmul.f32 %v5940_v30, %v1468_v10  ;;  %v1470_v15 = vmax.f32 %v1380_v11, 0.0 }
 0x2d0   : > { %v1545_v16 = vmul.f32 %v5944_v39, %v1469_v13  ;;  %v1471_v17 = vmax.f32 %v1382_v14, 0.0  ;;  %1628 = vadd.xlane.f32.xlu1 %v1627_v9 }
 0x2d1   : > { %v1546_v18 = vmul.f32 %v5940_v30, %v1470_v15 }
 0x2d2   : > { %v1547_v19 = vmul.f32 %v5944_v39, %v1471_v17  ;;  %v1385_v20 = vpop.f32.mrb[48].mxu1  ;;  %1610 = vadd.xlane.f32.xlu0 %v6014_v8  ;;  %v1630_v21 = vadd.f32 %v1545_v16, %v1544_v53 }
 0x2d3   : > { %v1386_v22 = vadd.f32 %v1385_v20, %v5930_v26  ;;  %v1387_v23 = vpop.f32.mrb[49].mxu1 }
 0x2d4   : > { %v1388_v3 = vadd.f32 %v1387_v23, %v5933_v37  ;;  %v1389_v24 = vpop.f32.mrb[50].mxu1  ;;  %1631 = vadd.xlane.f32.xlu1 %v1630_v21  ;;  %v1633_v25 = vadd.f32 %v1547_v19, %v1546_v18 }
 0x2d5   : > { %v1472_v38 = vmax.f32 %v1386_v22, 0.0  ;;  %v1390_v27 = vadd.f32 %v1389_v24, %v5930_v26  ;;  %v1391_v28 = vpop.f32.mrb[51].mxu1 }
 0x2d6   : > { %v1473_v29 = vmax.f32 %v1388_v3, 0.0  ;;  %v1392_v31 = vadd.f32 %v1391_v28, %v5933_v37 }
 0x2d7   : > { %v1548_v35 = vmul.f32 %v5940_v30, %v1472_v38  ;;  %v1474_v40 = vmax.f32 %v1390_v27, 0.0 }
 0x2d8   : > { %v1549_v8 = vmul.f32 %v5944_v39, %v1473_v29  ;;  %v1475_v41 = vmax.f32 %v1392_v31, 0.0  ;;  %1634 = vadd.xlane.f32.xlu1 %v1633_v25 }
 0x2d9   : > { %v1550_v42 = vmul.f32 %v5940_v30, %v1474_v40 }
 0x2da   : > { %v1551_v43 = vmul.f32 %v5944_v39, %v1475_v41  ;;  %v1395_v44 = vpop.f32.mrb[52].mxu1  ;;  %v1636_v45 = vadd.f32 %v1549_v8, %v1548_v35 }
 0x2db   : > { %v1396_v46 = vadd.f32 %v1395_v44, %v5930_v26  ;;  %v1397_v47 = vpop.f32.mrb[53].mxu1 }
 0x2dc   : > { %v1398_v48 = vadd.f32 %v1397_v47, %v5933_v37  ;;  %v1399_v49 = vpop.f32.mrb[54].mxu1  ;;  %1637 = vadd.xlane.f32.xlu1 %v1636_v45  ;;  %v1639_v50 = vadd.f32 %v1551_v43, %v1550_v42 }
 0x2dd   : > { %v1476_v51 = vmax.f32 %v1396_v46, 0.0  ;;  %v1400_v52 = vadd.f32 %v1399_v49, %v5930_v26  ;;  %v1401_v54 = vpop.f32.mrb[55].mxu1 }
 0x2de   : > { %v1477_v55 = vmax.f32 %v1398_v48, 0.0  ;;  %v1402_v56 = vadd.f32 %v1401_v54, %v5933_v37 }
 0x2df   : > { %v1552_v57 = vmul.f32 %v5940_v30, %v1476_v51  ;;  %v1478_v58 = vmax.f32 %v1400_v52, 0.0 }
 0x2e0   : > { %v1553_v59 = vmul.f32 %v5944_v39, %v1477_v55  ;;  %v1479_v60 = vmax.f32 %v1402_v56, 0.0  ;;  %1640 = vadd.xlane.f32.xlu1 %v1639_v50 }
 0x2e1   : > { %v1554_v61 = vmul.f32 %v5940_v30, %v1478_v58 }
 0x2e2   : > { %v1555_v62 = vmul.f32 %v5944_v39, %v1479_v60  ;;  %v1405_v63 = vpop.f32.mrb[56].mxu1  ;;  %v1642_v0 = vadd.f32 %v1553_v59, %v1552_v57 }
 0x2e3   : > { %v1406_v1 = vadd.f32 %v1405_v63, %v5930_v26  ;;  %v1407_v2 = vpop.f32.mrb[57].mxu1  ;;  %v5582_v63 = vmov 1966171168  }
 0x2e4   : > { %v1408_v4 = vadd.f32 %v1407_v2, %v5933_v37  ;;  %v1409_v5 = vpop.f32.mrb[58].mxu1  ;;  %1643 = vadd.xlane.f32.xlu1 %v1642_v0  ;;  %v1645_v6 = vadd.f32 %v1555_v62, %v1554_v61  ;;  %v2947_v0 = vunpack.c.l.s4 %v5582_v63 }
 0x2e5   : > { %v1480_v7 = vmax.f32 %v1406_v1, 0.0  ;;  %v1410_v9 = vadd.f32 %v1409_v5, %v5930_v26  ;;  %v1411_v10 = vpop.f32.mrb[59].mxu1 }
 0x2e6   : > { %v1481_v11 = vmax.f32 %v1408_v4, 0.0  ;;  %v1412_v12 = vadd.f32 %v1411_v10, %v5933_v37  ;;  %v6097_v10 = vsub.s32 4, %v5845_v33 }
 0x2e7   : > { %v1556_v13 = vmul.f32 %v5940_v30, %v1480_v7  ;;  %v1482_v14 = vmax.f32 %v1410_v9, 0.0  ;;  %v6091_v7 = vsub.s32 2, %v5845_v33  ;;  %v6094_v9 = vsub.s32 3, %v5845_v33 }
 0x2e8   : > { %v1557_v53 = vmul.f32 %v5944_v39, %v1481_v11  ;;  %v1483_v15 = vmax.f32 %v1412_v12, 0.0  ;;  %1646 = vadd.xlane.f32.xlu1 %v1645_v6  ;;  %v6100_v11 = vsub.s32 5, %v5845_v33  ;;  %v2948_v12 = vunpack.c.0.s8 %v2947_v0 }
 0x2e9   : > { %v1558_v16 = vmul.f32 %v5940_v30, %v1482_v14 }
 0x2ea   : > { %v1559_v17 = vmul.f32 %v5944_v39, %v1483_v15  ;;  %v1415_v18 = vpop.f32.mrb[60].mxu1  ;;  %v1648_v19 = vadd.f32 %v1557_v53, %v1556_v13  ;;  %v6103_v53 = vsub.s32 6, %v5845_v33  ;;  %v6106_v15 = vsub.s32 7, %v5845_v33 }
 0x2eb   : > { %v1416_v20 = vadd.f32 %v1415_v18, %v5930_v26  ;;  %v1417_v21 = vpop.f32.mrb[61].mxu1 }
 0x2ec   : > { %v1418_v22 = vadd.f32 %v1417_v21, %v5933_v37  ;;  %v1419_v23 = vpop.f32.mrb[62].mxu1  ;;  %1649 = vadd.xlane.f32.xlu1 %v1648_v19  ;;  %v1651_v3 = vadd.f32 %v1559_v17, %v1558_v16 }
 0x2ed   : > { %v1484_v24 = vmax.f32 %v1416_v20, 0.0  ;;  %v1420_v25 = vadd.f32 %v1419_v23, %v5930_v26  ;;  %v1421_v38 = vpop.f32.mrb[63].mxu1  ;;  %v6081_v26 = vstv %s1660_s30 }
 0x2ee   : > { %v1485_v27 = vmax.f32 %v1418_v22, 0.0  ;;  %v1422_v28 = vadd.f32 %v1421_v38, %v5933_v37 }
 0x2ef   : > { %v1560_v29 = vmul.f32 %v5940_v30, %v1484_v24  ;;  %v1486_v31 = vmax.f32 %v1420_v25, 0.0  ;;  %v6115_v24 = vsub.s32 %v2948_v12, %v5845_v33 }
 0x2f0   : > { %v1561_v35 = vmul.f32 %v5944_v39, %v1485_v27  ;;  %v1487_v40 = vmax.f32 %v1422_v28, 0.0  ;;  %1652 = vadd.xlane.f32.xlu1 %v1651_v3 }
 0x2f1   : > { %v1562_v8 = vmul.f32 %v5940_v30, %v1486_v31 }
 0x2f2   : > { %v1563_v41 = vmul.f32 %v5944_v39, %v1487_v40  ;;  %v1654_v42 = vadd.f32 %v1561_v35, %v1560_v29 }
 0x2f4   : > { %1655 = vadd.xlane.f32.xlu1 %v1654_v42  ;;  %v1657_v43 = vadd.f32 %v1563_v41, %v1562_v8 }
 0x2f8   : > { %1658 = vadd.xlane.f32.xlu1 %v1657_v43 }
 0x309   : > { %v1566_v44 = vpop.xlane.xlu0 %1565 }
 0x30a   : > { %v1662_v37 = vadd.f32 %v6081_v26, %v1566_v44 }
 0x30c   : > { %v5036_v45 = vmul.f32 -1.442695, %v1662_v37 }
 0x30d   : > { %v1569_v46 = vpop.xlane.xlu0 %1568 }
 0x30e   : > { %5290 = vpow2.f32 %v5036_v45  ;;  %v1663_v47 = vadd.f32 %v6081_v26, %v1569_v46 }
 0x310   : > { %v5037_v48 = vmul.f32 -1.442695, %v1663_v47 }
 0x311   : > { %v1572_v49 = vpop.xlane.xlu1 %1571 }
 0x312   : > { %5292 = vpow2.f32 %v5037_v48  ;;  %v1664_v30 = vadd.f32 %v6081_v26, %v1572_v49 }
 0x314   : > { %v5038_v39 = vmul.f32 -1.442695, %v1664_v30 }
 0x315   : > { %v1575_v50 = vpop.xlane.xlu1 %1574 }
 0x316   : > { %5294 = vpow2.f32 %v5038_v39  ;;  %v1665_v51 = vadd.f32 %v6081_v26, %v1575_v50 }
 0x318   : > { %v5291_v52 = vpop.eup %5290  ;;  %v5039_v54 = vmul.f32 -1.442695, %v1665_v51 }
 0x319   : > { %v1790_v55 = vadd.f32 1.0, %v5291_v52  ;;  %v1578_v56 = vpop.xlane.xlu0 %1577 }
 0x31a   : > { %5296 = vpow2.f32 %v5039_v54  ;;  %v1666_v57 = vadd.f32 %v6081_v26, %v1578_v56 }
 0x31b   : > { %5298 = vrcp.f32 %v1790_v55 }
 0x31c   : > { %v5293_v58 = vpop.eup %5292  ;;  %v5040_v59 = vmul.f32 -1.442695, %v1666_v57 }
 0x31d   : > { %v1791_v60 = vadd.f32 1.0, %v5293_v58  ;;  %v1581_v61 = vpop.xlane.xlu0 %1580 }
 0x31e   : > { %5300 = vpow2.f32 %v5040_v59  ;;  %v1667_v62 = vadd.f32 %v6081_v26, %v1581_v61 }
 0x31f   : > { %5302 = vrcp.f32 %v1791_v60 }
 0x320   : > { %v5295_v1 = vpop.eup %5294  ;;  %v5041_v2 = vmul.f32 -1.442695, %v1667_v62 }
 0x321   : > { %v1792_v4 = vadd.f32 1.0, %v5295_v1  ;;  %v1584_v5 = vpop.xlane.xlu0 %1583 }
 0x322   : > { %5304 = vpow2.f32 %v5041_v2  ;;  %v1668_v6 = vadd.f32 %v6081_v26, %v1584_v5 }
 0x323   : > { %5306 = vrcp.f32 %v1792_v4 }
 0x324   : > { %v5297_v13 = vpop.eup %5296  ;;  %v5042_v14 = vmul.f32 -1.442695, %v1668_v6 }
 0x325   : > { %v5299_v16 = vpop.eup %5298  ;;  %v1793_v17 = vadd.f32 1.0, %v5297_v13  ;;  %v1587_v18 = vpop.xlane.xlu0 %1586 }
 0x326   : > { %5308 = vpow2.f32 %v5042_v14  ;;  %v1669_v19 = vadd.f32 %v6081_v26, %v1587_v18  ;;  %v1921_v20 = vrot.slane %v5299_v16, %v5848_v34  ;;  %v1925_v21 = vrot.slane %v5299_v16, %v5854_v36 }
 0x327   : > { %v1929_v22 = vrot.slane %v5299_v16, %v6091_v7  ;;  %v1933_v23 = vrot.slane %v5299_v16, %v6094_v9  ;;  %v1937_v3 = vrot.slane %v5299_v16, %v6097_v10  ;;  %v1941_v27 = vrot.slane %v5299_v16, %v6100_v11 }
 0x328   : > { %v5301_v25 = vpop.eup %5300  ;;  %v5043_v38 = vmul.f32 -1.442695, %v1669_v19  ;;  %v1945_v28 = vrot.slane %v5299_v16, %v6103_v53  ;;  %v1949_v29 = vrot.slane %v5299_v16, %v6106_v15  ;;  %5310 = vrcp.f32 %v1793_v17 }
 0x329   : > { %v5303_v31 = vpop.eup %5302  ;;  %v1794_v35 = vadd.f32 1.0, %v5301_v25  ;;  %v1590_v40 = vpop.xlane.xlu0 %1589  ;;  %v2942_v8 = vcombine.low %v1921_v20, %v1925_v21  ;;  %v2943_v41 = vcombine.low %v1929_v22, %v1933_v23  ;;  %v2944_v43 = vcombine.low %v1937_v3, %v1941_v27 }
 0x32a   : > { %5312 = vpow2.f32 %v5043_v38  ;;  %v1670_v42 = vadd.f32 %v6081_v26, %v1590_v40  ;;  %v2945_v44 = vcombine.low %v1945_v28, %v1949_v29  ;;  %v1953_v46 = vrot.slane %v5303_v31, %v5848_v34 }
 0x32b   : > { %5314 = vrcp.f32 %v1794_v35  ;;  %v2952_v37 = vrot.slane %v2942_v8, %v6115_v24  ;;  %v2959_v45 = vrot.slane %v2943_v41, %v6115_v24  ;;  %v2966_v49 = vrot.slane %v2944_v43, %v6115_v24 }
 0x32c   : > { %v5305_v47 = vpop.eup %5304  ;;  %v5044_v48 = vmul.f32 -1.442695, %v1670_v42  ;;  %v2973_v30 = vrot.slane %v2945_v44, %v6115_v24  ;;  %v1957_v39 = vrot.slane %v5303_v31, %v5854_v36  ;;  %v1961_v54 = vrot.slane %v5303_v31, %v6091_v7 }
 0x32d   : > { %v1795_v50 = vadd.f32 1.0, %v5305_v47  ;;  %v1593_v51 = vpop.xlane.xlu0 %1592  ;;  %v2974_v52 = vcombine.low %v2952_v37, %v2959_v45  ;;  %v1965_v55 = vrot.slane %v5303_v31, %v6094_v9  ;;  %v5307_v56 = vpop.eup %5306  ;;  %v1969_v59 = vrot.slane %v5303_v31, %v6097_v10 }
 0x32e   : > { %5316 = vpow2.f32 %v5044_v48  ;;  %v1671_v57 = vadd.f32 %v6081_v26, %v1593_v51  ;;  %v2975_v58 = vcombine.low %v2966_v49, %v2973_v30  ;;  %v1973_v61 = vrot.slane %v5303_v31, %v6100_v11 }
 0x32f   : > { %5318 = vrcp.f32 %v1795_v50  ;;  %v2982_v60 = vrot.slane %v2974_v52, %v6115_v24  ;;  %v1977_v62 = vrot.slane %v5303_v31, %v6103_v53  ;;  %v1981_v2 = vrot.slane %v5303_v31, %v6106_v15 }
 0x330   : > { %v5309_v63 = vpop.eup %5308  ;;  %v5045_v0 = vmul.f32 -1.442695, %v1671_v57  ;;  %v2989_v1 = vrot.slane %v2975_v58, %v6115_v24  ;;  %v2991_v4 = vcombine.low %v1953_v46, %v1957_v39  ;;  %v2992_v12 = vcombine.low %v1961_v54, %v1965_v55 }
 0x331   : > { %v1796_v5 = vadd.f32 1.0, %v5309_v63  ;;  %v1596_v6 = vpop.xlane.xlu0 %1595  ;;  %v2993_v13 = vcombine.low %v1969_v59, %v1973_v61  ;;  %v1985_v14 = vrot.slane %v5307_v56, %v5848_v34  ;;  %v2994_v18 = vcombine.low %v1977_v62, %v1981_v2 }
 0x332   : > { %5320 = vpow2.f32 %v5045_v0  ;;  %v1672_v16 = vadd.f32 %v6081_v26, %v1596_v6  ;;  %v2990_v17 = vcombine.low %v2982_v60, %v2989_v1  ;;  %v6138_v19 = vpop.eup %5310  ;;  %v3001_v20 = vrot.slane %v2991_v4, %v6115_v24 }
 0x333   : > { %5322 = vrcp.f32 %v1796_v5  ;;  %v3008_v21 = vrot.slane %v2992_v12, %v6115_v24  ;;  %v3015_v22 = vrot.slane %v2993_v13, %v6115_v24  ;;  %v3022_v25 = vrot.slane %v2994_v18, %v6115_v24 }
 0x334   : > { %v5313_v23 = vpop.eup %5312  ;;  %v5046_v3 = vmul.f32 -1.442695, %v1672_v16  ;;  %4511 = vperm.xlu0 %5144, %v2990_v17   ;;  %v1989_v38 = vrot.slane %v5307_v56, %v5854_v36  ;;  %v1993_v27 = vrot.slane %v5307_v56, %v6091_v7  ;;  %v1997_v40 = vrot.slane %v5307_v56, %v6094_v9 }
 0x335   : > { %v6146_v28 = vpop.eup %5314  ;;  %v1797_v29 = vadd.f32 1.0, %v5313_v23  ;;  %v1599_v31 = vpop.xlane.xlu0 %1598  ;;  %v3023_v35 = vcombine.low %v3001_v20, %v3008_v21  ;;  %v2001_v8 = vrot.slane %v5307_v56, %v6097_v10  ;;  %v3024_v42 = vcombine.low %v3015_v22, %v3022_v25 }
 0x336   : > { %5324 = vpow2.f32 %v5046_v3  ;;  %v1673_v41 = vadd.f32 %v6081_v26, %v1599_v31  ;;  %v2005_v43 = vrot.slane %v5307_v56, %v6100_v11  ;;  %v2009_v37 = vrot.slane %v5307_v56, %v6103_v53 }
 0x337   : > { %5326 = vrcp.f32 %v1797_v29  ;;  %v3031_v44 = vrot.slane %v3023_v35, %v6115_v24  ;;  %v2013_v45 = vrot.slane %v5307_v56, %v6106_v15  ;;  %v3038_v48 = vrot.slane %v3024_v42, %v6115_v24 }
 0x338   : > { %v5317_v46 = vpop.eup %5316  ;;  %v5047_v47 = vmul.f32 -1.442695, %v1673_v41  ;;  %v3040_v49 = vcombine.low %v1985_v14, %v1989_v38  ;;  %v3041_v30 = vcombine.low %v1993_v27, %v1997_v40  ;;  %v3042_v52 = vcombine.low %v2001_v8, %v2005_v43 }
 0x339   : > { %v6156_v39 = vpop.eup %5318  ;;  %v1798_v50 = vadd.f32 1.0, %v5317_v46  ;;  %v1602_v51 = vpop.xlane.xlu0 %1601  ;;  %v3043_v54 = vcombine.low %v2009_v37, %v2013_v45  ;;  %v2017_v55 = vrot.slane %v6138_v19, %v5848_v34  ;;  %v3039_v57 = vcombine.low %v3031_v44, %v3038_v48 }
 0x33a   : > { %5328 = vpow2.f32 %v5047_v47  ;;  %v1674_v58 = vadd.f32 %v6081_v26, %v1602_v51  ;;  %v3050_v56 = vrot.slane %v3040_v49, %v6115_v24  ;;  %v3057_v59 = vrot.slane %v3041_v30, %v6115_v24 }
 0x33b   : > { %5330 = vrcp.f32 %v1798_v50  ;;  %v3064_v60 = vrot.slane %v3042_v52, %v6115_v24  ;;  %v3071_v61 = vrot.slane %v3043_v54, %v6115_v24  ;;  %4514 = vperm.xlu1 %5145, %v3039_v57   ;;  %v2021_v0 = vrot.slane %v6138_v19, %v5854_v36 }
 0x33c   : > { %v5321_v62 = vpop.eup %5320  ;;  %v5048_v63 = vmul.f32 -1.442695, %v1674_v58  ;;  %v2025_v1 = vrot.slane %v6138_v19, %v6091_v7  ;;  %v2029_v2 = vrot.slane %v6138_v19, %v6094_v9  ;;  %v3072_v6 = vcombine.low %v3050_v56, %v3057_v59 }
 0x33d   : > { %v6171_v4 = vpop.eup %5322  ;;  %v1799_v5 = vadd.f32 1.0, %v5321_v62  ;;  %v3073_v12 = vcombine.low %v3064_v60, %v3071_v61  ;;  %v2033_v13 = vrot.slane %v6138_v19, %v6097_v10  ;;  %v2037_v14 = vrot.slane %v6138_v19, %v6100_v11 }
 0x33e   : > { %5332 = vpow2.f32 %v5048_v63  ;;  %v2041_v16 = vrot.slane %v6138_v19, %v6103_v53  ;;  %v2045_v17 = vrot.slane %v6138_v19, %v6106_v15  ;;  %v3080_v18 = vrot.slane %v3072_v6, %v6115_v24 }
 0x33f   : > { %5334 = vrcp.f32 %v1799_v5  ;;  %v3087_v20 = vrot.slane %v3073_v12, %v6115_v24  ;;  %v3089_v21 = vcombine.low %v2017_v55, %v2021_v0  ;;  %v3090_v23 = vcombine.low %v2025_v1, %v2029_v2 }
 0x340   : > { %v5325_v22 = vpop.eup %5324  ;;  %v3091_v3 = vcombine.low %v2033_v13, %v2037_v14  ;;  %v3092_v25 = vcombine.low %v2041_v16, %v2045_v17  ;;  %v2049_v38 = vrot.slane %v6146_v28, %v5848_v34  ;;  %v2053_v19 = vrot.slane %v6146_v28, %v5854_v36 }
 0x341   : > { %v6185_v27 = vpop.eup %5326  ;;  %v1800_v29 = vadd.f32 1.0, %v5325_v22  ;;  %v3088_v31 = vcombine.low %v3080_v18, %v3087_v20  ;;  %v3099_v35 = vrot.slane %v3089_v21, %v6115_v24  ;;  %v3106_v40 = vrot.slane %v3090_v23, %v6115_v24 }
 0x342   : > { %v3113_v8 = vrot.slane %v3091_v3, %v6115_v24  ;;  %v3120_v41 = vrot.slane %v3092_v25, %v6115_v24  ;;  %v2057_v42 = vrot.slane %v6146_v28, %v6091_v7  ;;  %v2061_v43 = vrot.slane %v6146_v28, %v6094_v9 }
 0x343   : > { %5336 = vrcp.f32 %v1800_v29  ;;  %4517 = vperm.xlu1 %5145, %v3088_v31   ;;  %v2065_v44 = vrot.slane %v6146_v28, %v6097_v10  ;;  %v2069_v37 = vrot.slane %v6146_v28, %v6100_v11  ;;  %v3121_v46 = vcombine.low %v3099_v35, %v3106_v40 }
 0x344   : > { %v5329_v45 = vpop.eup %5328  ;;  %v3122_v47 = vcombine.low %v3113_v8, %v3120_v41  ;;  %v2073_v48 = vrot.slane %v6146_v28, %v6103_v53  ;;  %v2077_v49 = vrot.slane %v6146_v28, %v6106_v15  ;;  %v3138_v51 = vcombine.low %v2049_v38, %v2053_v19 }
 0x345   : > { %v6205_v30 = vpop.eup %5330  ;;  %v1801_v50 = vadd.f32 1.0, %v5329_v45  ;;  %v3139_v52 = vcombine.low %v2057_v42, %v2061_v43  ;;  %v3140_v54 = vcombine.low %v2065_v44, %v2069_v37  ;;  %v3129_v55 = vrot.slane %v3121_v46, %v6115_v24 }
 0x346   : > { %v3136_v57 = vrot.slane %v3122_v47, %v6115_v24  ;;  %v3141_v58 = vcombine.low %v2073_v48, %v2077_v49  ;;  %v2081_v56 = vrot.slane %v6156_v39, %v5848_v34  ;;  %v3148_v59 = vrot.slane %v3138_v51, %v6115_v24 }
 0x347   : > { %5338 = vrcp.f32 %v1801_v50  ;;  %v3155_v60 = vrot.slane %v3139_v52, %v6115_v24  ;;  %v3162_v28 = vrot.slane %v3140_v54, %v6115_v24  ;;  %v2085_v0 = vrot.slane %v6156_v39, %v5854_v36 }
 0x348   : > { %v5333_v61 = vpop.eup %5332  ;;  %v3137_v62 = vcombine.low %v3129_v55, %v3136_v57  ;;  %v3169_v63 = vrot.slane %v3141_v58, %v6115_v24  ;;  %v2089_v1 = vrot.slane %v6156_v39, %v6091_v7  ;;  %v2093_v12 = vrot.slane %v6156_v39, %v6094_v9 }
 0x349   : > { %v6219_v2 = vpop.eup %5334  ;;  %v1802_v5 = vadd.f32 1.0, %v5333_v61  ;;  %v3170_v6 = vcombine.low %v3148_v59, %v3155_v60  ;;  %v2097_v13 = vrot.slane %v6156_v39, %v6097_v10  ;;  %v1614_v14 = vpop.xlane.xlu1 %1613  ;;  %v2101_v17 = vrot.slane %v6156_v39, %v6100_v11 }
 0x34a   : > { %4520 = vperm.xlu1 %5145, %v3137_v62   ;;  %v3171_v16 = vcombine.low %v3162_v28, %v3169_v63  ;;  %v2105_v18 = vrot.slane %v6156_v39, %v6103_v53  ;;  %v2109_v20 = vrot.slane %v6156_v39, %v6106_v15  ;;  %v3187_v22 = vcombine.low %v2081_v56, %v2085_v0 }
 0x34b   : > { %5340 = vrcp.f32 %v1802_v5  ;;  %v3178_v21 = vrot.slane %v3170_v6, %v6115_v24  ;;  %v3188_v23 = vcombine.low %v2089_v1, %v2093_v12  ;;  %v3189_v25 = vcombine.low %v2097_v13, %v2101_v17  ;;  %v1617_v47 = vpop.xlane.xlu0 %1616 }
 0x34c   : > { %v3185_v3 = vrot.slane %v3171_v16, %v6115_v24  ;;  %v3190_v38 = vcombine.low %v2105_v18, %v2109_v20  ;;  %v1678_v29 = vadd.f32 %v6081_v26, %v1614_v14  ;;  %v3197_v35 = vrot.slane %v3187_v22, %v6115_v24 }
 0x34d   : > { %v6234_v31 = vpop.eup %5336  ;;  %v3204_v19 = vrot.slane %v3188_v23, %v6115_v24  ;;  %v2113_v39 = vrot.slane %v6171_v4, %v5848_v34  ;;  %v2117_v40 = vrot.slane %v6171_v4, %v5854_v36  ;;  %v3211_v41 = vrot.slane %v3189_v25, %v6115_v24 }
 0x34e   : > { %v3186_v8 = vcombine.low %v3178_v21, %v3185_v3  ;;  %v3218_v42 = vrot.slane %v3190_v38, %v6115_v24  ;;  %v5052_v43 = vmul.f32 -1.442695, %v1678_v29  ;;  %v2121_v37 = vrot.slane %v6171_v4, %v6091_v7 }
 0x34f   : > { %v3219_v44 = vcombine.low %v3197_v35, %v3204_v19  ;;  %v2125_v45 = vrot.slane %v6171_v4, %v6094_v9  ;;  %v2129_v46 = vrot.slane %v6171_v4, %v6097_v10  ;;  %v2133_v49 = vrot.slane %v6171_v4, %v6100_v11 }
 0x350   : > { %4523 = vperm.xlu1 %5145, %v3186_v8   ;;  %v3220_v48 = vcombine.low %v3211_v41, %v3218_v42  ;;  %5342 = vpow2.f32 %v5052_v43  ;;  %v2137_v50 = vrot.slane %v6171_v4, %v6103_v53  ;;  %v2141_v54 = vrot.slane %v6171_v4, %v6106_v15 }
 0x351   : > { %v6254_v51 = vpop.eup %5338  ;;  %v3227_v52 = vrot.slane %v3219_v44, %v6115_v24  ;;  %v3236_v55 = vcombine.low %v2113_v39, %v2117_v40  ;;  %v3237_v57 = vcombine.low %v2121_v37, %v2125_v45  ;;  %v3238_v56 = vcombine.low %v2129_v46, %v2133_v49  ;;  %v1620_v17 = vpop.xlane.xlu1 %1619 }
 0x352   : > { %v3234_v58 = vrot.slane %v3220_v48, %v6115_v24  ;;  %v1679_v59 = vadd.f32 %v6081_v26, %v1617_v47  ;;  %v2145_v60 = vrot.slane %v6185_v27, %v5848_v34  ;;  %v3239_v28 = vcombine.low %v2137_v50, %v2141_v54 }
 0x353   : > { %v3246_v61 = vrot.slane %v3236_v55, %v6115_v24  ;;  %v3253_v62 = vrot.slane %v3237_v57, %v6115_v24  ;;  %v2149_v63 = vrot.slane %v6185_v27, %v5854_v36  ;;  %v3260_v4 = vrot.slane %v3238_v56, %v6115_v24  ;;  %v1623_v55 = vpop.xlane.xlu0 %1622 }
 0x354   : > { %v3235_v0 = vcombine.low %v3227_v52, %v3234_v58  ;;  %v5053_v1 = vmul.f32 -1.442695, %v1679_v59  ;;  %v2153_v5 = vrot.slane %v6185_v27, %v6091_v7  ;;  %v3267_v12 = vrot.slane %v3239_v28, %v6115_v24 }
 0x355   : > { %v6270_v6 = vpop.eup %5340  ;;  %v3268_v13 = vcombine.low %v3246_v61, %v3253_v62  ;;  %v2157_v14 = vrot.slane %v6185_v27, %v6094_v9  ;;  %v2161_v16 = vrot.slane %v6185_v27, %v6097_v10  ;;  %v2165_v18 = vrot.slane %v6185_v27, %v6100_v11 }
 0x356   : > { %4526 = vperm.xlu1 %5145, %v3235_v0   ;;  %5344 = vpow2.f32 %v5053_v1  ;;  %v2169_v20 = vrot.slane %v6185_v27, %v6103_v53  ;;  %v2173_v21 = vrot.slane %v6185_v27, %v6106_v15  ;;  %v3269_v22 = vcombine.low %v3260_v4, %v3267_v12 }
 0x357   : > { %v3276_v23 = vrot.slane %v3268_v13, %v6115_v24  ;;  %v3285_v3 = vcombine.low %v2145_v60, %v2149_v63  ;;  %v3286_v25 = vcombine.low %v2153_v5, %v2157_v14  ;;  %v3287_v38 = vcombine.low %v2161_v16, %v2165_v18 }
 0x358   : > { %v3288_v29 = vcombine.low %v2169_v20, %v2173_v21  ;;  %v1680_v35 = vadd.f32 %v6081_v26, %v1620_v17  ;;  %v2177_v19 = vrot.slane %v6205_v30, %v5848_v34  ;;  %v3283_v39 = vrot.slane %v3269_v22, %v6115_v24 }
 0x359   : > { %v3295_v40 = vrot.slane %v3285_v3, %v6115_v24  ;;  %v3302_v8 = vrot.slane %v3286_v25, %v6115_v24  ;;  %v2181_v27 = vrot.slane %v6205_v30, %v5854_v36  ;;  %v1626_v41 = vpop.xlane.xlu1 %1625  ;;  %v3309_v43 = vrot.slane %v3287_v38, %v6115_v24  ;;  %v1605_v38 = vpop.xlane.xlu0 %1604 }
 0x35a   : > { %v5343_v42 = vpop.eup %5342  ;;  %v3316_v44 = vrot.slane %v3288_v29, %v6115_v24  ;;  %v5054_v37 = vmul.f32 -1.442695, %v1680_v35  ;;  %v2185_v45 = vrot.slane %v6205_v30, %v6091_v7  ;;  %v3284_v47 = vcombine.low %v3276_v23, %v3283_v39 }
 0x35b   : > { %v1806_v46 = vadd.f32 1.0, %v5343_v42  ;;  %v3317_v48 = vcombine.low %v3295_v40, %v3302_v8  ;;  %v2189_v49 = vrot.slane %v6205_v30, %v6094_v9  ;;  %v2193_v52 = vrot.slane %v6205_v30, %v6097_v10 }
 0x35c   : > { %v3318_v50 = vcombine.low %v3309_v43, %v3316_v44  ;;  %5346 = vpow2.f32 %v5054_v37  ;;  %v2197_v54 = vrot.slane %v6205_v30, %v6100_v11  ;;  %4529 = vperm.xlu1 %5145, %v3284_v47   ;;  %v2201_v58 = vrot.slane %v6205_v30, %v6103_v53 }
 0x35d   : > { %5348 = vrcp.f32 %v1806_v46  ;;  %v3325_v57 = vrot.slane %v3317_v48, %v6115_v24  ;;  %v2205_v56 = vrot.slane %v6205_v30, %v6106_v15  ;;  %v6307_v59 = vpop.xlane.xlu1 %1628  ;;  %v3334_v28 = vcombine.low %v2177_v19, %v2181_v27 }
 0x35e   : > { %v3332_v60 = vrot.slane %v3318_v50, %v6115_v24  ;;  %v3335_v61 = vcombine.low %v2185_v45, %v2189_v49  ;;  %v3336_v62 = vcombine.low %v2193_v52, %v2197_v54  ;;  %v1681_v0 = vadd.f32 %v6081_v26, %v1623_v55 }
 0x35f   : > { %v3337_v63 = vcombine.low %v2201_v58, %v2205_v56  ;;  %v2209_v4 = vrot.slane %v6219_v2, %v5848_v34  ;;  %v2213_v1 = vrot.slane %v6219_v2, %v5854_v36  ;;  %v3344_v30 = vrot.slane %v3334_v28, %v6115_v24 }
 0x360   : > { %v5345_v5 = vpop.eup %5344  ;;  %v3333_v12 = vcombine.low %v3325_v57, %v3332_v60  ;;  %v3351_v13 = vrot.slane %v3335_v61, %v6115_v24  ;;  %v3358_v14 = vrot.slane %v3336_v62, %v6115_v24  ;;  %v5055_v18 = vmul.f32 -1.442695, %v1681_v0  ;;  %v1608_v62 = vpop.xlane.xlu0 %1607 }
 0x361   : > { %v1807_v16 = vadd.f32 1.0, %v5345_v5  ;;  %v3365_v17 = vrot.slane %v3337_v63, %v6115_v24  ;;  %v2217_v20 = vrot.slane %v6219_v2, %v6091_v7  ;;  %v6321_v21 = vpop.xlane.xlu1 %1631  ;;  %v2221_v23 = vrot.slane %v6219_v2, %v6094_v9 }
 0x362   : > { %4532 = vperm.xlu1 %5145, %v3333_v12   ;;  %v3366_v22 = vcombine.low %v3344_v30, %v3351_v13  ;;  %v2225_v3 = vrot.slane %v6219_v2, %v6097_v10  ;;  %v2229_v25 = vrot.slane %v6219_v2, %v6100_v11  ;;  %v2233_v35 = vrot.slane %v6219_v2, %v6103_v53 }
 0x363   : > { %5350 = vrcp.f32 %v1807_v16  ;;  %v3367_v29 = vcombine.low %v3358_v14, %v3365_v17  ;;  %v2237_v19 = vrot.slane %v6219_v2, %v6106_v15  ;;  %v3383_v40 = vcombine.low %v2209_v4, %v2213_v1 }
 0x364   : > { %v3374_v39 = vrot.slane %v3366_v22, %v6115_v24  ;;  %5352 = vpow2.f32 %v5055_v18  ;;  %v3384_v8 = vcombine.low %v2217_v20, %v2221_v23  ;;  %v3385_v42 = vcombine.low %v2225_v3, %v2229_v25 }
 0x365   : > { %v3381_v27 = vrot.slane %v3367_v29, %v6115_v24  ;;  %v3386_v43 = vcombine.low %v2233_v35, %v2237_v19  ;;  %v1675_v44 = vadd.f32 %v6081_v26, %v1605_v38  ;;  %v6336_v37 = vpop.xlane.xlu1 %1634  ;;  %v3393_v46 = vrot.slane %v3383_v40, %v6115_v24 }
 0x366   : > { %v5347_v45 = vpop.eup %5346  ;;  %v3400_v47 = vrot.slane %v3384_v8, %v6115_v24  ;;  %v1682_v2 = vadd.f32 %v6081_v26, %v1626_v41  ;;  %v2241_v48 = vrot.slane %v6234_v31, %v5848_v34  ;;  %v3407_v54 = vrot.slane %v3385_v42, %v6115_v24 }
 0x367   : > { %v6343_v49 = vpop.eup %5348  ;;  %v1808_v50 = vadd.f32 1.0, %v5347_v45  ;;  %v3382_v52 = vcombine.low %v3374_v39, %v3381_v27  ;;  %v3414_v55 = vrot.slane %v3386_v43, %v6115_v24  ;;  %v5049_v58 = vmul.f32 -1.442695, %v1675_v44 }
 0x368   : > { %v3415_v57 = vcombine.low %v3393_v46, %v3400_v47  ;;  %v5056_v56 = vmul.f32 -1.442695, %v1682_v2  ;;  %v2245_v60 = vrot.slane %v6234_v31, %v5854_v36  ;;  %v2249_v28 = vrot.slane %v6234_v31, %v6091_v7  ;;  %v1611_v46 = vpop.xlane.xlu0 %1610 }
 0x369   : > { %5354 = vrcp.f32 %v1808_v50  ;;  %4535 = vperm.xlu1 %5145, %v3382_v52   ;;  %v3416_v41 = vcombine.low %v3407_v54, %v3414_v55  ;;  %v2253_v61 = vrot.slane %v6234_v31, %v6094_v9  ;;  %v2257_v0 = vrot.slane %v6234_v31, %v6097_v10  ;;  %v6363_v30 = vpop.xlane.xlu1 %1637 }
 0x36a   : > { %v3423_v63 = vrot.slane %v3415_v57, %v6115_v24  ;;  %5356 = vpow2.f32 %v5049_v58  ;;  %v2261_v4 = vrot.slane %v6234_v31, %v6100_v11  ;;  %v2265_v5 = vrot.slane %v6234_v31, %v6103_v53 }
 0x36b   : > { %v3430_v1 = vrot.slane %v3416_v41, %v6115_v24  ;;  %5358 = vpow2.f32 %v5056_v56  ;;  %v2269_v12 = vrot.slane %v6234_v31, %v6106_v15  ;;  %v3432_v13 = vcombine.low %v2241_v48, %v2245_v60 }
 0x36c   : > { %v3433_v14 = vcombine.low %v2249_v28, %v2253_v61  ;;  %v3434_v16 = vcombine.low %v2257_v0, %v2261_v4  ;;  %v1676_v17 = vadd.f32 %v6081_v26, %v1608_v62  ;;  %v1683_v23 = vadd.f32 %v6081_v26, %v6307_v59 }
 0x36d   : > { %v6366_v18 = vpop.eup %5350  ;;  %v3431_v20 = vcombine.low %v3423_v63, %v3430_v1  ;;  %v3435_v22 = vcombine.low %v2265_v5, %v2269_v12  ;;  %v2273_v3 = vrot.slane %v6254_v51, %v5848_v34  ;;  %v3442_v31 = vrot.slane %v3432_v13, %v6115_v24  ;;  %v6386_v47 = vpop.xlane.xlu1 %1640 }
 0x36e   : > { %v5353_v25 = vpop.eup %5352  ;;  %v3449_v38 = vrot.slane %v3433_v14, %v6115_v24  ;;  %v3456_v29 = vrot.slane %v3434_v16, %v6115_v24  ;;  %v5050_v35 = vmul.f32 -1.442695, %v1676_v17  ;;  %v5057_v40 = vmul.f32 -1.442695, %v1683_v23 }
 0x36f   : > { %v1809_v19 = vadd.f32 1.0, %v5353_v25  ;;  %4538 = vperm.xlu0 %5144, %v3431_v20   ;;  %v3463_v39 = vrot.slane %v3435_v22, %v6115_v24  ;;  %v2277_v8 = vrot.slane %v6254_v51, %v5854_v36  ;;  %v2281_v27 = vrot.slane %v6254_v51, %v6091_v7 }
 0x370   : > { %v3464_v59 = vcombine.low %v3442_v31, %v3449_v38  ;;  %5360 = vpow2.f32 %v5050_v35  ;;  %v2285_v42 = vrot.slane %v6254_v51, %v6094_v9  ;;  %v2289_v44 = vrot.slane %v6254_v51, %v6097_v10 }
 0x371   : > { %5362 = vrcp.f32 %v1809_v19  ;;  %v3465_v43 = vcombine.low %v3456_v29, %v3463_v39  ;;  %v2293_v45 = vrot.slane %v6254_v51, %v6100_v11  ;;  %v2297_v48 = vrot.slane %v6254_v51, %v6103_v53  ;;  %v1644_v17 = vpop.xlane.xlu1 %1643 }
 0x372   : > { %v3472_v2 = vrot.slane %v3464_v59, %v6115_v24  ;;  %5364 = vpow2.f32 %v5057_v40  ;;  %v2301_v50 = vrot.slane %v6254_v51, %v6106_v15  ;;  %v3481_v55 = vcombine.low %v2273_v3, %v2277_v8 }
 0x373   : > { %v6393_v52 = vpop.eup %5354  ;;  %v3479_v54 = vrot.slane %v3465_v43, %v6115_v24  ;;  %v3482_v57 = vcombine.low %v2281_v27, %v2285_v42  ;;  %v3483_v58 = vcombine.low %v2289_v44, %v2293_v45  ;;  %v1677_v41 = vadd.f32 %v6081_v26, %v1611_v46 }
 0x374   : > { %v5357_v56 = vpop.eup %5356  ;;  %v3484_v60 = vcombine.low %v2297_v48, %v2301_v50  ;;  %v1684_v28 = vadd.f32 %v6081_v26, %v6321_v21  ;;  %v2305_v61 = vrot.slane %v6270_v6, %v5848_v34  ;;  %v3491_v0 = vrot.slane %v3481_v55, %v6115_v24 }
 0x375   : > { %v5359_v62 = vpop.eup %5358  ;;  %v1803_v63 = vadd.f32 1.0, %v5357_v56  ;;  %v3480_v51 = vcombine.low %v3472_v2, %v3479_v54  ;;  %v3498_v4 = vrot.slane %v3482_v57, %v6115_v24  ;;  %v3505_v5 = vrot.slane %v3483_v58, %v6115_v24  ;;  %v1647_v50 = vpop.xlane.xlu1 %1646 }
 0x376   : > { %v1810_v1 = vadd.f32 1.0, %v5359_v62  ;;  %v3512_v12 = vrot.slane %v3484_v60, %v6115_v24  ;;  %v5051_v13 = vmul.f32 -1.442695, %v1677_v41  ;;  %v5058_v21 = vmul.f32 -1.442695, %v1684_v28 }
 0x377   : > { %5366 = vrcp.f32 %v1803_v63  ;;  %4541 = vperm.xlu1 %5145, %v3480_v51   ;;  %v3513_v14 = vcombine.low %v3491_v0, %v3498_v4  ;;  %v2309_v16 = vrot.slane %v6270_v6, %v5854_v36  ;;  %v2313_v22 = vrot.slane %v6270_v6, %v6091_v7 }
 0x378   : > { %5368 = vrcp.f32 %v1810_v1  ;;  %v3514_v20 = vcombine.low %v3505_v5, %v3512_v12  ;;  %v2317_v23 = vrot.slane %v6270_v6, %v6094_v9  ;;  %v2321_v25 = vrot.slane %v6270_v6, %v6097_v10 }
 0x379   : > { %v3521_v3 = vrot.slane %v3513_v14, %v6115_v24  ;;  %5370 = vpow2.f32 %v5051_v13  ;;  %v2325_v31 = vrot.slane %v6270_v6, %v6100_v11  ;;  %v2329_v35 = vrot.slane %v6270_v6, %v6103_v53 }
 0x37a   : > { %v5361_v38 = vpop.eup %5360  ;;  %v3528_v29 = vrot.slane %v3514_v20, %v6115_v24  ;;  %5372 = vpow2.f32 %v5058_v21  ;;  %v2333_v19 = vrot.slane %v6270_v6, %v6106_v15  ;;  %v3530_v8 = vcombine.low %v2305_v61, %v2309_v16  ;;  %v1650_v16 = vpop.xlane.xlu1 %1649 }
 0x37b   : > { %v6421_v39 = vpop.eup %5362  ;;  %v1804_v40 = vadd.f32 1.0, %v5361_v38  ;;  %v3531_v59 = vcombine.low %v2313_v22, %v2317_v23  ;;  %v3532_v27 = vcombine.low %v2321_v25, %v2325_v31  ;;  %v1685_v45 = vadd.f32 %v6081_v26, %v6336_v37 }
 0x37c   : > { %v5365_v42 = vpop.eup %5364  ;;  %v3529_v43 = vcombine.low %v3521_v3, %v3528_v29  ;;  %v3533_v44 = vcombine.low %v2329_v35, %v2333_v19  ;;  %v1686_v46 = vadd.f32 %v6081_v26, %v6363_v30  ;;  %v3540_v48 = vrot.slane %v3530_v8, %v6115_v24 }
 0x37d   : > { %5374 = vrcp.f32 %v1804_v40  ;;  %v1811_v2 = vadd.f32 1.0, %v5365_v42  ;;  %v3547_v6 = vrot.slane %v3531_v59, %v6115_v24  ;;  %v3554_v54 = vrot.slane %v3532_v27, %v6115_v24 }
 0x37e   : > { %4544 = vperm.xlu1 %5145, %v3529_v43   ;;  %v3561_v55 = vrot.slane %v3533_v44, %v6115_v24  ;;  %v5059_v57 = vmul.f32 -1.442695, %v1685_v45  ;;  %v5060_v58 = vmul.f32 -1.442695, %v1686_v46  ;;  %v1687_v37 = vadd.f32 %v6081_v26, %v6386_v47 }
 0x37f   : > { %5376 = vrcp.f32 %v1811_v2  ;;  %v3562_v56 = vcombine.low %v3540_v48, %v3547_v6  ;;  %v1688_v30 = vadd.f32 %v6081_v26, %v1644_v17  ;;  %v2465_v41 = vrot.slane %v6366_v18, %v5848_v34 }
 0x380   : > { %v3563_v60 = vcombine.low %v3554_v54, %v3561_v55  ;;  %5378 = vpow2.f32 %v5059_v57  ;;  %v2469_v28 = vrot.slane %v6366_v18, %v5854_v36  ;;  %v5061_v63 = vmul.f32 -1.442695, %v1687_v37 }
 0x381   : > { %v6438_v61 = vpop.eup %5366  ;;  %v3570_v62 = vrot.slane %v3562_v56, %v6115_v24  ;;  %5380 = vpow2.f32 %v5060_v58  ;;  %v5062_v51 = vmul.f32 -1.442695, %v1688_v30  ;;  %v2473_v4 = vrot.slane %v6366_v18, %v6091_v7  ;;  %v1653_v58 = vpop.xlane.xlu1 %1652 }
 0x382   : > { %v6441_v0 = vpop.eup %5368  ;;  %v3577_v47 = vrot.slane %v3563_v60, %v6115_v24  ;;  %v2477_v1 = vrot.slane %v6366_v18, %v6094_v9  ;;  %v2481_v5 = vrot.slane %v6366_v18, %v6097_v10  ;;  %5382 = vpow2.f32 %v5061_v63 }
 0x383   : > { %v5371_v12 = vpop.eup %5370  ;;  %v2485_v13 = vrot.slane %v6366_v18, %v6100_v11  ;;  %v2489_v14 = vrot.slane %v6366_v18, %v6103_v53  ;;  %v2493_v21 = vrot.slane %v6366_v18, %v6106_v15  ;;  %5384 = vpow2.f32 %v5062_v51 }
 0x384   : > { %v5373_v17 = vpop.eup %5372  ;;  %v1805_v20 = vadd.f32 1.0, %v5371_v12  ;;  %v3578_v22 = vcombine.low %v3570_v62, %v3577_v47  ;;  %v3775_v23 = vcombine.low %v2465_v41, %v2469_v28  ;;  %v3776_v25 = vcombine.low %v2473_v4, %v2477_v1 }
 0x385   : > { %v1812_v3 = vadd.f32 1.0, %v5373_v17  ;;  %v3777_v31 = vcombine.low %v2481_v5, %v2485_v13  ;;  %v3778_v38 = vcombine.low %v2489_v14, %v2493_v21  ;;  %v1689_v35 = vadd.f32 %v6081_v26, %v1647_v50 }
 0x386   : > { %5386 = vrcp.f32 %v1805_v20  ;;  %4547 = vperm.xlu1 %5145, %v3578_v22   ;;  %v3785_v29 = vrot.slane %v3775_v23, %v6115_v24  ;;  %v1690_v19 = vadd.f32 %v6081_v26, %v1650_v16  ;;  %v3792_v18 = vrot.slane %v3776_v25, %v6115_v24 }
 0x387   : > { %v6459_v40 = vpop.eup %5374  ;;  %5388 = vrcp.f32 %v1812_v3  ;;  %v3799_v8 = vrot.slane %v3777_v31, %v6115_v24  ;;  %v3806_v59 = vrot.slane %v3778_v38, %v6115_v24  ;;  %v5063_v27 = vmul.f32 -1.442695, %v1689_v35  ;;  %v1656_v35 = vpop.xlane.xlu1 %1655 }
 0x388   : > { %v5064_v42 = vmul.f32 -1.442695, %v1690_v19  ;;  %v2529_v43 = vrot.slane %v6421_v39, %v5848_v34  ;;  %v2533_v44 = vrot.slane %v6421_v39, %v5854_v36  ;;  %v3807_v46 = vcombine.low %v3785_v29, %v3792_v18 }
 0x389   : > { %v6468_v45 = vpop.eup %5376  ;;  %v3808_v2 = vcombine.low %v3799_v8, %v3806_v59  ;;  %v2537_v48 = vrot.slane %v6421_v39, %v6091_v7  ;;  %v2541_v6 = vrot.slane %v6421_v39, %v6094_v9  ;;  %5390 = vpow2.f32 %v5063_v27 }
 0x38a   : > { %v5379_v50 = vpop.eup %5378  ;;  %v2545_v54 = vrot.slane %v6421_v39, %v6097_v10  ;;  %v2549_v55 = vrot.slane %v6421_v39, %v6100_v11  ;;  %v2553_v57 = vrot.slane %v6421_v39, %v6103_v53  ;;  %v3815_v30 = vrot.slane %v3807_v46, %v6115_v24 }
 0x38b   : > { %v5381_v56 = vpop.eup %5380  ;;  %v1813_v37 = vadd.f32 1.0, %v5379_v50  ;;  %v3822_v60 = vrot.slane %v3808_v2, %v6115_v24  ;;  %5392 = vpow2.f32 %v5064_v42  ;;  %v2557_v28 = vrot.slane %v6421_v39, %v6106_v15 }
 0x38c   : > { %v1814_v41 = vadd.f32 1.0, %v5381_v56  ;;  %v3873_v62 = vcombine.low %v2529_v43, %v2533_v44  ;;  %v3874_v63 = vcombine.low %v2537_v48, %v2541_v6  ;;  %v5383_v51 = vpop.eup %5382  ;;  %v3875_v4 = vcombine.low %v2545_v54, %v2549_v55 }
 0x38d   : > { %5394 = vrcp.f32 %v1813_v37  ;;  %v3823_v47 = vcombine.low %v3815_v30, %v3822_v60  ;;  %v1691_v1 = vadd.f32 %v6081_v26, %v1653_v58  ;;  %v5385_v5 = vpop.eup %5384  ;;  %v1815_v12 = vadd.f32 1.0, %v5383_v51 }
 0x38e   : > { %5396 = vrcp.f32 %v1814_v41  ;;  %v3876_v13 = vcombine.low %v2553_v57, %v2557_v28  ;;  %v3883_v14 = vrot.slane %v3873_v62, %v6115_v24  ;;  %v1816_v21 = vadd.f32 1.0, %v5385_v5 }
 0x38f   : > { %4562 = vperm.xlu0 %5144, %v3823_v47   ;;  %v3890_v16 = vrot.slane %v3874_v63, %v6115_v24  ;;  %v3897_v39 = vrot.slane %v3875_v4, %v6115_v24  ;;  %v5065_v17 = vmul.f32 -1.442695, %v1691_v1  ;;  %5398 = vrcp.f32 %v1815_v12  ;;  %v1659_v1 = vpop.xlane.xlu1 %1658 }
 0x390   : > { %v6488_v20 = vpop.eup %5386  ;;  %v3904_v22 = vrot.slane %v3876_v13, %v6115_v24  ;;  %v2337_v23 = vrot.slane %v6438_v61, %v5848_v34  ;;  %v2341_v3 = vrot.slane %v6438_v61, %v5854_v36  ;;  %5400 = vrcp.f32 %v1816_v21 }
 0x391   : > { %v6495_v25 = vpop.eup %5388  ;;  %v3905_v31 = vcombine.low %v3883_v14, %v3890_v16  ;;  %v2345_v38 = vrot.slane %v6438_v61, %v6091_v7  ;;  %v2349_v29 = vrot.slane %v6438_v61, %v6094_v9  ;;  %5402 = vpow2.f32 %v5065_v17 }
 0x392   : > { %v3906_v19 = vcombine.low %v3897_v39, %v3904_v22  ;;  %v2353_v18 = vrot.slane %v6438_v61, %v6097_v10  ;;  %v2357_v8 = vrot.slane %v6438_v61, %v6100_v11  ;;  %v2361_v27 = vrot.slane %v6438_v61, %v6103_v53 }
 0x393   : > { %v3913_v59 = vrot.slane %v3905_v31, %v6115_v24  ;;  %v2365_v42 = vrot.slane %v6438_v61, %v6106_v15  ;;  %v3579_v43 = vcombine.low %v2337_v23, %v2341_v3  ;;  %v5391_v44 = vpop.eup %5390  ;;  %v3580_v2 = vcombine.low %v2345_v38, %v2349_v29 }
 0x394   : > { %v3920_v46 = vrot.slane %v3906_v19, %v6115_v24  ;;  %v3581_v48 = vcombine.low %v2353_v18, %v2357_v8  ;;  %v1692_v6 = vadd.f32 %v6081_v26, %v1656_v35  ;;  %v1817_v54 = vadd.f32 1.0, %v5391_v44 }
 0x395   : > { %v5393_v50 = vpop.eup %5392  ;;  %v3582_v55 = vcombine.low %v2361_v27, %v2365_v42  ;;  %v3589_v57 = vrot.slane %v3579_v43, %v6115_v24  ;;  %v2433_v58 = vrot.slane %v6343_v49, %v5848_v34  ;;  %v3596_v61 = vrot.slane %v3580_v2, %v6115_v24 }
 0x396   : > { %v1818_v56 = vadd.f32 1.0, %v5393_v50  ;;  %v3921_v37 = vcombine.low %v3913_v59, %v3920_v46  ;;  %v3603_v30 = vrot.slane %v3581_v48, %v6115_v24  ;;  %5404 = vrcp.f32 %v1817_v54 }
 0x397   : > { %v6517_v60 = vpop.eup %5394  ;;  %v3610_v41 = vrot.slane %v3582_v55, %v6115_v24  ;;  %v5066_v28 = vmul.f32 -1.442695, %v1692_v6  ;;  %v2437_v62 = vrot.slane %v6343_v49, %v5854_v36  ;;  %v3611_v51 = vcombine.low %v3589_v57, %v3596_v61 }
 0x398   : > { %v6522_v63 = vpop.eup %5396  ;;  %5406 = vrcp.f32 %v1818_v56  ;;  %4568 = vperm.xlu0 %5144, %v3921_v37   ;;  %v2441_v47 = vrot.slane %v6343_v49, %v6091_v7  ;;  %v2445_v4 = vrot.slane %v6343_v49, %v6094_v9  ;;  %v2449_v12 = vrot.slane %v6343_v49, %v6097_v10 }
 0x399   : > { %v3612_v5 = vcombine.low %v3603_v30, %v3610_v41  ;;  %5408 = vpow2.f32 %v5066_v28  ;;  %v2453_v13 = vrot.slane %v6343_v49, %v6100_v11  ;;  %v6532_v14 = vpop.eup %5398  ;;  %v3619_v21 = vrot.slane %v3611_v51, %v6115_v24 }
 0x39a   : > { %v2457_v16 = vrot.slane %v6343_v49, %v6103_v53  ;;  %v2461_v39 = vrot.slane %v6343_v49, %v6106_v15  ;;  %v3726_v17 = vcombine.low %v2433_v58, %v2437_v62  ;;  %v6539_v22 = vpop.eup %5400  ;;  %v3727_v3 = vcombine.low %v2441_v47, %v2445_v4 }
 0x39b   : > { %v3626_v23 = vrot.slane %v3612_v5, %v6115_v24  ;;  %v3728_v31 = vcombine.low %v2449_v12, %v2453_v13  ;;  %v1693_v38 = vadd.f32 %v6081_v26, %v1659_v1  ;;  %v5403_v29 = vpop.eup %5402  ;;  %v2593_v18 = vrot.slane %v6468_v45, %v5848_v34 }
 0x39c   : > { %v3729_v35 = vcombine.low %v2457_v16, %v2461_v39  ;;  %v3736_v19 = vrot.slane %v3726_v17, %v6115_v24  ;;  %v2597_v8 = vrot.slane %v6468_v45, %v5854_v36  ;;  %v1819_v49 = vadd.f32 1.0, %v5403_v29 }
 0x39d   : > { %v3627_v59 = vcombine.low %v3619_v21, %v3626_v23  ;;  %v3743_v27 = vrot.slane %v3727_v3, %v6115_v24  ;;  %v3750_v42 = vrot.slane %v3728_v31, %v6115_v24  ;;  %v5067_v44 = vmul.f32 -1.442695, %v1693_v38 }
 0x39e   : > { %v3757_v43 = vrot.slane %v3729_v35, %v6115_v24  ;;  %v2601_v26 = vrot.slane %v6468_v45, %v6091_v7  ;;  %v2605_v46 = vrot.slane %v6468_v45, %v6094_v9  ;;  %5410 = vrcp.f32 %v1819_v49 }
 0x39f   : > { %4550 = vperm.xlu1 %5145, %v3627_v59   ;;  %v3758_v2 = vcombine.low %v3736_v19, %v3743_v27  ;;  %v2609_v48 = vrot.slane %v6468_v45, %v6097_v10  ;;  %v2613_v6 = vrot.slane %v6468_v45, %v6100_v11  ;;  %5412 = vpow2.f32 %v5067_v44 }
 0x3a0   : > { %v3759_v50 = vcombine.low %v3750_v42, %v3757_v43  ;;  %v2617_v54 = vrot.slane %v6468_v45, %v6103_v53  ;;  %v2621_v55 = vrot.slane %v6468_v45, %v6106_v15  ;;  %v6563_v57 = vpop.eup %5404  ;;  %v3971_v56 = vcombine.low %v2593_v18, %v2597_v8 }
 0x3a1   : > { %v3766_v58 = vrot.slane %v3758_v2, %v6115_v24  ;;  %v3972_v37 = vcombine.low %v2601_v26, %v2605_v46  ;;  %v3973_v61 = vcombine.low %v2609_v48, %v2613_v6  ;;  %v2497_v62 = vrot.slane %v6393_v52, %v5848_v34 }
 0x3a2   : > { %v6566_v30 = vpop.eup %5406  ;;  %v3773_v41 = vrot.slane %v3759_v50, %v6115_v24  ;;  %v3974_v28 = vcombine.low %v2617_v54, %v2621_v55  ;;  %v2501_v51 = vrot.slane %v6393_v52, %v5854_v36  ;;  %v3981_v45 = vrot.slane %v3971_v56, %v6115_v24 }
 0x3a3   : > { %v5409_v47 = vpop.eup %5408  ;;  %v3988_v4 = vrot.slane %v3972_v37, %v6115_v24  ;;  %v3995_v1 = vrot.slane %v3973_v61, %v6115_v24  ;;  %v2505_v5 = vrot.slane %v6393_v52, %v6091_v7  ;;  %v2509_v16 = vrot.slane %v6393_v52, %v6094_v9 }
 0x3a4   : > { %v1820_v12 = vadd.f32 1.0, %v5409_v47  ;;  %v3774_v13 = vcombine.low %v3766_v58, %v3773_v41  ;;  %v4002_v21 = vrot.slane %v3974_v28, %v6115_v24  ;;  %v2513_v17 = vrot.slane %v6393_v52, %v6097_v10 }
 0x3a5   : > { %v4003_v39 = vcombine.low %v3981_v45, %v3988_v4  ;;  %v2517_v23 = vrot.slane %v6393_v52, %v6100_v11  ;;  %v2521_v3 = vrot.slane %v6393_v52, %v6103_v53  ;;  %v2525_v38 = vrot.slane %v6393_v52, %v6106_v15 }
 0x3a6   : > { %5414 = vrcp.f32 %v1820_v12  ;;  %4559 = vperm.xlu1 %5145, %v3774_v13   ;;  %v4004_v31 = vcombine.low %v3995_v1, %v4002_v21  ;;  %v3824_v29 = vcombine.low %v2497_v62, %v2501_v51  ;;  %v3825_v19 = vcombine.low %v2505_v5, %v2509_v16 }
 0x3a7   : > { %v4011_v35 = vrot.slane %v4003_v39, %v6115_v24  ;;  %v3826_v18 = vcombine.low %v2513_v17, %v2517_v23  ;;  %v2561_v8 = vrot.slane %v6441_v0, %v5848_v34  ;;  %v3827_v59 = vcombine.low %v2521_v3, %v2525_v38 }
 0x3a8   : > { %v4018_v49 = vrot.slane %v4004_v31, %v6115_v24  ;;  %v3834_v27 = vrot.slane %v3824_v29, %v6115_v24  ;;  %v2565_v42 = vrot.slane %v6441_v0, %v5854_v36  ;;  %v6596_v43 = vpop.eup %5410  ;;  %v3841_v52 = vrot.slane %v3825_v19, %v6115_v24 }
 0x3a9   : > { %v3848_v44 = vrot.slane %v3826_v18, %v6115_v24  ;;  %v2569_v26 = vrot.slane %v6441_v0, %v6091_v7  ;;  %v2573_v46 = vrot.slane %v6441_v0, %v6094_v9  ;;  %v5413_v2 = vpop.eup %5412  ;;  %v3855_v6 = vrot.slane %v3827_v59, %v6115_v24 }
 0x3aa   : > { %v4019_v48 = vcombine.low %v4011_v35, %v4018_v49  ;;  %v2577_v50 = vrot.slane %v6441_v0, %v6097_v10  ;;  %v2581_v54 = vrot.slane %v6441_v0, %v6100_v11  ;;  %v1821_v55 = vadd.f32 1.0, %v5413_v2 }
 0x3ab   : > { %v3856_v58 = vcombine.low %v3834_v27, %v3841_v52  ;;  %v2585_v56 = vrot.slane %v6441_v0, %v6103_v53  ;;  %v2589_v37 = vrot.slane %v6441_v0, %v6106_v15  ;;  %v3857_v61 = vcombine.low %v3848_v44, %v3855_v6 }
 0x3ac   : > { %4574 = vperm.xlu0 %5144, %v4019_v48   ;;  %v3922_v41 = vcombine.low %v2561_v8, %v2565_v42  ;;  %v3923_v28 = vcombine.low %v2569_v26, %v2573_v46  ;;  %v3924_v62 = vcombine.low %v2577_v50, %v2581_v54  ;;  %5416 = vrcp.f32 %v1821_v55 }
 0x3ad   : > { %v3864_v51 = vrot.slane %v3856_v58, %v6115_v24  ;;  %v3925_v47 = vcombine.low %v2585_v56, %v2589_v37  ;;  %v2657_v45 = vrot.slane %v6517_v60, %v5848_v34  ;;  %v3871_v4 = vrot.slane %v3857_v61, %v6115_v24 }
 0x3ae   : > { %v3932_v1 = vrot.slane %v3922_v41, %v6115_v24  ;;  %v3939_v5 = vrot.slane %v3923_v28, %v6115_v24  ;;  %v3946_v0 = vrot.slane %v3924_v62, %v6115_v24  ;;  %v2661_v13 = vrot.slane %v6517_v60, %v5854_v36 }
 0x3af   : > { %v3953_v12 = vrot.slane %v3925_v47, %v6115_v24  ;;  %v2665_v21 = vrot.slane %v6517_v60, %v6091_v7  ;;  %v2669_v16 = vrot.slane %v6517_v60, %v6094_v9  ;;  %v3872_v17 = vcombine.low %v3864_v51, %v3871_v4 }
 0x3b0   : > { %v6627_v39 = vpop.eup %5414  ;;  %v3954_v23 = vcombine.low %v3932_v1, %v3939_v5  ;;  %v2673_v3 = vrot.slane %v6517_v60, %v6097_v10  ;;  %v2677_v31 = vrot.slane %v6517_v60, %v6100_v11  ;;  %v2681_v29 = vrot.slane %v6517_v60, %v6103_v53 }
 0x3b1   : > { %v3955_v38 = vcombine.low %v3946_v0, %v3953_v12  ;;  %v2685_v35 = vrot.slane %v6517_v60, %v6106_v15  ;;  %v4069_v19 = vcombine.low %v2657_v45, %v2661_v13  ;;  %4565 = vperm.xlu1 %5145, %v3872_v17   ;;  %v4070_v8 = vcombine.low %v2665_v21, %v2669_v16 }
 0x3b2   : > { %v3962_v18 = vrot.slane %v3954_v23, %v6115_v24  ;;  %v4071_v49 = vcombine.low %v2673_v3, %v2677_v31  ;;  %v2625_v59 = vrot.slane %v6495_v25, %v5848_v34  ;;  %v2629_v44 = vrot.slane %v6495_v25, %v5854_v36 }
 0x3b3   : > { %v3969_v27 = vrot.slane %v3955_v38, %v6115_v24  ;;  %v4072_v42 = vcombine.low %v2681_v29, %v2685_v35  ;;  %v4079_v52 = vrot.slane %v4069_v19, %v6115_v24  ;;  %v4086_v26 = vrot.slane %v4070_v8, %v6115_v24 }
 0x3b4   : > { %v4093_v60 = vrot.slane %v4071_v49, %v6115_v24  ;;  %v2633_v46 = vrot.slane %v6495_v25, %v6091_v7  ;;  %v2637_v2 = vrot.slane %v6495_v25, %v6094_v9  ;;  %v2641_v50 = vrot.slane %v6495_v25, %v6097_v10 }
 0x3b5   : > { %v3970_v48 = vcombine.low %v3962_v18, %v3969_v27  ;;  %v4100_v6 = vrot.slane %v4072_v42, %v6115_v24  ;;  %v2645_v54 = vrot.slane %v6495_v25, %v6100_v11  ;;  %v4101_v55 = vcombine.low %v4079_v52, %v4086_v26 }
 0x3b6   : > { %v2649_v58 = vrot.slane %v6495_v25, %v6103_v53  ;;  %v2653_v56 = vrot.slane %v6495_v25, %v6106_v15  ;;  %v4020_v37 = vcombine.low %v2625_v59, %v2629_v44  ;;  %v6659_v61 = vpop.eup %5416  ;;  %v4021_v28 = vcombine.low %v2633_v46, %v2637_v2 }
 0x3b7   : > { %4571 = vperm.xlu1 %5145, %v3970_v48   ;;  %v4102_v41 = vcombine.low %v4093_v60, %v4100_v6  ;;  %v4022_v62 = vcombine.low %v2641_v50, %v2645_v54  ;;  %v2689_v51 = vrot.slane %v6522_v63, %v5848_v34  ;;  %v4109_v47 = vrot.slane %v4101_v55, %v6115_v24 }
 0x3b8   : > { %v4023_v45 = vcombine.low %v2649_v58, %v2653_v56  ;;  %v4030_v4 = vrot.slane %v4020_v37, %v6115_v24  ;;  %v2693_v1 = vrot.slane %v6522_v63, %v5854_v36  ;;  %v4037_v5 = vrot.slane %v4021_v28, %v6115_v24 }
 0x3b9   : > { %v4116_v25 = vrot.slane %v4102_v41, %v6115_v24  ;;  %v4044_v0 = vrot.slane %v4022_v62, %v6115_v24  ;;  %v2697_v12 = vrot.slane %v6522_v63, %v6091_v7  ;;  %v2701_v21 = vrot.slane %v6522_v63, %v6094_v9 }
 0x3ba   : > { %v4051_v13 = vrot.slane %v4023_v45, %v6115_v24  ;;  %v2705_v16 = vrot.slane %v6522_v63, %v6097_v10  ;;  %v2709_v17 = vrot.slane %v6522_v63, %v6100_v11  ;;  %v4052_v3 = vcombine.low %v4030_v4, %v4037_v5 }
 0x3bb   : > { %v4117_v23 = vcombine.low %v4109_v47, %v4116_v25  ;;  %v2713_v31 = vrot.slane %v6522_v63, %v6103_v53  ;;  %v2717_v38 = vrot.slane %v6522_v63, %v6106_v15  ;;  %v4118_v35 = vcombine.low %v2689_v51, %v2693_v1 }
 0x3bc   : > { %v4053_v29 = vcombine.low %v4044_v0, %v4051_v13  ;;  %v4119_v19 = vcombine.low %v2697_v12, %v2701_v21  ;;  %v4120_v18 = vcombine.low %v2705_v16, %v2709_v17  ;;  %v4060_v8 = vrot.slane %v4052_v3, %v6115_v24 }
 0x3bd   : > { %4580 = vperm.xlu0 %5144, %v4117_v23   ;;  %v4121_v49 = vcombine.low %v2713_v31, %v2717_v38  ;;  %v2721_v59 = vrot.slane %v6532_v14, %v5848_v34  ;;  %v2725_v27 = vrot.slane %v6532_v14, %v5854_v36  ;;  %v4128_v52 = vrot.slane %v4118_v35, %v6115_v24 }
 0x3be   : > { %v4067_v42 = vrot.slane %v4053_v29, %v6115_v24  ;;  %v4135_v63 = vrot.slane %v4119_v19, %v6115_v24  ;;  %v4142_v44 = vrot.slane %v4120_v18, %v6115_v24  ;;  %v2729_v60 = vrot.slane %v6532_v14, %v6091_v7 }
 0x3bf   : > { %v4149_v26 = vrot.slane %v4121_v49, %v6115_v24  ;;  %v2733_v46 = vrot.slane %v6532_v14, %v6094_v9  ;;  %v2737_v2 = vrot.slane %v6532_v14, %v6097_v10  ;;  %v2741_v50 = vrot.slane %v6532_v14, %v6100_v11 }
 0x3c0   : > { %v4068_v48 = vcombine.low %v4060_v8, %v4067_v42  ;;  %v4150_v6 = vcombine.low %v4128_v52, %v4135_v63  ;;  %v2745_v54 = vrot.slane %v6532_v14, %v6103_v53  ;;  %v2749_v58 = vrot.slane %v6532_v14, %v6106_v15 }
 0x3c1   : > { %v4151_v55 = vcombine.low %v4142_v44, %v4149_v26  ;;  %v4167_v56 = vcombine.low %v2721_v59, %v2725_v27  ;;  %v4168_v37 = vcombine.low %v2729_v60, %v2733_v46  ;;  %v4169_v28 = vcombine.low %v2737_v2, %v2741_v50 }
 0x3c2   : > { %4577 = vperm.xlu1 %5145, %v4068_v48   ;;  %v4158_v41 = vrot.slane %v4150_v6, %v6115_v24  ;;  %v2369_v62 = vrot.slane %v6459_v40, %v5848_v34  ;;  %v2373_v51 = vrot.slane %v6459_v40, %v5854_v36  ;;  %v4170_v45 = vcombine.low %v2745_v54, %v2749_v58 }
 0x3c3   : > { %v4165_v47 = vrot.slane %v4151_v55, %v6115_v24  ;;  %v4177_v4 = vrot.slane %v4167_v56, %v6115_v24  ;;  %v4184_v1 = vrot.slane %v4168_v37, %v6115_v24  ;;  %v4191_v14 = vrot.slane %v4169_v28, %v6115_v24 }
 0x3c4   : > { %v2377_v25 = vrot.slane %v6459_v40, %v6091_v7  ;;  %v2381_v5 = vrot.slane %v6459_v40, %v6094_v9  ;;  %v2385_v0 = vrot.slane %v6459_v40, %v6097_v10  ;;  %v4198_v13 = vrot.slane %v4170_v45, %v6115_v24 }
 0x3c5   : > { %v4166_v12 = vcombine.low %v4158_v41, %v4165_v47  ;;  %v4199_v21 = vcombine.low %v4177_v4, %v4184_v1  ;;  %v2389_v16 = vrot.slane %v6459_v40, %v6100_v11  ;;  %v2393_v17 = vrot.slane %v6459_v40, %v6103_v53 }
 0x3c6   : > { %v2397_v23 = vrot.slane %v6459_v40, %v6106_v15  ;;  %v3628_v3 = vcombine.low %v2369_v62, %v2373_v51  ;;  %v3629_v31 = vcombine.low %v2377_v25, %v2381_v5  ;;  %v4200_v38 = vcombine.low %v4191_v14, %v4198_v13 }
 0x3c7   : > { %4583 = vperm.xlu1 %5145, %v4166_v12   ;;  %v4207_v29 = vrot.slane %v4199_v21, %v6115_v24  ;;  %v3630_v35 = vcombine.low %v2385_v0, %v2389_v16  ;;  %v2753_v19 = vrot.slane %v6539_v22, %v5848_v34  ;;  %v2757_v59 = vrot.slane %v6539_v22, %v5854_v36 }
 0x3c8   : > { %v3631_v18 = vcombine.low %v2393_v17, %v2397_v23  ;;  %v3638_v8 = vrot.slane %v3628_v3, %v6115_v24  ;;  %v3645_v49 = vrot.slane %v3629_v31, %v6115_v24  ;;  %v4214_v40 = vrot.slane %v4200_v38, %v6115_v24 }
 0x3c9   : > { %v3652_v27 = vrot.slane %v3630_v35, %v6115_v24  ;;  %v2761_v42 = vrot.slane %v6539_v22, %v6091_v7  ;;  %v2765_v52 = vrot.slane %v6539_v22, %v6094_v9  ;;  %v2769_v26 = vrot.slane %v6539_v22, %v6097_v10 }
 0x3ca   : > { %v3659_v63 = vrot.slane %v3631_v18, %v6115_v24  ;;  %v3660_v44 = vcombine.low %v3638_v8, %v3645_v49  ;;  %v2773_v60 = vrot.slane %v6539_v22, %v6100_v11  ;;  %v4215_v46 = vcombine.low %v4207_v29, %v4214_v40 }
 0x3cb   : > { %v2777_v2 = vrot.slane %v6539_v22, %v6103_v53  ;;  %v2781_v48 = vrot.slane %v6539_v22, %v6106_v15  ;;  %v4216_v6 = vcombine.low %v2753_v19, %v2757_v59  ;;  %v4217_v55 = vcombine.low %v2761_v42, %v2765_v52 }
 0x3cc   : > { %v3661_v50 = vcombine.low %v3652_v27, %v3659_v63  ;;  %v3668_v54 = vrot.slane %v3660_v44, %v6115_v24  ;;  %v4218_v58 = vcombine.low %v2769_v26, %v2773_v60  ;;  %4586 = vperm.xlu0 %5144, %v4215_v46   ;;  %v2401_v41 = vrot.slane %v6488_v20, %v5848_v34 }
 0x3cd   : > { %v4219_v56 = vcombine.low %v2777_v2, %v2781_v48  ;;  %v4226_v37 = vrot.slane %v4216_v6, %v6115_v24  ;;  %v2405_v28 = vrot.slane %v6488_v20, %v5854_v36  ;;  %v4233_v22 = vrot.slane %v4217_v55, %v6115_v24 }
 0x3ce   : > { %v3675_v62 = vrot.slane %v3661_v50, %v6115_v24  ;;  %v4240_v51 = vrot.slane %v4218_v58, %v6115_v24  ;;  %v2409_v47 = vrot.slane %v6488_v20, %v6091_v7  ;;  %v2413_v4 = vrot.slane %v6488_v20, %v6094_v9 }
 0x3cf   : > { %v4247_v45 = vrot.slane %v4219_v56, %v6115_v24  ;;  %v2417_v1 = vrot.slane %v6488_v20, %v6097_v10  ;;  %v2421_v14 = vrot.slane %v6488_v20, %v6100_v11  ;;  %v4248_v5 = vcombine.low %v4226_v37, %v4233_v22 }
 0x3d0   : > { %v3676_v25 = vcombine.low %v3668_v54, %v3675_v62  ;;  %v2425_v0 = vrot.slane %v6488_v20, %v6103_v53  ;;  %v2429_v12 = vrot.slane %v6488_v20, %v6106_v15  ;;  %v3677_v21 = vcombine.low %v2401_v41, %v2405_v28 }
 0x3d1   : > { %v4249_v13 = vcombine.low %v4240_v51, %v4247_v45  ;;  %v3678_v16 = vcombine.low %v2409_v47, %v2413_v4  ;;  %v3679_v17 = vcombine.low %v2417_v1, %v2421_v14  ;;  %v4256_v23 = vrot.slane %v4248_v5, %v6115_v24 }
 0x3d2   : > { %4553 = vperm.xlu1 %5145, %v3676_v25   ;;  %v3680_v3 = vcombine.low %v2425_v0, %v2429_v12  ;;  %v2785_v31 = vrot.slane %v6563_v57, %v5848_v34  ;;  %v2789_v38 = vrot.slane %v6563_v57, %v5854_v36  ;;  %v3687_v35 = vrot.slane %v3677_v21, %v6115_v24 }
 0x3d3   : > { %v4263_v29 = vrot.slane %v4249_v13, %v6115_v24  ;;  %v3694_v20 = vrot.slane %v3678_v16, %v6115_v24  ;;  %v3701_v19 = vrot.slane %v3679_v17, %v6115_v24  ;;  %v2793_v8 = vrot.slane %v6563_v57, %v6091_v7 }
 0x3d4   : > { %v3708_v18 = vrot.slane %v3680_v3, %v6115_v24  ;;  %v2797_v49 = vrot.slane %v6563_v57, %v6094_v9  ;;  %v2801_v59 = vrot.slane %v6563_v57, %v6097_v10  ;;  %v2805_v42 = vrot.slane %v6563_v57, %v6100_v11 }
 0x3d5   : > { %v4264_v40 = vcombine.low %v4256_v23, %v4263_v29  ;;  %v3709_v27 = vcombine.low %v3687_v35, %v3694_v20  ;;  %v2809_v52 = vrot.slane %v6563_v57, %v6103_v53  ;;  %v2813_v44 = vrot.slane %v6563_v57, %v6106_v15 }
 0x3d6   : > { %v3710_v63 = vcombine.low %v3701_v19, %v3708_v18  ;;  %v4265_v26 = vcombine.low %v2785_v31, %v2789_v38  ;;  %v4266_v60 = vcombine.low %v2793_v8, %v2797_v49  ;;  %v4267_v2 = vcombine.low %v2801_v59, %v2805_v42 }
 0x3d7   : > { %4589 = vperm.xlu0 %5144, %v4264_v40   ;;  %v3717_v46 = vrot.slane %v3709_v27, %v6115_v24  ;;  %v2817_v48 = vrot.slane %v6566_v30, %v5848_v34  ;;  %v2821_v6 = vrot.slane %v6566_v30, %v5854_v36  ;;  %v4268_v54 = vcombine.low %v2809_v52, %v2813_v44 }
 0x3d8   : > { %v3724_v50 = vrot.slane %v3710_v63, %v6115_v24  ;;  %v4275_v55 = vrot.slane %v4265_v26, %v6115_v24  ;;  %v4282_v58 = vrot.slane %v4266_v60, %v6115_v24  ;;  %v4289_v57 = vrot.slane %v4267_v2, %v6115_v24 }
 0x3d9   : > { %v2825_v56 = vrot.slane %v6566_v30, %v6091_v7  ;;  %v2829_v37 = vrot.slane %v6566_v30, %v6094_v9  ;;  %v2833_v41 = vrot.slane %v6566_v30, %v6097_v10  ;;  %v4296_v62 = vrot.slane %v4268_v54, %v6115_v24 }
 0x3da   : > { %v3725_v28 = vcombine.low %v3717_v46, %v3724_v50  ;;  %v4297_v22 = vcombine.low %v4275_v55, %v4282_v58  ;;  %v2837_v51 = vrot.slane %v6566_v30, %v6100_v11  ;;  %v2841_v47 = vrot.slane %v6566_v30, %v6103_v53 }
 0x3db   : > { %v2845_v45 = vrot.slane %v6566_v30, %v6106_v15  ;;  %v4314_v4 = vcombine.low %v2817_v48, %v2821_v6  ;;  %v4315_v1 = vcombine.low %v2825_v56, %v2829_v37  ;;  %v4298_v14 = vcombine.low %v4289_v57, %v4296_v62 }
 0x3dc   : > { %4556 = vperm.xlu1 %5145, %v3725_v28   ;;  %v4305_v25 = vrot.slane %v4297_v22, %v6115_v24  ;;  %v4316_v5 = vcombine.low %v2833_v41, %v2837_v51  ;;  %v2849_v0 = vrot.slane %v6596_v43, %v5848_v34  ;;  %v2853_v16 = vrot.slane %v6596_v43, %v5854_v36 }
 0x3dd   : > { %v4317_v12 = vcombine.low %v2841_v47, %v2845_v45  ;;  %v4324_v13 = vrot.slane %v4314_v4, %v6115_v24  ;;  %v4331_v21 = vrot.slane %v4315_v1, %v6115_v24  ;;  %v4312_v30 = vrot.slane %v4298_v14, %v6115_v24 }
 0x3de   : > { %v4338_v17 = vrot.slane %v4316_v5, %v6115_v24  ;;  %v2857_v23 = vrot.slane %v6596_v43, %v6091_v7  ;;  %v2861_v3 = vrot.slane %v6596_v43, %v6094_v9  ;;  %v2865_v29 = vrot.slane %v6596_v43, %v6097_v10 }
 0x3df   : > { %v4345_v31 = vrot.slane %v4317_v12, %v6115_v24  ;;  %v4346_v38 = vcombine.low %v4324_v13, %v4331_v21  ;;  %v2869_v35 = vrot.slane %v6596_v43, %v6100_v11  ;;  %v4313_v20 = vcombine.low %v4305_v25, %v4312_v30 }
 0x3e0   : > { %v2873_v19 = vrot.slane %v6596_v43, %v6103_v53  ;;  %v2877_v18 = vrot.slane %v6596_v43, %v6106_v15  ;;  %v4363_v8 = vcombine.low %v2849_v0, %v2853_v16  ;;  %v4364_v40 = vcombine.low %v2857_v23, %v2861_v3 }
 0x3e1   : > { %v4347_v49 = vcombine.low %v4338_v17, %v4345_v31  ;;  %v4354_v59 = vrot.slane %v4346_v38, %v6115_v24  ;;  %v4365_v27 = vcombine.low %v2865_v29, %v2869_v35  ;;  %4592 = vperm.xlu0 %5144, %v4313_v20   ;;  %v2881_v63 = vrot.slane %v6627_v39, %v5848_v34 }
 0x3e2   : > { %v4366_v42 = vcombine.low %v2873_v19, %v2877_v18  ;;  %v4373_v52 = vrot.slane %v4363_v8, %v6115_v24  ;;  %v2885_v44 = vrot.slane %v6627_v39, %v5854_v36  ;;  %v4380_v43 = vrot.slane %v4364_v40, %v6115_v24  ;;  %v4515_v19 = vpop.permute.xlu1 %4514 }
 0x3e3   : > { %v4361_v26 = vrot.slane %v4347_v49, %v6115_v24  ;;  %v4387_v60 = vrot.slane %v4365_v27, %v6115_v24  ;;  %v2889_v46 = vrot.slane %v6627_v39, %v6091_v7  ;;  %v2893_v48 = vrot.slane %v6627_v39, %v6094_v9 }
 0x3e4   : > { %v4394_v2 = vrot.slane %v4366_v42, %v6115_v24  ;;  %v2897_v6 = vrot.slane %v6627_v39, %v6097_v10  ;;  %v2901_v50 = vrot.slane %v6627_v39, %v6100_v11  ;;  %v4395_v55 = vcombine.low %v4373_v52, %v4380_v43 }
 0x3e5   : > { %v4362_v54 = vcombine.low %v4354_v59, %v4361_v26  ;;  %v2905_v58 = vrot.slane %v6627_v39, %v6103_v53  ;;  %v2909_v57 = vrot.slane %v6627_v39, %v6106_v15  ;;  %v4412_v37 = vcombine.low %v2881_v63, %v2885_v44  ;;  %v4512_v63 = vpop.permute.xlu0 %4511 }
 0x3e6   : > { %v4396_v56 = vcombine.low %v4387_v60, %v4394_v2  ;;  %v4413_v41 = vcombine.low %v2889_v46, %v2893_v48  ;;  %v4414_v28 = vcombine.low %v2897_v6, %v2901_v50  ;;  %v4403_v62 = vrot.slane %v4395_v55, %v6115_v24  ;;  %v4518_v18 = vpop.permute.xlu1 %4517 }
 0x3e7   : > { %4595 = vperm.xlu0 %5144, %v4362_v54   ;;  %v4415_v22 = vcombine.low %v2905_v58, %v2909_v57  ;;  %v2913_v51 = vrot.slane %v6659_v61, %v5848_v34  ;;  %v2917_v47 = vrot.slane %v6659_v61, %v5854_v36  ;;  %v4422_v4 = vrot.slane %v4412_v37, %v6115_v24 }
 0x3e8   : > { %v4410_v45 = vrot.slane %v4396_v56, %v6115_v24  ;;  %v4429_v39 = vrot.slane %v4413_v41, %v6115_v24  ;;  %v4436_v1 = vrot.slane %v4414_v28, %v6115_v24  ;;  %v2921_v25 = vrot.slane %v6659_v61, %v6091_v7 }
 0x3e9   : > { %v4443_v14 = vrot.slane %v4415_v22, %v6115_v24  ;;  %v2925_v5 = vrot.slane %v6659_v61, %v6094_v9  ;;  %v2929_v34 = vrot.slane %v6659_v61, %v6097_v10  ;;  %v2933_v12 = vrot.slane %v6659_v61, %v6100_v11 }
 0x3ea   : > { %v4411_v36 = vcombine.low %v4403_v62, %v4410_v45  ;;  %v4444_v0 = vcombine.low %v4422_v4, %v4429_v39  ;;  %v2937_v13 = vrot.slane %v6659_v61, %v6103_v53  ;;  %v2941_v16 = vrot.slane %v6659_v61, %v6106_v15  ;;  %v4521_v8 = vpop.permute.xlu1 %4520 }
 0x3eb   : > { %v4445_v21 = vcombine.low %v4436_v1, %v4443_v14  ;;  %v4461_v30 = vcombine.low %v2913_v51, %v2917_v47  ;;  %v4462_v7 = vcombine.low %v2921_v25, %v2925_v5  ;;  %v4463_v17 = vcombine.low %v2929_v34, %v2933_v12 }
 0x3ec   : > { %4598 = vperm.xlu0 %5144, %v4411_v36   ;;  %v4452_v9 = vrot.slane %v4444_v0, %v6115_v24  ;;  %v4464_v23 = vcombine.low %v2937_v13, %v2941_v16  ;;  %v6916_v58 = vand.u32 127, %v408_v32 }
 0x3ed   : > { %v4459_v10 = vrot.slane %v4445_v21, %v6115_v24  ;;  %v4471_v3 = vrot.slane %v4461_v30, %v6115_v24  ;;  %v4478_v11 = vrot.slane %v4462_v7, %v6115_v24  ;;  %v4485_v31 = vrot.slane %v4463_v17, %v6115_v24 }
 0x3ee   : > { %v4492_v38 = vrot.slane %v4464_v23, %v6115_v24  ;;  %v6889_v49 = vpop.permute.xlu1 %4523  ;;  %v6903_v26 = vpop.permute.xlu0 %4538  ;;  %v4612_v57 = vadd.s32 4294967288, %v6916_v58  ;;  %v4619_v56 = vadd.s32 4294967280, %v6916_v58  ;;  %v4626_v37 = vadd.s32 4294967272, %v6916_v58 }
 0x3ef   : > { %v4460_v53 = vcombine.low %v4452_v9, %v4459_v10  ;;  %v4493_v29 = vcombine.low %v4471_v3, %v4478_v11  ;;  %v4633_v28 = vadd.s32 4294967264, %v6916_v58  ;;  %v4610_v51 = vsub.s32 %v6916_v58, %v5845_v33 }
 0x3f0   : > { %v4494_v15 = vcombine.low %v4485_v31, %v4492_v38  ;;  %v4615_v22 = vsub.s32 %v4612_v57, %v5845_v33  ;;  %v4622_v47 = vsub.s32 %v4619_v56, %v5845_v33  ;;  %v4629_v45 = vsub.s32 %v4626_v37, %v5845_v33 }
 0x3f1   : > { %4601 = vperm.xlu0 %5144, %v4460_v53   ;;  %v4501_v61 = vrot.slane %v4493_v29, %v6115_v24  ;;  %v4640_v4 = vadd.s32 4294967256, %v6916_v58  ;;  %v4636_v39 = vsub.s32 %v4633_v28, %v5845_v33  ;;  %v4647_v36 = vadd.s32 4294967248, %v6916_v58 }
 0x3f2   : > { %v4508_v35 = vrot.slane %v4494_v15, %v6115_v24  ;;  %v6891_v59 = vpop.permute.xlu1 %4526  ;;  %v4616_v14 = vrot.slane %v4515_v19, %v4615_v22  ;;  %v4623_v34 = vrot.slane %v4518_v18, %v4622_v47  ;;  %v4611_v13 = vrot.slane %v4512_v63, %v4610_v51 }
 0x3f3   : > { %v4630_v21 = vrot.slane %v4521_v8, %v4629_v45  ;;  %v4643_v16 = vsub.s32 %v4640_v4, %v5845_v33  ;;  %v4637_v30 = vrot.slane %v6889_v49, %v4636_v39  ;;  %v4654_v7 = vadd.s32 4294967240, %v6916_v58 }
 0x3f4   : > { %v4509_v20 = vcombine.low %v4501_v61, %v4508_v35  ;;  %v4618_v17 = vsel %vm4617_vm0, %v4616_v14, %v4611_v13  ;;  %v4650_v11 = vsub.s32 %v4647_v36, %v5845_v33  ;;  %v4661_v31 = vadd.s32 4294967232, %v6916_v58 }
 0x3f5   : > { %v4625_v3 = vsel %vm4624_vm1, %v4623_v34, %v4618_v17  ;;  %v4644_v29 = vrot.slane %v6891_v59, %v4643_v16  ;;  %v4668_v15 = vadd.s32 4294967224, %v6916_v58  ;;  %v4657_v19 = vsub.s32 %v4654_v7, %v5845_v33 }
 0x3f6   : > { %4604 = vperm.xlu0 %5144, %v4509_v20   ;;  %v6893_v40 = vpop.permute.xlu1 %4529  ;;  %v4632_v38 = vsel %vm4631_vm2, %v4630_v21, %v4625_v3  ;;  %v4675_v8 = vadd.s32 4294967216, %v6916_v58  ;;  %v4689_v56 = vadd.s32 4294967200, %v6916_v58 }
 0x3f7   : > { %v4639_v20 = vsel %vm4638_vm3, %v4637_v30, %v4632_v38  ;;  %v4651_v59 = vrot.slane %v6893_v40, %v4650_v11  ;;  %v4671_v57 = vsub.s32 %v4668_v15, %v5845_v33 }
 0x3fa   : > { %v6895_v27 = vpop.permute.xlu1 %4532 }
 0x3fb   : > { %v4658_v37 = vrot.slane %v6895_v27, %v4657_v19 }
 0x3fe   : > { %v6897_v42 = vpop.permute.xlu1 %4535 }
 0x402   : > { %v6899_v52 = vpop.permute.xlu1 %4541 }
 0x406   : > { %v6901_v44 = vpop.permute.xlu1 %4544 }
 0x40a   : > { %v6905_v43 = vpop.permute.xlu1 %4547 }
 0x40e   : > { %v4563_v60 = vpop.permute.xlu0 %4562 }
 0x40f   : > { %v4724_v0 = vrot.slane %v4563_v60, %v4615_v22  ;;  %v4664_v60 = vsub.s32 %v4661_v31, %v5845_v33  ;;  %v4678_v22 = vsub.s32 %v4675_v8, %v5845_v33 }
 0x411   : > { %v4665_v4 = vrot.slane %v6897_v42, %v4664_v60  ;;  %v4679_v13 = vrot.slane %v6899_v52, %v4678_v22 }
 0x417   : > { %v4569_v2 = vpop.permute.xlu0 %4568 }
 0x418   : > { %v4734_v53 = vrot.slane %v4569_v2, %v4629_v45  ;;  %v4682_v2 = vadd.s32 4294967208, %v6916_v58 }
 0x41e   : > { %v6907_v46 = vpop.permute.xlu1 %4550 }
 0x425   : > { %v4560_v6 = vpop.permute.xlu1 %4559 }
 0x426   : > { %v4720_v1 = vrot.slane %v4560_v6, %v4610_v51 }
 0x428   : > { %v4725_v9 = vsel %vm4617_vm0, %v4724_v0, %v4720_v1  ;;  %v4710_v1 = vadd.s32 4294967176, %v6916_v58 }
 0x42a   : > { %v4713_v7 = vsub.s32 %v4710_v1, %v5845_v33 }
 0x42b   : > { %v6909_v48 = vpop.permute.xlu0 %4574 }
 0x42c   : > { %v4744_v6 = vrot.slane %v6909_v48, %v4643_v16 }
 0x430   : > { %v4566_v54 = vpop.permute.xlu1 %4565 }
 0x431   : > { %v4729_v25 = vrot.slane %v4566_v54, %v4622_v47  ;;  %v4646_v54 = vsel %vm4645_vm4, %v4644_v29, %v4639_v20  ;;  %v4703_v47 = vadd.s32 4294967184, %v6916_v58 }
 0x432   : > { %v4653_v14 = vsel %vm4652_vm5, %v4651_v59, %v4646_v54 }
 0x433   : > { %v4730_v10 = vsel %vm4624_vm1, %v4729_v25, %v4725_v9  ;;  %v4672_v25 = vrot.slane %v6903_v26, %v4671_v57  ;;  %v4660_v34 = vsel %vm4659_vm6, %v4658_v37, %v4653_v14 }
 0x434   : > { %v4735_v18 = vsel %vm4631_vm2, %v4734_v53, %v4730_v10  ;;  %v4667_v16 = vsel %vm4666_vm7, %v4665_v4, %v4660_v34 }
 0x435   : > { %v4674_v17 = vsel %vm4673_vm8, %v4672_v25, %v4667_v16 }
 0x436   : > { %v4572_v41 = vpop.permute.xlu1 %4571 }
 0x437   : > { %v4739_v23 = vrot.slane %v4572_v41, %v4636_v39  ;;  %v4696_v41 = vadd.s32 4294967192, %v6916_v58  ;;  %v4685_v39 = vsub.s32 %v4682_v2, %v5845_v33  ;;  %v4706_v58 = vsub.s32 %v4703_v47, %v5845_v33 }
 0x439   : > { %v4740_v49 = vsel %vm4638_vm3, %v4739_v23, %v4735_v18  ;;  %v4699_v36 = vsub.s32 %v4696_v41, %v5845_v33  ;;  %v4686_v30 = vrot.slane %v6901_v44, %v4685_v39  ;;  %v4681_v44 = vsel %vm4680_vm9, %v4679_v13, %v4674_v17 }
 0x43a   : > { %v4745_v40 = vsel %vm4645_vm4, %v4744_v6, %v4740_v49 }
 0x43b   : > { %v4688_v31 = vsel %vm4687_vm10, %v4686_v30, %v4681_v44 }
 0x43c   : > { %v6911_v50 = vpop.permute.xlu0 %4580 }
 0x43d   : > { %v4754_v27 = vrot.slane %v6911_v50, %v4657_v19 }
 0x441   : > { %v4578_v5 = vpop.permute.xlu1 %4577 }
 0x442   : > { %v4749_v63 = vrot.slane %v4578_v5, %v4650_v11  ;;  %v4692_v5 = vsub.s32 %v4689_v56, %v5845_v33 }
 0x444   : > { %v4750_v51 = vsel %vm4652_vm5, %v4749_v63, %v4745_v40  ;;  %v4693_v52 = vrot.slane %v6905_v43, %v4692_v5 }
 0x445   : > { %v4755_v0 = vsel %vm4659_vm6, %v4754_v27, %v4750_v51 }
 0x446   : > { %v4584_v61 = vpop.permute.xlu1 %4583  ;;  %v4695_v38 = vsel %vm4694_vm11, %v4693_v52, %v4688_v31 }
 0x447   : > { %v4759_v48 = vrot.slane %v4584_v61, %v4664_v60 }
 0x449   : > { %v4760_v50 = vsel %vm4666_vm7, %v4759_v48, %v4755_v0 }
 0x44b   : > { %v6913_v55 = vpop.permute.xlu0 %4586 }
 0x44c   : > { %v4764_v42 = vrot.slane %v6913_v55, %v4671_v57 }
 0x44e   : > { %v4765_v23 = vsel %vm4673_vm8, %v4764_v42, %v4760_v50 }
 0x451   : > { %v4554_v45 = vpop.permute.xlu1 %4553 }
 0x452   : > { %v4707_v33 = vrot.slane %v4554_v45, %v4706_v58 }
 0x456   : > { %v6922_v62 = vpop.permute.xlu0 %4589 }
 0x457   : > { %v4769_v21 = vrot.slane %v6922_v62, %v4678_v22  ;;  %v4700_v62 = vrot.slane %v6907_v46, %v4699_v36 }
 0x459   : > { %v4702_v15 = vsel %vm4701_vm12, %v4700_v62, %v4695_v38 }
 0x45a   : > { %v4709_v20 = vsel %vm4708_vm13, %v4707_v33, %v4702_v15 }
 0x45b   : > { %v4557_v55 = vpop.permute.xlu1 %4556 }
 0x45c   : > { %v4714_v43 = vrot.slane %v4557_v55, %v4713_v7 }
 0x45e   : > { %v4716_v18 = vsel %vm4715_vm14, %v4714_v43, %v4709_v20 }
 0x460   : > { %v6932_v12 = vpop.permute.xlu0 %4592 }
 0x461   : > { %v4774_v9 = vrot.slane %v6932_v12, %v4685_v39  ;;  %v4770_v12 = vsel %vm4680_vm9, %v4769_v21, %v4765_v23 }
 0x463   : > { %v4775_v53 = vsel %vm4687_vm10, %v4774_v9, %v4770_v12 }
 0x466   : > { %v6946_v35 = vpop.permute.xlu0 %4595 }
 0x467   : > { %v4779_v10 = vrot.slane %v6946_v35, %v4692_v5 }
 0x469   : > { %v4780_v46 = vsel %vm4694_vm11, %v4779_v10, %v4775_v53 }
 0x46b   : > { %v4599_v28 = vpop.permute.xlu0 %4598 }
 0x46c   : > { %v4784_v3 = vrot.slane %v4599_v28, %v4699_v36 }
 0x46e   : > { %v4785_v61 = vsel %vm4701_vm12, %v4784_v3, %v4780_v46 }
 0x470   : > { %v4602_v26 = vpop.permute.xlu0 %4601 }
 0x471   : > { %v4789_v11 = vrot.slane %v4602_v26, %v4706_v58 }
 0x473   : > { %v4790_v19 = vsel %vm4708_vm13, %v4789_v11, %v4785_v61 }
 0x475   : > { %v4605_v29 = vpop.permute.xlu0 %4604 }
 0x476   : > { %v4794_v35 = vrot.slane %v4605_v29, %v4713_v7 }
 0x478   : > { %v4795_v8 = vsel %vm4715_vm14, %v4794_v35, %v4790_v19 }
 0x479   : > { %v4796_v49 = vcombine.low %v4716_v18, %v4795_v8 }
 0x47b   : > { %v4803_v63 = vrot.slane %v4796_v49, %v6115_v24 }
 0x47d   : > { %v4810_v59 = vrot.slane %v4803_v63, %v6115_v24 }
 0x47f   : > { %4816 = vst.msk [vmem:[%s334_s12] sm:$0x3] %vm4814_vm15, %v4810_v59 }
 0x480   : > { %5515 = shalt.err (!%p5512_p13)
}
 0x481   : > { %s5516_s11 = scalar_lea.hbm %s7006_s23, 32  ;;  %s5520_s17 = scalar_lea.hbm %s7057_s7, 64 }
 0x482   : > { %p5517_p0 = scmp.ne.s32.totalorder %s7006_s23, %s5516_s11  ;;  %p5521_p2 = scmp.lt.u32.totalorder %s7006_s23, %s7057_s7 }
 0x483   : > { %p5522_p8 = scmp.lt.u32.totalorder %s5520_s17, %s5516_s11  ;;  %p5524_p1 = scmp.lt.u32.totalorder %s5516_s11, %s7006_s23 }
 0x484   : > { %p5518_p12 = pnand %p5517_p0, %p7077_p10 }
 0x485   : > { %p5523_p9 = por %p5522_p8, %p5521_p2 }
 0x486   : > { %p5519_p7 = pneg %p5518_p12 }
 0x487   : > { %p5525_p3 = por %p5524_p1, %p5523_p9 }
 0x489   : > { %p5526_p5 = pnand %p5525_p3, %p5519_p7 }
 0x48b   : > { %5529 = shalt.err (!%p5526_p5)
}
 0x48c   : > { %5086 = dma.vmem_to_hbm [thread:$0]  (%p7077_p10), %s7008_s9, 32, %s7006_s23, %s4818_s6  }
 0x48d PF: > { %s4844_s21 = sand.u32 1, %s5560_s26   ;;  %p7078_p6 = scmp.ne.s32.totalorder %s7069_s15, 0 }
 0x48e   : > { %s4845_s22 = scalar_lea.sflag [#allocation5], %s4844_s21 }
 0x48f   : > { %p5096_p11 = pnand %p4925_p4, %p7078_p6 }
 0x491   : > { %5555 = dma.done.wait (!%p5096_p11), %s4845_s22, 32  }
 0x492   : > { %5557 = vsyncadd (!%p5096_p11), %s4845_s22, 4294967264  ;;  %s7079_s29 = sld [smem:[#allocation13_spill]]  ;;  %s7080_s12 = sld [smem:[#allocation14_spill]] }
 0x493   : > { %s7081_s26 = smov %s5564_s27  ;;  %s7082_s27 = smov %s5568_s28 }
 0x498   : > { %p22_p13 = scmp.ge.s32.totalorder %s7079_s29, 4   ;;  %s7083_s28 = smov %s7080_s12 }
 0x49a   :  { %24 = sbr.rel (!%p22_p13) target bundleno = 8 (0x8), region = 101 }
 0x4a1   :  { %4850 = vsyncpa [#allocation4], 1 }
 0x4a2   :  { %4852 = vsyncpa [#allocation4 + $0x1], 1 }
 0x4a3   :  { %4853 = vsyncpa [#allocation7], 1 }
 0x4a4   :  { %4854 = vsyncpa [#allocation5], 1 }
 0x4a5   :  { %4856 = vsyncpa [#allocation5 + $0x1], 1 }

</bundles_post_ra>
